<compile_context>
chip_gen: v7x
topology: tpu7x:2x2x1
jax: 0.10.0
libtpu: 0.0.40
codegen_flags: <defaults>
</compile_context>

<pallas_src>
import math

import jax
import jax.numpy as jnp
from jax.experimental import pallas as pl
from jax.experimental.pallas import tpu as pltpu


# ----------------------------------------------------------------------------
# Model configuration (scaled-down MiniLM-L3: 3 layers, mean pooling).
# ----------------------------------------------------------------------------
B, S = 2, 8             # batch, sequence length
H = 32                  # hidden ("word_embedding_dimension")
N_HEADS, D_HEAD = 4, 8  # H = N_HEADS * D_HEAD
FFN = 64                # intermediate size
N_LAYERS = 3
VOCAB = 100
MAX_POS = 32
N_CLASSES = 2
LN_EPS = 1e-12
ATTN_SCALE = 1.0 / math.sqrt(D_HEAD)


# ----------------------------------------------------------------------------
# In-kernel helpers
# ----------------------------------------------------------------------------
def _gelu(x):
    # TODO(synk): HF BERT uses exact erf-GELU; tanh approximation is used here
    # (tanh lowers to the EUP; erf lowering is not guaranteed on Mosaic).
    c = math.sqrt(2.0 / math.pi)
    return 0.5 * x * (1.0 + jnp.tanh(c * (x + 0.044715 * x * x * x)))


def _layernorm(x, g, b):
    mean = jnp.mean(x, axis=-1, keepdims=True)
    var = jnp.mean(jnp.square(x - mean), axis=-1, keepdims=True)
    return (x - mean) * jax.lax.rsqrt(var + LN_EPS) * g + b


def _mm(x, w_bf16):
    # bf16 MXU operands, f32 accumulation (v6e/v7x fast path; fine on v5e).
    return jnp.dot(x.astype(jnp.bfloat16), w_bf16,
                   preferred_element_type=jnp.float32)


# ----------------------------------------------------------------------------
# Single fused kernel: embeddings-LN -> 3 encoder layers -> pool -> classifier
# ----------------------------------------------------------------------------
def _llm_kernel(x_ref, mask_ref, emb_g_ref, emb_b_ref,
                wqkv_ref, bqkv_ref, wo_ref, bo_ref, ln1g_ref, ln1b_ref,
                w1_ref, b1_ref, w2_ref, b2_ref, ln2g_ref, ln2b_ref,
                clsw_ref, clsb_ref, logits_ref):
    # Embedding LayerNorm (x stays resident in vregs/VMEM from here on).
    x = _layernorm(x_ref[...], emb_g_ref[...], emb_b_ref[...])       # (B*S, H)

    maskf = mask_ref[...]                                            # (B, S)
    bias = (1.0 - maskf) * (-1e9)                                    # additive mask

    # Encoder stack, unrolled (N_LAYERS = 3); per-layer weights selected by
    # static index into the stacked, VMEM-resident weight slabs.
    for l in range(N_LAYERS):
        # Fused QKV projection: one (H, 3H) matmul instead of three (H, H).
        qkv = _mm(x, wqkv_ref[l]) + bqkv_ref[l]                      # (B*S, 3H)

        # Attention: heads are contiguous along the hidden axis, so slice them
        # directly (no split_heads / transpose ops).
        ctx_rows = []
        for b in range(B):
            r0 = b * S
            bias_b = bias[b:b + 1, :]                                # (1, S)
            heads = []
            for h in range(N_HEADS):
                c0 = h * D_HEAD
                q = qkv[r0:r0 + S, c0:c0 + D_HEAD]                   # (S, dh)
                k = qkv[r0:r0 + S, H + c0:H + c0 + D_HEAD]           # (S, dh)
                v = qkv[r0:r0 + S, 2 * H + c0:2 * H + c0 + D_HEAD]   # (S, dh)

                s = jnp.dot(q, k.T, preferred_element_type=jnp.float32)
                s = s * ATTN_SCALE + bias_b                          # (S, S)
                s = s - jnp.max(s, axis=-1, keepdims=True)
                p = jnp.exp(s)                                       # f32 softmax
                p = p * pl.reciprocal(
                    jnp.sum(p, axis=-1, keepdims=True), approx=True)
                heads.append(jnp.dot(p, v, preferred_element_type=jnp.float32))
            ctx_rows.append(jnp.concatenate(heads, axis=-1))         # (S, H)
        ctx = jnp.concatenate(ctx_rows, axis=0)                      # (B*S, H)

        # Output projection + residual + LayerNorm (fused epilogue).
        attn = _mm(ctx, wo_ref[l]) + bo_ref[l]
        x = _layernorm(attn + x, ln1g_ref[l], ln1b_ref[l])

        # FFN + residual + LayerNorm (fused epilogue).
        h1 = _gelu(_mm(x, w1_ref[l]) + b1_ref[l])
        ff = _mm(h1, w2_ref[l]) + b2_ref[l]
        x = _layernorm(ff + x, ln2g_ref[l], ln2b_ref[l])

    # Masked mean pooling + classifier, fused (pooling done as (1,S)@(S,H)).
    clsw = clsw_ref[...]                                             # (H, C)
    clsb = clsb_ref[...]                                             # (1, C)
    rows = []
    for b in range(B):
        xb = x[b * S:(b + 1) * S, :]                                 # (S, H)
        mb = maskf[b:b + 1, :]                                       # (1, S)
        num = jnp.dot(mb, xb, preferred_element_type=jnp.float32)    # (1, H)
        den = jnp.maximum(jnp.sum(mb, keepdims=True), 1e-9)          # (1, 1)
        pooled = num * pl.reciprocal(den, approx=True)               # (1, H)
        # TODO(synk): nn.Dropout(p=0.5) is identity at inference.
        rows.append(jnp.dot(pooled, clsw,
                            preferred_element_type=jnp.float32) + clsb)
    logits_ref[...] = jnp.concatenate(rows, axis=0).astype(logits_ref.dtype)


def llm_fused(x_emb, maskf, p):
    args = (x_emb, maskf,
            p["emb_ln_g"], p["emb_ln_b"],
            p["wqkv"], p["bqkv"], p["wo"], p["bo"], p["ln1_g"], p["ln1_b"],
            p["w1"], p["b1"], p["w2"], p["b2"], p["ln2_g"], p["ln2_b"],
            p["cls_w"], p["cls_b"])
    vmem = lambda: pl.BlockSpec(memory_space=pltpu.MemorySpace.VMEM)
    return pl.pallas_call(
        _llm_kernel,
        out_shape=jax.ShapeDtypeStruct((B, N_CLASSES), jnp.float32),
        in_specs=[vmem() for _ in args],     # whole arrays resident in VMEM
        out_specs=vmem(),
    )(*args)


# ----------------------------------------------------------------------------
# Parameter initialization (deterministic, synthetic weights) + packing
# ----------------------------------------------------------------------------
def init_params(key):
    keys = iter(jax.random.split(key, 64))

    def dense_init(k, fi, fo):
        return (jax.random.normal(k, (fi, fo), jnp.float32) * 0.02,
                jnp.zeros((fo,), jnp.float32))

    params = {
        "word_emb": jax.random.normal(next(keys), (VOCAB, H), jnp.float32) * 0.02,
        "pos_emb": jax.random.normal(next(keys), (MAX_POS, H), jnp.float32) * 0.02,
        "type_emb": jax.random.normal(next(keys), (2, H), jnp.float32) * 0.02,
        "emb_ln_g": jnp.ones((H,), jnp.float32),
        "emb_ln_b": jnp.zeros((H,), jnp.float32),
        "layers": [],
    }
    for _ in range(N_LAYERS):
        wq, bq = dense_init(next(keys), H, H)
        wk, bk = dense_init(next(keys), H, H)
        wv, bv = dense_init(next(keys), H, H)
        wo, bo = dense_init(next(keys), H, H)
        w1, b1 = dense_init(next(keys), H, FFN)
        w2, b2 = dense_init(next(keys), FFN, H)
        params["layers"].append(dict(
            wq=wq, bq=bq, wk=wk, bk=bk, wv=wv, bv=bv, wo=wo, bo=bo,
            w1=w1, b1=b1, w2=w2, b2=b2,
            ln1_g=jnp.ones((H,), jnp.float32), ln1_b=jnp.zeros((H,), jnp.float32),
            ln2_g=jnp.ones((H,), jnp.float32), ln2_b=jnp.zeros((H,), jnp.float32)))
    cw, cb = dense_init(next(keys), H, N_CLASSES)
    params["cls_w"], params["cls_b"] = cw, cb
    return params


def pack_params(params):
    """Stack per-layer weights along a leading layer axis; fuse Q|K|V; cast
    matmul weights to bf16 (biases / LN params / classifier stay f32)."""
    L = params["layers"]
    stk = lambda name: jnp.stack([l[name] for l in L])
    return {
        "word_emb": params["word_emb"],
        "pos_emb": params["pos_emb"],
        "type_emb": params["type_emb"],
        "emb_ln_g": params["emb_ln_g"].reshape(1, H),
        "emb_ln_b": params["emb_ln_b"].reshape(1, H),
        "wqkv": jnp.stack([jnp.concatenate([l["wq"], l["wk"], l["wv"]], axis=1)
                           for l in L]).astype(jnp.bfloat16),           # (L,H,3H)
        "bqkv": jnp.stack([jnp.concatenate([l["bq"], l["bk"], l["bv"]])
                           for l in L]).reshape(N_LAYERS, 1, 3 * H),
        "wo": stk("wo").astype(jnp.bfloat16),                           # (L,H,H)
        "bo": stk("bo").reshape(N_LAYERS, 1, H),
        "ln1_g": stk("ln1_g").reshape(N_LAYERS, 1, H),
        "ln1_b": stk("ln1_b").reshape(N_LAYERS, 1, H),
        "w1": stk("w1").astype(jnp.bfloat16),                           # (L,H,FFN)
        "b1": stk("b1").reshape(N_LAYERS, 1, FFN),
        "w2": stk("w2").astype(jnp.bfloat16),                           # (L,FFN,H)
        "b2": stk("b2").reshape(N_LAYERS, 1, H),
        "ln2_g": stk("ln2_g").reshape(N_LAYERS, 1, H),
        "ln2_b": stk("ln2_b").reshape(N_LAYERS, 1, H),
        "cls_w": params["cls_w"],                                       # (H, C)
        "cls_b": params["cls_b"].reshape(1, N_CLASSES),
    }


# ----------------------------------------------------------------------------
# Forward pass: embedding gather in XLA glue, everything else in one kernel.
# ----------------------------------------------------------------------------
def llm_forward(packed, ids, mask):
    b, s = ids.shape
    # TODO(synk): embedding-table gather stays in XLA (data-dependent gather
    # has no cheap rectangular-BlockSpec equivalent at this tiny scale).
    we = jnp.take(packed["word_emb"], ids, axis=0)                   # (B, S, H)
    x = we + packed["pos_emb"][None, :s, :] + packed["type_emb"][0][None, None, :]
    x = x.reshape(b * s, H).astype(jnp.float32)
    maskf = mask.astype(jnp.float32)
    return llm_fused(x, maskf, packed)                               # (B, C)


# ----------------------------------------------------------------------------
# Main
# ----------------------------------------------------------------------------
if __name__ == "__main__":
    key = jax.random.PRNGKey(0)
    k_params, k_ids = jax.random.split(key)

    params = init_params(k_params)
    packed = pack_params(params)

    ids = jax.random.randint(k_ids, (B, S), 0, VOCAB, dtype=jnp.int32)
    mask = jnp.array([[1, 1, 1, 1, 1, 1, 1, 1],
                      [1, 1, 1, 1, 1, 0, 0, 0]], dtype=jnp.int32)

    logits = jax.jit(llm_forward)(packed, ids, mask)
    logits = jax.block_until_ready(logits)

    assert logits.shape == (B, N_CLASSES)
    assert bool(jnp.all(jnp.isfinite(logits)))
    print("KERNEL_OK")
</pallas_src>

<mosaic_0001>
module attributes {stable_mosaic.version = 11 : i64} {
  func.func @_llm_kernel(%arg0: memref<16x32xf32, #tpu.memory_space<vmem>>, %arg1: memref<2x8xf32, #tpu.memory_space<vmem>>, %arg2: memref<1x32xf32, #tpu.memory_space<vmem>>, %arg3: memref<1x32xf32, #tpu.memory_space<vmem>>, %arg4: memref<3x32x96xbf16, #tpu.memory_space<vmem>>, %arg5: memref<3x1x96xf32, #tpu.memory_space<vmem>>, %arg6: memref<3x32x32xbf16, #tpu.memory_space<vmem>>, %arg7: memref<3x1x32xf32, #tpu.memory_space<vmem>>, %arg8: memref<3x1x32xf32, #tpu.memory_space<vmem>>, %arg9: memref<3x1x32xf32, #tpu.memory_space<vmem>>, %arg10: memref<3x32x64xbf16, #tpu.memory_space<vmem>>, %arg11: memref<3x1x64xf32, #tpu.memory_space<vmem>>, %arg12: memref<3x64x32xbf16, #tpu.memory_space<vmem>>, %arg13: memref<3x1x32xf32, #tpu.memory_space<vmem>>, %arg14: memref<3x1x32xf32, #tpu.memory_space<vmem>>, %arg15: memref<3x1x32xf32, #tpu.memory_space<vmem>>, %arg16: memref<32x2xf32, #tpu.memory_space<vmem>>, %arg17: memref<1x2xf32, #tpu.memory_space<vmem>>, %arg18: memref<2x2xf32, #tpu.memory_space<vmem>>) attributes {dimension_semantics = [], scalar_prefetch = 0 : i64, scratch_operands = 0 : i64, tpu.core_type = #tpu.core_type<tc>} {
    %c0 = arith.constant 0 : index
    %c0_0 = arith.constant 0 : index
    %0 = vector.load %arg0[%c0, %c0_0] : memref<16x32xf32, #tpu.memory_space<vmem>>, vector<16x32xf32>
    %c0_1 = arith.constant 0 : index
    %c0_2 = arith.constant 0 : index
    %1 = vector.load %arg2[%c0_1, %c0_2] : memref<1x32xf32, #tpu.memory_space<vmem>>, vector<1x32xf32>
    %c0_3 = arith.constant 0 : index
    %c0_4 = arith.constant 0 : index
    %2 = vector.load %arg3[%c0_3, %c0_4] : memref<1x32xf32, #tpu.memory_space<vmem>>, vector<1x32xf32>
    %cst = arith.constant dense<0.000000e+00> : vector<16xf32>
    %3 = vector.multi_reduction <add>, %0, %cst [1] : vector<16x32xf32> to vector<16xf32>
    %4 = vector.shape_cast %3 : vector<16xf32> to vector<16x1xf32>
    %cst_5 = arith.constant 3.200000e+01 : f32
    %5 = vector.broadcast %cst_5 : f32 to vector<16x1xf32>
    %6 = arith.divf %4, %5 : vector<16x1xf32>
    %7 = vector.broadcast %6 : vector<16x1xf32> to vector<16x32xf32>
    %8 = arith.subf %0, %7 : vector<16x32xf32>
    %9 = arith.mulf %8, %8 : vector<16x32xf32>
    %cst_6 = arith.constant dense<0.000000e+00> : vector<16xf32>
    %10 = vector.multi_reduction <add>, %9, %cst_6 [1] : vector<16x32xf32> to vector<16xf32>
    %11 = vector.shape_cast %10 : vector<16xf32> to vector<16x1xf32>
    %cst_7 = arith.constant 3.200000e+01 : f32
    %12 = vector.broadcast %cst_7 : f32 to vector<16x1xf32>
    %13 = arith.divf %11, %12 : vector<16x1xf32>
    %14 = vector.broadcast %6 : vector<16x1xf32> to vector<16x32xf32>
    %15 = arith.subf %0, %14 : vector<16x32xf32>
    %cst_8 = arith.constant 9.99999996E-13 : f32
    %16 = vector.broadcast %cst_8 : f32 to vector<16x1xf32>
    %17 = arith.addf %13, %16 : vector<16x1xf32>
    %18 = math.rsqrt %17 : vector<16x1xf32>
    %19 = vector.broadcast %18 : vector<16x1xf32> to vector<16x32xf32>
    %20 = arith.mulf %15, %19 : vector<16x32xf32>
    %21 = vector.broadcast %1 : vector<1x32xf32> to vector<16x32xf32>
    %22 = arith.mulf %20, %21 : vector<16x32xf32>
    %23 = vector.broadcast %2 : vector<1x32xf32> to vector<16x32xf32>
    %24 = arith.addf %22, %23 : vector<16x32xf32>
    %c0_9 = arith.constant 0 : index
    %c0_10 = arith.constant 0 : index
    %25 = vector.load %arg1[%c0_9, %c0_10] : memref<2x8xf32, #tpu.memory_space<vmem>>, vector<2x8xf32>
    %cst_11 = arith.constant 1.000000e+00 : f32
    %26 = vector.broadcast %cst_11 : f32 to vector<2x8xf32>
    %27 = arith.subf %26, %25 : vector<2x8xf32>
    %cst_12 = arith.constant -1.000000e+09 : f32
    %28 = vector.broadcast %cst_12 : f32 to vector<2x8xf32>
    %29 = arith.mulf %27, %28 : vector<2x8xf32>
    %c0_13 = arith.constant 0 : index
    %c0_14 = arith.constant 0 : index
    %c0_15 = arith.constant 0 : index
    %30 = vector.load %arg4[%c0_13, %c0_14, %c0_15] : memref<3x32x96xbf16, #tpu.memory_space<vmem>>, vector<1x32x96xbf16>
    %31 = vector.shape_cast %30 : vector<1x32x96xbf16> to vector<32x96xbf16>
    %32 = arith.truncf %24 : vector<16x32xf32> to vector<16x32xbf16>
    %cst_16 = arith.constant dense<0.000000e+00> : vector<16x96xf32>
    %33 = tpu.matmul %32, %31, %cst_16 {dimension_numbers = #tpu.dot_dimension_numbers<[1], [0], [0], [1], [0, 0, 1, 1], [], []>} : vector<16x32xbf16>, vector<32x96xbf16>, vector<16x96xf32> -> vector<16x96xf32>
    %c0_17 = arith.constant 0 : index
    %c0_18 = arith.constant 0 : index
    %c0_19 = arith.constant 0 : index
    %34 = vector.load %arg5[%c0_17, %c0_18, %c0_19] : memref<3x1x96xf32, #tpu.memory_space<vmem>>, vector<1x1x96xf32>
    %35 = vector.shape_cast %34 : vector<1x1x96xf32> to vector<1x96xf32>
    %36 = vector.broadcast %35 : vector<1x96xf32> to vector<16x96xf32>
    %37 = arith.addf %33, %36 : vector<16x96xf32>
    %38 = vector.extract_strided_slice %29 {offsets = [0, 0], sizes = [1, 8], strides = [1, 1]} : vector<2x8xf32> to vector<1x8xf32>
    %39 = vector.extract_strided_slice %37 {offsets = [0, 0], sizes = [8, 8], strides = [1, 1]} : vector<16x96xf32> to vector<8x8xf32>
    %40 = vector.extract_strided_slice %37 {offsets = [0, 32], sizes = [8, 8], strides = [1, 1]} : vector<16x96xf32> to vector<8x8xf32>
    %41 = vector.extract_strided_slice %37 {offsets = [0, 64], sizes = [8, 8], strides = [1, 1]} : vector<16x96xf32> to vector<8x8xf32>
    %42 = tpu.transpose %40, [1, 0] : vector<8x8xf32> -> vector<8x8xf32>
    %cst_20 = arith.constant dense<0.000000e+00> : vector<8x8xf32>
    %43 = tpu.matmul %39, %42, %cst_20 {dimension_numbers = #tpu.dot_dimension_numbers<[1], [0], [0], [1], [0, 0, 1, 1], [], []>} : vector<8x8xf32>, vector<8x8xf32>, vector<8x8xf32> -> vector<8x8xf32>
    %cst_21 = arith.constant 0.353553385 : f32
    %44 = vector.broadcast %cst_21 : f32 to vector<8x8xf32>
    %45 = arith.mulf %43, %44 : vector<8x8xf32>
    %46 = vector.broadcast %38 : vector<1x8xf32> to vector<8x8xf32>
    %47 = arith.addf %45, %46 : vector<8x8xf32>
    %cst_22 = arith.constant dense<0xFF800000> : vector<8xf32>
    %48 = vector.multi_reduction <maximumf>, %47, %cst_22 [1] : vector<8x8xf32> to vector<8xf32>
    %49 = vector.shape_cast %48 : vector<8xf32> to vector<8x1xf32>
    %50 = vector.broadcast %49 : vector<8x1xf32> to vector<8x8xf32>
    %51 = arith.subf %47, %50 : vector<8x8xf32>
    %52 = math.exp %51 : vector<8x8xf32>
    %cst_23 = arith.constant dense<0.000000e+00> : vector<8xf32>
    %53 = vector.multi_reduction <add>, %52, %cst_23 [1] : vector<8x8xf32> to vector<8xf32>
    %54 = vector.shape_cast %53 : vector<8xf32> to vector<8x1xf32>
    %55 = tpu.reciprocal %54 {approx = true} : vector<8x1xf32> -> vector<8x1xf32>
    %56 = vector.broadcast %55 : vector<8x1xf32> to vector<8x8xf32>
    %57 = arith.mulf %52, %56 : vector<8x8xf32>
    %cst_24 = arith.constant dense<0.000000e+00> : vector<8x8xf32>
    %58 = tpu.matmul %57, %41, %cst_24 {dimension_numbers = #tpu.dot_dimension_numbers<[1], [0], [0], [1], [0, 0, 1, 1], [], []>} : vector<8x8xf32>, vector<8x8xf32>, vector<8x8xf32> -> vector<8x8xf32>
    %59 = vector.extract_strided_slice %37 {offsets = [0, 8], sizes = [8, 8], strides = [1, 1]} : vector<16x96xf32> to vector<8x8xf32>
    %60 = vector.extract_strided_slice %37 {offsets = [0, 40], sizes = [8, 8], strides = [1, 1]} : vector<16x96xf32> to vector<8x8xf32>
    %61 = vector.extract_strided_slice %37 {offsets = [0, 72], sizes = [8, 8], strides = [1, 1]} : vector<16x96xf32> to vector<8x8xf32>
    %62 = tpu.transpose %60, [1, 0] : vector<8x8xf32> -> vector<8x8xf32>
    %cst_25 = arith.constant dense<0.000000e+00> : vector<8x8xf32>
    %63 = tpu.matmul %59, %62, %cst_25 {dimension_numbers = #tpu.dot_dimension_numbers<[1], [0], [0], [1], [0, 0, 1, 1], [], []>} : vector<8x8xf32>, vector<8x8xf32>, vector<8x8xf32> -> vector<8x8xf32>
    %cst_26 = arith.constant 0.353553385 : f32
    %64 = vector.broadcast %cst_26 : f32 to vector<8x8xf32>
    %65 = arith.mulf %63, %64 : vector<8x8xf32>
    %66 = vector.broadcast %38 : vector<1x8xf32> to vector<8x8xf32>
    %67 = arith.addf %65, %66 : vector<8x8xf32>
    %cst_27 = arith.constant dense<0xFF800000> : vector<8xf32>
    %68 = vector.multi_reduction <maximumf>, %67, %cst_27 [1] : vector<8x8xf32> to vector<8xf32>
    %69 = vector.shape_cast %68 : vector<8xf32> to vector<8x1xf32>
    %70 = vector.broadcast %69 : vector<8x1xf32> to vector<8x8xf32>
    %71 = arith.subf %67, %70 : vector<8x8xf32>
    %72 = math.exp %71 : vector<8x8xf32>
    %cst_28 = arith.constant dense<0.000000e+00> : vector<8xf32>
    %73 = vector.multi_reduction <add>, %72, %cst_28 [1] : vector<8x8xf32> to vector<8xf32>
    %74 = vector.shape_cast %73 : vector<8xf32> to vector<8x1xf32>
    %75 = tpu.reciprocal %74 {approx = true} : vector<8x1xf32> -> vector<8x1xf32>
    %76 = vector.broadcast %75 : vector<8x1xf32> to vector<8x8xf32>
    %77 = arith.mulf %72, %76 : vector<8x8xf32>
    %cst_29 = arith.constant dense<0.000000e+00> : vector<8x8xf32>
    %78 = tpu.matmul %77, %61, %cst_29 {dimension_numbers = #tpu.dot_dimension_numbers<[1], [0], [0], [1], [0, 0, 1, 1], [], []>} : vector<8x8xf32>, vector<8x8xf32>, vector<8x8xf32> -> vector<8x8xf32>
    %79 = vector.extract_strided_slice %37 {offsets = [0, 16], sizes = [8, 8], strides = [1, 1]} : vector<16x96xf32> to vector<8x8xf32>
    %80 = vector.extract_strided_slice %37 {offsets = [0, 48], sizes = [8, 8], strides = [1, 1]} : vector<16x96xf32> to vector<8x8xf32>
    %81 = vector.extract_strided_slice %37 {offsets = [0, 80], sizes = [8, 8], strides = [1, 1]} : vector<16x96xf32> to vector<8x8xf32>
    %82 = tpu.transpose %80, [1, 0] : vector<8x8xf32> -> vector<8x8xf32>
    %cst_30 = arith.constant dense<0.000000e+00> : vector<8x8xf32>
    %83 = tpu.matmul %79, %82, %cst_30 {dimension_numbers = #tpu.dot_dimension_numbers<[1], [0], [0], [1], [0, 0, 1, 1], [], []>} : vector<8x8xf32>, vector<8x8xf32>, vector<8x8xf32> -> vector<8x8xf32>
    %cst_31 = arith.constant 0.353553385 : f32
    %84 = vector.broadcast %cst_31 : f32 to vector<8x8xf32>
    %85 = arith.mulf %83, %84 : vector<8x8xf32>
    %86 = vector.broadcast %38 : vector<1x8xf32> to vector<8x8xf32>
    %87 = arith.addf %85, %86 : vector<8x8xf32>
    %cst_32 = arith.constant dense<0xFF800000> : vector<8xf32>
    %88 = vector.multi_reduction <maximumf>, %87, %cst_32 [1] : vector<8x8xf32> to vector<8xf32>
    %89 = vector.shape_cast %88 : vector<8xf32> to vector<8x1xf32>
    %90 = vector.broadcast %89 : vector<8x1xf32> to vector<8x8xf32>
    %91 = arith.subf %87, %90 : vector<8x8xf32>
    %92 = math.exp %91 : vector<8x8xf32>
    %cst_33 = arith.constant dense<0.000000e+00> : vector<8xf32>
    %93 = vector.multi_reduction <add>, %92, %cst_33 [1] : vector<8x8xf32> to vector<8xf32>
    %94 = vector.shape_cast %93 : vector<8xf32> to vector<8x1xf32>
    %95 = tpu.reciprocal %94 {approx = true} : vector<8x1xf32> -> vector<8x1xf32>
    %96 = vector.broadcast %95 : vector<8x1xf32> to vector<8x8xf32>
    %97 = arith.mulf %92, %96 : vector<8x8xf32>
    %cst_34 = arith.constant dense<0.000000e+00> : vector<8x8xf32>
    %98 = tpu.matmul %97, %81, %cst_34 {dimension_numbers = #tpu.dot_dimension_numbers<[1], [0], [0], [1], [0, 0, 1, 1], [], []>} : vector<8x8xf32>, vector<8x8xf32>, vector<8x8xf32> -> vector<8x8xf32>
    %99 = vector.extract_strided_slice %37 {offsets = [0, 24], sizes = [8, 8], strides = [1, 1]} : vector<16x96xf32> to vector<8x8xf32>
    %100 = vector.extract_strided_slice %37 {offsets = [0, 56], sizes = [8, 8], strides = [1, 1]} : vector<16x96xf32> to vector<8x8xf32>
    %101 = vector.extract_strided_slice %37 {offsets = [0, 88], sizes = [8, 8], strides = [1, 1]} : vector<16x96xf32> to vector<8x8xf32>
    %102 = tpu.transpose %100, [1, 0] : vector<8x8xf32> -> vector<8x8xf32>
    %cst_35 = arith.constant dense<0.000000e+00> : vector<8x8xf32>
    %103 = tpu.matmul %99, %102, %cst_35 {dimension_numbers = #tpu.dot_dimension_numbers<[1], [0], [0], [1], [0, 0, 1, 1], [], []>} : vector<8x8xf32>, vector<8x8xf32>, vector<8x8xf32> -> vector<8x8xf32>
    %cst_36 = arith.constant 0.353553385 : f32
    %104 = vector.broadcast %cst_36 : f32 to vector<8x8xf32>
    %105 = arith.mulf %103, %104 : vector<8x8xf32>
    %106 = vector.broadcast %38 : vector<1x8xf32> to vector<8x8xf32>
    %107 = arith.addf %105, %106 : vector<8x8xf32>
    %cst_37 = arith.constant dense<0xFF800000> : vector<8xf32>
    %108 = vector.multi_reduction <maximumf>, %107, %cst_37 [1] : vector<8x8xf32> to vector<8xf32>
    %109 = vector.shape_cast %108 : vector<8xf32> to vector<8x1xf32>
    %110 = vector.broadcast %109 : vector<8x1xf32> to vector<8x8xf32>
    %111 = arith.subf %107, %110 : vector<8x8xf32>
    %112 = math.exp %111 : vector<8x8xf32>
    %cst_38 = arith.constant dense<0.000000e+00> : vector<8xf32>
    %113 = vector.multi_reduction <add>, %112, %cst_38 [1] : vector<8x8xf32> to vector<8xf32>
    %114 = vector.shape_cast %113 : vector<8xf32> to vector<8x1xf32>
    %115 = tpu.reciprocal %114 {approx = true} : vector<8x1xf32> -> vector<8x1xf32>
    %116 = vector.broadcast %115 : vector<8x1xf32> to vector<8x8xf32>
    %117 = arith.mulf %112, %116 : vector<8x8xf32>
    %cst_39 = arith.constant dense<0.000000e+00> : vector<8x8xf32>
    %118 = tpu.matmul %117, %101, %cst_39 {dimension_numbers = #tpu.dot_dimension_numbers<[1], [0], [0], [1], [0, 0, 1, 1], [], []>} : vector<8x8xf32>, vector<8x8xf32>, vector<8x8xf32> -> vector<8x8xf32>
    %119 = tpu.concatenate %58, %78, %98, %118 in 1 : vector<8x8xf32>, vector<8x8xf32>, vector<8x8xf32>, vector<8x8xf32> -> vector<8x32xf32>
    %120 = vector.extract_strided_slice %29 {offsets = [1, 0], sizes = [1, 8], strides = [1, 1]} : vector<2x8xf32> to vector<1x8xf32>
    %121 = vector.extract_strided_slice %37 {offsets = [8, 0], sizes = [8, 8], strides = [1, 1]} : vector<16x96xf32> to vector<8x8xf32>
    %122 = vector.extract_strided_slice %37 {offsets = [8, 32], sizes = [8, 8], strides = [1, 1]} : vector<16x96xf32> to vector<8x8xf32>
    %123 = vector.extract_strided_slice %37 {offsets = [8, 64], sizes = [8, 8], strides = [1, 1]} : vector<16x96xf32> to vector<8x8xf32>
    %124 = tpu.transpose %122, [1, 0] : vector<8x8xf32> -> vector<8x8xf32>
    %cst_40 = arith.constant dense<0.000000e+00> : vector<8x8xf32>
    %125 = tpu.matmul %121, %124, %cst_40 {dimension_numbers = #tpu.dot_dimension_numbers<[1], [0], [0], [1], [0, 0, 1, 1], [], []>} : vector<8x8xf32>, vector<8x8xf32>, vector<8x8xf32> -> vector<8x8xf32>
    %cst_41 = arith.constant 0.353553385 : f32
    %126 = vector.broadcast %cst_41 : f32 to vector<8x8xf32>
    %127 = arith.mulf %125, %126 : vector<8x8xf32>
    %128 = vector.broadcast %120 : vector<1x8xf32> to vector<8x8xf32>
    %129 = arith.addf %127, %128 : vector<8x8xf32>
    %cst_42 = arith.constant dense<0xFF800000> : vector<8xf32>
    %130 = vector.multi_reduction <maximumf>, %129, %cst_42 [1] : vector<8x8xf32> to vector<8xf32>
    %131 = vector.shape_cast %130 : vector<8xf32> to vector<8x1xf32>
    %132 = vector.broadcast %131 : vector<8x1xf32> to vector<8x8xf32>
    %133 = arith.subf %129, %132 : vector<8x8xf32>
    %134 = math.exp %133 : vector<8x8xf32>
    %cst_43 = arith.constant dense<0.000000e+00> : vector<8xf32>
    %135 = vector.multi_reduction <add>, %134, %cst_43 [1] : vector<8x8xf32> to vector<8xf32>
    %136 = vector.shape_cast %135 : vector<8xf32> to vector<8x1xf32>
    %137 = tpu.reciprocal %136 {approx = true} : vector<8x1xf32> -> vector<8x1xf32>
    %138 = vector.broadcast %137 : vector<8x1xf32> to vector<8x8xf32>
    %139 = arith.mulf %134, %138 : vector<8x8xf32>
    %cst_44 = arith.constant dense<0.000000e+00> : vector<8x8xf32>
    %140 = tpu.matmul %139, %123, %cst_44 {dimension_numbers = #tpu.dot_dimension_numbers<[1], [0], [0], [1], [0, 0, 1, 1], [], []>} : vector<8x8xf32>, vector<8x8xf32>, vector<8x8xf32> -> vector<8x8xf32>
    %141 = vector.extract_strided_slice %37 {offsets = [8, 8], sizes = [8, 8], strides = [1, 1]} : vector<16x96xf32> to vector<8x8xf32>
    %142 = vector.extract_strided_slice %37 {offsets = [8, 40], sizes = [8, 8], strides = [1, 1]} : vector<16x96xf32> to vector<8x8xf32>
    %143 = vector.extract_strided_slice %37 {offsets = [8, 72], sizes = [8, 8], strides = [1, 1]} : vector<16x96xf32> to vector<8x8xf32>
    %144 = tpu.transpose %142, [1, 0] : vector<8x8xf32> -> vector<8x8xf32>
    %cst_45 = arith.constant dense<0.000000e+00> : vector<8x8xf32>
    %145 = tpu.matmul %141, %144, %cst_45 {dimension_numbers = #tpu.dot_dimension_numbers<[1], [0], [0], [1], [0, 0, 1, 1], [], []>} : vector<8x8xf32>, vector<8x8xf32>, vector<8x8xf32> -> vector<8x8xf32>
    %cst_46 = arith.constant 0.353553385 : f32
    %146 = vector.broadcast %cst_46 : f32 to vector<8x8xf32>
    %147 = arith.mulf %145, %146 : vector<8x8xf32>
    %148 = vector.broadcast %120 : vector<1x8xf32> to vector<8x8xf32>
    %149 = arith.addf %147, %148 : vector<8x8xf32>
    %cst_47 = arith.constant dense<0xFF800000> : vector<8xf32>
    %150 = vector.multi_reduction <maximumf>, %149, %cst_47 [1] : vector<8x8xf32> to vector<8xf32>
    %151 = vector.shape_cast %150 : vector<8xf32> to vector<8x1xf32>
    %152 = vector.broadcast %151 : vector<8x1xf32> to vector<8x8xf32>
    %153 = arith.subf %149, %152 : vector<8x8xf32>
    %154 = math.exp %153 : vector<8x8xf32>
    %cst_48 = arith.constant dense<0.000000e+00> : vector<8xf32>
    %155 = vector.multi_reduction <add>, %154, %cst_48 [1] : vector<8x8xf32> to vector<8xf32>
    %156 = vector.shape_cast %155 : vector<8xf32> to vector<8x1xf32>
    %157 = tpu.reciprocal %156 {approx = true} : vector<8x1xf32> -> vector<8x1xf32>
    %158 = vector.broadcast %157 : vector<8x1xf32> to vector<8x8xf32>
    %159 = arith.mulf %154, %158 : vector<8x8xf32>
    %cst_49 = arith.constant dense<0.000000e+00> : vector<8x8xf32>
    %160 = tpu.matmul %159, %143, %cst_49 {dimension_numbers = #tpu.dot_dimension_numbers<[1], [0], [0], [1], [0, 0, 1, 1], [], []>} : vector<8x8xf32>, vector<8x8xf32>, vector<8x8xf32> -> vector<8x8xf32>
    %161 = vector.extract_strided_slice %37 {offsets = [8, 16], sizes = [8, 8], strides = [1, 1]} : vector<16x96xf32> to vector<8x8xf32>
    %162 = vector.extract_strided_slice %37 {offsets = [8, 48], sizes = [8, 8], strides = [1, 1]} : vector<16x96xf32> to vector<8x8xf32>
    %163 = vector.extract_strided_slice %37 {offsets = [8, 80], sizes = [8, 8], strides = [1, 1]} : vector<16x96xf32> to vector<8x8xf32>
    %164 = tpu.transpose %162, [1, 0] : vector<8x8xf32> -> vector<8x8xf32>
    %cst_50 = arith.constant dense<0.000000e+00> : vector<8x8xf32>
    %165 = tpu.matmul %161, %164, %cst_50 {dimension_numbers = #tpu.dot_dimension_numbers<[1], [0], [0], [1], [0, 0, 1, 1], [], []>} : vector<8x8xf32>, vector<8x8xf32>, vector<8x8xf32> -> vector<8x8xf32>
    %cst_51 = arith.constant 0.353553385 : f32
    %166 = vector.broadcast %cst_51 : f32 to vector<8x8xf32>
    %167 = arith.mulf %165, %166 : vector<8x8xf32>
    %168 = vector.broadcast %120 : vector<1x8xf32> to vector<8x8xf32>
    %169 = arith.addf %167, %168 : vector<8x8xf32>
    %cst_52 = arith.constant dense<0xFF800000> : vector<8xf32>
    %170 = vector.multi_reduction <maximumf>, %169, %cst_52 [1] : vector<8x8xf32> to vector<8xf32>
    %171 = vector.shape_cast %170 : vector<8xf32> to vector<8x1xf32>
    %172 = vector.broadcast %171 : vector<8x1xf32> to vector<8x8xf32>
    %173 = arith.subf %169, %172 : vector<8x8xf32>
    %174 = math.exp %173 : vector<8x8xf32>
    %cst_53 = arith.constant dense<0.000000e+00> : vector<8xf32>
    %175 = vector.multi_reduction <add>, %174, %cst_53 [1] : vector<8x8xf32> to vector<8xf32>
    %176 = vector.shape_cast %175 : vector<8xf32> to vector<8x1xf32>
    %177 = tpu.reciprocal %176 {approx = true} : vector<8x1xf32> -> vector<8x1xf32>
    %178 = vector.broadcast %177 : vector<8x1xf32> to vector<8x8xf32>
    %179 = arith.mulf %174, %178 : vector<8x8xf32>
    %cst_54 = arith.constant dense<0.000000e+00> : vector<8x8xf32>
    %180 = tpu.matmul %179, %163, %cst_54 {dimension_numbers = #tpu.dot_dimension_numbers<[1], [0], [0], [1], [0, 0, 1, 1], [], []>} : vector<8x8xf32>, vector<8x8xf32>, vector<8x8xf32> -> vector<8x8xf32>
    %181 = vector.extract_strided_slice %37 {offsets = [8, 24], sizes = [8, 8], strides = [1, 1]} : vector<16x96xf32> to vector<8x8xf32>
    %182 = vector.extract_strided_slice %37 {offsets = [8, 56], sizes = [8, 8], strides = [1, 1]} : vector<16x96xf32> to vector<8x8xf32>
    %183 = vector.extract_strided_slice %37 {offsets = [8, 88], sizes = [8, 8], strides = [1, 1]} : vector<16x96xf32> to vector<8x8xf32>
    %184 = tpu.transpose %182, [1, 0] : vector<8x8xf32> -> vector<8x8xf32>
    %cst_55 = arith.constant dense<0.000000e+00> : vector<8x8xf32>
    %185 = tpu.matmul %181, %184, %cst_55 {dimension_numbers = #tpu.dot_dimension_numbers<[1], [0], [0], [1], [0, 0, 1, 1], [], []>} : vector<8x8xf32>, vector<8x8xf32>, vector<8x8xf32> -> vector<8x8xf32>
    %cst_56 = arith.constant 0.353553385 : f32
    %186 = vector.broadcast %cst_56 : f32 to vector<8x8xf32>
    %187 = arith.mulf %185, %186 : vector<8x8xf32>
    %188 = vector.broadcast %120 : vector<1x8xf32> to vector<8x8xf32>
    %189 = arith.addf %187, %188 : vector<8x8xf32>
    %cst_57 = arith.constant dense<0xFF800000> : vector<8xf32>
    %190 = vector.multi_reduction <maximumf>, %189, %cst_57 [1] : vector<8x8xf32> to vector<8xf32>
    %191 = vector.shape_cast %190 : vector<8xf32> to vector<8x1xf32>
    %192 = vector.broadcast %191 : vector<8x1xf32> to vector<8x8xf32>
    %193 = arith.subf %189, %192 : vector<8x8xf32>
    %194 = math.exp %193 : vector<8x8xf32>
    %cst_58 = arith.constant dense<0.000000e+00> : vector<8xf32>
    %195 = vector.multi_reduction <add>, %194, %cst_58 [1] : vector<8x8xf32> to vector<8xf32>
    %196 = vector.shape_cast %195 : vector<8xf32> to vector<8x1xf32>
    %197 = tpu.reciprocal %196 {approx = true} : vector<8x1xf32> -> vector<8x1xf32>
    %198 = vector.broadcast %197 : vector<8x1xf32> to vector<8x8xf32>
    %199 = arith.mulf %194, %198 : vector<8x8xf32>
    %cst_59 = arith.constant dense<0.000000e+00> : vector<8x8xf32>
    %200 = tpu.matmul %199, %183, %cst_59 {dimension_numbers = #tpu.dot_dimension_numbers<[1], [0], [0], [1], [0, 0, 1, 1], [], []>} : vector<8x8xf32>, vector<8x8xf32>, vector<8x8xf32> -> vector<8x8xf32>
    %201 = tpu.concatenate %140, %160, %180, %200 in 1 : vector<8x8xf32>, vector<8x8xf32>, vector<8x8xf32>, vector<8x8xf32> -> vector<8x32xf32>
    %202 = tpu.concatenate %119, %201 in 0 : vector<8x32xf32>, vector<8x32xf32> -> vector<16x32xf32>
    %c0_60 = arith.constant 0 : index
    %c0_61 = arith.constant 0 : index
    %c0_62 = arith.constant 0 : index
    %203 = vector.load %arg6[%c0_60, %c0_61, %c0_62] : memref<3x32x32xbf16, #tpu.memory_space<vmem>>, vector<1x32x32xbf16>
    %204 = vector.shape_cast %203 : vector<1x32x32xbf16> to vector<32x32xbf16>
    %205 = arith.truncf %202 : vector<16x32xf32> to vector<16x32xbf16>
    %cst_63 = arith.constant dense<0.000000e+00> : vector<16x32xf32>
    %206 = tpu.matmul %205, %204, %cst_63 {dimension_numbers = #tpu.dot_dimension_numbers<[1], [0], [0], [1], [0, 0, 1, 1], [], []>} : vector<16x32xbf16>, vector<32x32xbf16>, vector<16x32xf32> -> vector<16x32xf32>
    %c0_64 = arith.constant 0 : index
    %c0_65 = arith.constant 0 : index
    %c0_66 = arith.constant 0 : index
    %207 = vector.load %arg7[%c0_64, %c0_65, %c0_66] : memref<3x1x32xf32, #tpu.memory_space<vmem>>, vector<1x1x32xf32>
    %208 = vector.shape_cast %207 : vector<1x1x32xf32> to vector<1x32xf32>
    %209 = vector.broadcast %208 : vector<1x32xf32> to vector<16x32xf32>
    %210 = arith.addf %206, %209 : vector<16x32xf32>
    %211 = arith.addf %210, %24 : vector<16x32xf32>
    %c0_67 = arith.constant 0 : index
    %c0_68 = arith.constant 0 : index
    %c0_69 = arith.constant 0 : index
    %212 = vector.load %arg8[%c0_67, %c0_68, %c0_69] : memref<3x1x32xf32, #tpu.memory_space<vmem>>, vector<1x1x32xf32>
    %213 = vector.shape_cast %212 : vector<1x1x32xf32> to vector<1x32xf32>
    %c0_70 = arith.constant 0 : index
    %c0_71 = arith.constant 0 : index
    %c0_72 = arith.constant 0 : index
    %214 = vector.load %arg9[%c0_70, %c0_71, %c0_72] : memref<3x1x32xf32, #tpu.memory_space<vmem>>, vector<1x1x32xf32>
    %215 = vector.shape_cast %214 : vector<1x1x32xf32> to vector<1x32xf32>
    %cst_73 = arith.constant dense<0.000000e+00> : vector<16xf32>
    %216 = vector.multi_reduction <add>, %211, %cst_73 [1] : vector<16x32xf32> to vector<16xf32>
    %217 = vector.shape_cast %216 : vector<16xf32> to vector<16x1xf32>
    %cst_74 = arith.constant 3.200000e+01 : f32
    %218 = vector.broadcast %cst_74 : f32 to vector<16x1xf32>
    %219 = arith.divf %217, %218 : vector<16x1xf32>
    %220 = vector.broadcast %219 : vector<16x1xf32> to vector<16x32xf32>
    %221 = arith.subf %211, %220 : vector<16x32xf32>
    %222 = arith.mulf %221, %221 : vector<16x32xf32>
    %cst_75 = arith.constant dense<0.000000e+00> : vector<16xf32>
    %223 = vector.multi_reduction <add>, %222, %cst_75 [1] : vector<16x32xf32> to vector<16xf32>
    %224 = vector.shape_cast %223 : vector<16xf32> to vector<16x1xf32>
    %cst_76 = arith.constant 3.200000e+01 : f32
    %225 = vector.broadcast %cst_76 : f32 to vector<16x1xf32>
    %226 = arith.divf %224, %225 : vector<16x1xf32>
    %227 = vector.broadcast %219 : vector<16x1xf32> to vector<16x32xf32>
    %228 = arith.subf %211, %227 : vector<16x32xf32>
    %cst_77 = arith.constant 9.99999996E-13 : f32
    %229 = vector.broadcast %cst_77 : f32 to vector<16x1xf32>
    %230 = arith.addf %226, %229 : vector<16x1xf32>
    %231 = math.rsqrt %230 : vector<16x1xf32>
    %232 = vector.broadcast %231 : vector<16x1xf32> to vector<16x32xf32>
    %233 = arith.mulf %228, %232 : vector<16x32xf32>
    %234 = vector.broadcast %213 : vector<1x32xf32> to vector<16x32xf32>
    %235 = arith.mulf %233, %234 : vector<16x32xf32>
    %236 = vector.broadcast %215 : vector<1x32xf32> to vector<16x32xf32>
    %237 = arith.addf %235, %236 : vector<16x32xf32>
    %c0_78 = arith.constant 0 : index
    %c0_79 = arith.constant 0 : index
    %c0_80 = arith.constant 0 : index
    %238 = vector.load %arg10[%c0_78, %c0_79, %c0_80] : memref<3x32x64xbf16, #tpu.memory_space<vmem>>, vector<1x32x64xbf16>
    %239 = vector.shape_cast %238 : vector<1x32x64xbf16> to vector<32x64xbf16>
    %240 = arith.truncf %237 : vector<16x32xf32> to vector<16x32xbf16>
    %cst_81 = arith.constant dense<0.000000e+00> : vector<16x64xf32>
    %241 = tpu.matmul %240, %239, %cst_81 {dimension_numbers = #tpu.dot_dimension_numbers<[1], [0], [0], [1], [0, 0, 1, 1], [], []>} : vector<16x32xbf16>, vector<32x64xbf16>, vector<16x64xf32> -> vector<16x64xf32>
    %c0_82 = arith.constant 0 : index
    %c0_83 = arith.constant 0 : index
    %c0_84 = arith.constant 0 : index
    %242 = vector.load %arg11[%c0_82, %c0_83, %c0_84] : memref<3x1x64xf32, #tpu.memory_space<vmem>>, vector<1x1x64xf32>
    %243 = vector.shape_cast %242 : vector<1x1x64xf32> to vector<1x64xf32>
    %244 = vector.broadcast %243 : vector<1x64xf32> to vector<16x64xf32>
    %245 = arith.addf %241, %244 : vector<16x64xf32>
    %cst_85 = arith.constant 5.000000e-01 : f32
    %246 = vector.broadcast %cst_85 : f32 to vector<16x64xf32>
    %247 = arith.mulf %246, %245 : vector<16x64xf32>
    %cst_86 = arith.constant 4.471500e-02 : f32
    %248 = vector.broadcast %cst_86 : f32 to vector<16x64xf32>
    %249 = arith.mulf %248, %245 : vector<16x64xf32>
    %250 = arith.mulf %249, %245 : vector<16x64xf32>
    %251 = arith.mulf %250, %245 : vector<16x64xf32>
    %252 = arith.addf %245, %251 : vector<16x64xf32>
    %cst_87 = arith.constant 0.797884583 : f32
    %253 = vector.broadcast %cst_87 : f32 to vector<16x64xf32>
    %254 = arith.mulf %253, %252 : vector<16x64xf32>
    %255 = math.tanh %254 : vector<16x64xf32>
    %cst_88 = arith.constant 1.000000e+00 : f32
    %256 = vector.broadcast %cst_88 : f32 to vector<16x64xf32>
    %257 = arith.addf %256, %255 : vector<16x64xf32>
    %258 = arith.mulf %247, %257 : vector<16x64xf32>
    %c0_89 = arith.constant 0 : index
    %c0_90 = arith.constant 0 : index
    %c0_91 = arith.constant 0 : index
    %259 = vector.load %arg12[%c0_89, %c0_90, %c0_91] : memref<3x64x32xbf16, #tpu.memory_space<vmem>>, vector<1x64x32xbf16>
    %260 = vector.shape_cast %259 : vector<1x64x32xbf16> to vector<64x32xbf16>
    %261 = arith.truncf %258 : vector<16x64xf32> to vector<16x64xbf16>
    %cst_92 = arith.constant dense<0.000000e+00> : vector<16x32xf32>
    %262 = tpu.matmul %261, %260, %cst_92 {dimension_numbers = #tpu.dot_dimension_numbers<[1], [0], [0], [1], [0, 0, 1, 1], [], []>} : vector<16x64xbf16>, vector<64x32xbf16>, vector<16x32xf32> -> vector<16x32xf32>
    %c0_93 = arith.constant 0 : index
    %c0_94 = arith.constant 0 : index
    %c0_95 = arith.constant 0 : index
    %263 = vector.load %arg13[%c0_93, %c0_94, %c0_95] : memref<3x1x32xf32, #tpu.memory_space<vmem>>, vector<1x1x32xf32>
    %264 = vector.shape_cast %263 : vector<1x1x32xf32> to vector<1x32xf32>
    %265 = vector.broadcast %264 : vector<1x32xf32> to vector<16x32xf32>
    %266 = arith.addf %262, %265 : vector<16x32xf32>
    %267 = arith.addf %266, %237 : vector<16x32xf32>
    %c0_96 = arith.constant 0 : index
    %c0_97 = arith.constant 0 : index
    %c0_98 = arith.constant 0 : index
    %268 = vector.load %arg14[%c0_96, %c0_97, %c0_98] : memref<3x1x32xf32, #tpu.memory_space<vmem>>, vector<1x1x32xf32>
    %269 = vector.shape_cast %268 : vector<1x1x32xf32> to vector<1x32xf32>
    %c0_99 = arith.constant 0 : index
    %c0_100 = arith.constant 0 : index
    %c0_101 = arith.constant 0 : index
    %270 = vector.load %arg15[%c0_99, %c0_100, %c0_101] : memref<3x1x32xf32, #tpu.memory_space<vmem>>, vector<1x1x32xf32>
    %271 = vector.shape_cast %270 : vector<1x1x32xf32> to vector<1x32xf32>
    %cst_102 = arith.constant dense<0.000000e+00> : vector<16xf32>
    %272 = vector.multi_reduction <add>, %267, %cst_102 [1] : vector<16x32xf32> to vector<16xf32>
    %273 = vector.shape_cast %272 : vector<16xf32> to vector<16x1xf32>
    %cst_103 = arith.constant 3.200000e+01 : f32
    %274 = vector.broadcast %cst_103 : f32 to vector<16x1xf32>
    %275 = arith.divf %273, %274 : vector<16x1xf32>
    %276 = vector.broadcast %275 : vector<16x1xf32> to vector<16x32xf32>
    %277 = arith.subf %267, %276 : vector<16x32xf32>
    %278 = arith.mulf %277, %277 : vector<16x32xf32>
    %cst_104 = arith.constant dense<0.000000e+00> : vector<16xf32>
    %279 = vector.multi_reduction <add>, %278, %cst_104 [1] : vector<16x32xf32> to vector<16xf32>
    %280 = vector.shape_cast %279 : vector<16xf32> to vector<16x1xf32>
    %cst_105 = arith.constant 3.200000e+01 : f32
    %281 = vector.broadcast %cst_105 : f32 to vector<16x1xf32>
    %282 = arith.divf %280, %281 : vector<16x1xf32>
    %283 = vector.broadcast %275 : vector<16x1xf32> to vector<16x32xf32>
    %284 = arith.subf %267, %283 : vector<16x32xf32>
    %cst_106 = arith.constant 9.99999996E-13 : f32
    %285 = vector.broadcast %cst_106 : f32 to vector<16x1xf32>
    %286 = arith.addf %282, %285 : vector<16x1xf32>
    %287 = math.rsqrt %286 : vector<16x1xf32>
    %288 = vector.broadcast %287 : vector<16x1xf32> to vector<16x32xf32>
    %289 = arith.mulf %284, %288 : vector<16x32xf32>
    %290 = vector.broadcast %269 : vector<1x32xf32> to vector<16x32xf32>
    %291 = arith.mulf %289, %290 : vector<16x32xf32>
    %292 = vector.broadcast %271 : vector<1x32xf32> to vector<16x32xf32>
    %293 = arith.addf %291, %292 : vector<16x32xf32>
    %c1 = arith.constant 1 : index
    %c0_107 = arith.constant 0 : index
    %c0_108 = arith.constant 0 : index
    %294 = vector.load %arg4[%c1, %c0_107, %c0_108] : memref<3x32x96xbf16, #tpu.memory_space<vmem>>, vector<1x32x96xbf16>
    %295 = vector.shape_cast %294 : vector<1x32x96xbf16> to vector<32x96xbf16>
    %296 = arith.truncf %293 : vector<16x32xf32> to vector<16x32xbf16>
    %cst_109 = arith.constant dense<0.000000e+00> : vector<16x96xf32>
    %297 = tpu.matmul %296, %295, %cst_109 {dimension_numbers = #tpu.dot_dimension_numbers<[1], [0], [0], [1], [0, 0, 1, 1], [], []>} : vector<16x32xbf16>, vector<32x96xbf16>, vector<16x96xf32> -> vector<16x96xf32>
    %c1_110 = arith.constant 1 : index
    %c0_111 = arith.constant 0 : index
    %c0_112 = arith.constant 0 : index
    %298 = vector.load %arg5[%c1_110, %c0_111, %c0_112] : memref<3x1x96xf32, #tpu.memory_space<vmem>>, vector<1x1x96xf32>
    %299 = vector.shape_cast %298 : vector<1x1x96xf32> to vector<1x96xf32>
    %300 = vector.broadcast %299 : vector<1x96xf32> to vector<16x96xf32>
    %301 = arith.addf %297, %300 : vector<16x96xf32>
    %302 = vector.extract_strided_slice %29 {offsets = [0, 0], sizes = [1, 8], strides = [1, 1]} : vector<2x8xf32> to vector<1x8xf32>
    %303 = vector.extract_strided_slice %301 {offsets = [0, 0], sizes = [8, 8], strides = [1, 1]} : vector<16x96xf32> to vector<8x8xf32>
    %304 = vector.extract_strided_slice %301 {offsets = [0, 32], sizes = [8, 8], strides = [1, 1]} : vector<16x96xf32> to vector<8x8xf32>
    %305 = vector.extract_strided_slice %301 {offsets = [0, 64], sizes = [8, 8], strides = [1, 1]} : vector<16x96xf32> to vector<8x8xf32>
    %306 = tpu.transpose %304, [1, 0] : vector<8x8xf32> -> vector<8x8xf32>
    %cst_113 = arith.constant dense<0.000000e+00> : vector<8x8xf32>
    %307 = tpu.matmul %303, %306, %cst_113 {dimension_numbers = #tpu.dot_dimension_numbers<[1], [0], [0], [1], [0, 0, 1, 1], [], []>} : vector<8x8xf32>, vector<8x8xf32>, vector<8x8xf32> -> vector<8x8xf32>
    %cst_114 = arith.constant 0.353553385 : f32
    %308 = vector.broadcast %cst_114 : f32 to vector<8x8xf32>
    %309 = arith.mulf %307, %308 : vector<8x8xf32>
    %310 = vector.broadcast %302 : vector<1x8xf32> to vector<8x8xf32>
    %311 = arith.addf %309, %310 : vector<8x8xf32>
    %cst_115 = arith.constant dense<0xFF800000> : vector<8xf32>
    %312 = vector.multi_reduction <maximumf>, %311, %cst_115 [1] : vector<8x8xf32> to vector<8xf32>
    %313 = vector.shape_cast %312 : vector<8xf32> to vector<8x1xf32>
    %314 = vector.broadcast %313 : vector<8x1xf32> to vector<8x8xf32>
    %315 = arith.subf %311, %314 : vector<8x8xf32>
    %316 = math.exp %315 : vector<8x8xf32>
    %cst_116 = arith.constant dense<0.000000e+00> : vector<8xf32>
    %317 = vector.multi_reduction <add>, %316, %cst_116 [1] : vector<8x8xf32> to vector<8xf32>
    %318 = vector.shape_cast %317 : vector<8xf32> to vector<8x1xf32>
    %319 = tpu.reciprocal %318 {approx = true} : vector<8x1xf32> -> vector<8x1xf32>
    %320 = vector.broadcast %319 : vector<8x1xf32> to vector<8x8xf32>
    %321 = arith.mulf %316, %320 : vector<8x8xf32>
    %cst_117 = arith.constant dense<0.000000e+00> : vector<8x8xf32>
    %322 = tpu.matmul %321, %305, %cst_117 {dimension_numbers = #tpu.dot_dimension_numbers<[1], [0], [0], [1], [0, 0, 1, 1], [], []>} : vector<8x8xf32>, vector<8x8xf32>, vector<8x8xf32> -> vector<8x8xf32>
    %323 = vector.extract_strided_slice %301 {offsets = [0, 8], sizes = [8, 8], strides = [1, 1]} : vector<16x96xf32> to vector<8x8xf32>
    %324 = vector.extract_strided_slice %301 {offsets = [0, 40], sizes = [8, 8], strides = [1, 1]} : vector<16x96xf32> to vector<8x8xf32>
    %325 = vector.extract_strided_slice %301 {offsets = [0, 72], sizes = [8, 8], strides = [1, 1]} : vector<16x96xf32> to vector<8x8xf32>
    %326 = tpu.transpose %324, [1, 0] : vector<8x8xf32> -> vector<8x8xf32>
    %cst_118 = arith.constant dense<0.000000e+00> : vector<8x8xf32>
    %327 = tpu.matmul %323, %326, %cst_118 {dimension_numbers = #tpu.dot_dimension_numbers<[1], [0], [0], [1], [0, 0, 1, 1], [], []>} : vector<8x8xf32>, vector<8x8xf32>, vector<8x8xf32> -> vector<8x8xf32>
    %cst_119 = arith.constant 0.353553385 : f32
    %328 = vector.broadcast %cst_119 : f32 to vector<8x8xf32>
    %329 = arith.mulf %327, %328 : vector<8x8xf32>
    %330 = vector.broadcast %302 : vector<1x8xf32> to vector<8x8xf32>
    %331 = arith.addf %329, %330 : vector<8x8xf32>
    %cst_120 = arith.constant dense<0xFF800000> : vector<8xf32>
    %332 = vector.multi_reduction <maximumf>, %331, %cst_120 [1] : vector<8x8xf32> to vector<8xf32>
    %333 = vector.shape_cast %332 : vector<8xf32> to vector<8x1xf32>
    %334 = vector.broadcast %333 : vector<8x1xf32> to vector<8x8xf32>
    %335 = arith.subf %331, %334 : vector<8x8xf32>
    %336 = math.exp %335 : vector<8x8xf32>
    %cst_121 = arith.constant dense<0.000000e+00> : vector<8xf32>
    %337 = vector.multi_reduction <add>, %336, %cst_121 [1] : vector<8x8xf32> to vector<8xf32>
    %338 = vector.shape_cast %337 : vector<8xf32> to vector<8x1xf32>
    %339 = tpu.reciprocal %338 {approx = true} : vector<8x1xf32> -> vector<8x1xf32>
    %340 = vector.broadcast %339 : vector<8x1xf32> to vector<8x8xf32>
    %341 = arith.mulf %336, %340 : vector<8x8xf32>
    %cst_122 = arith.constant dense<0.000000e+00> : vector<8x8xf32>
    %342 = tpu.matmul %341, %325, %cst_122 {dimension_numbers = #tpu.dot_dimension_numbers<[1], [0], [0], [1], [0, 0, 1, 1], [], []>} : vector<8x8xf32>, vector<8x8xf32>, vector<8x8xf32> -> vector<8x8xf32>
    %343 = vector.extract_strided_slice %301 {offsets = [0, 16], sizes = [8, 8], strides = [1, 1]} : vector<16x96xf32> to vector<8x8xf32>
    %344 = vector.extract_strided_slice %301 {offsets = [0, 48], sizes = [8, 8], strides = [1, 1]} : vector<16x96xf32> to vector<8x8xf32>
    %345 = vector.extract_strided_slice %301 {offsets = [0, 80], sizes = [8, 8], strides = [1, 1]} : vector<16x96xf32> to vector<8x8xf32>
    %346 = tpu.transpose %344, [1, 0] : vector<8x8xf32> -> vector<8x8xf32>
    %cst_123 = arith.constant dense<0.000000e+00> : vector<8x8xf32>
    %347 = tpu.matmul %343, %346, %cst_123 {dimension_numbers = #tpu.dot_dimension_numbers<[1], [0], [0], [1], [0, 0, 1, 1], [], []>} : vector<8x8xf32>, vector<8x8xf32>, vector<8x8xf32> -> vector<8x8xf32>
    %cst_124 = arith.constant 0.353553385 : f32
    %348 = vector.broadcast %cst_124 : f32 to vector<8x8xf32>
    %349 = arith.mulf %347, %348 : vector<8x8xf32>
    %350 = vector.broadcast %302 : vector<1x8xf32> to vector<8x8xf32>
    %351 = arith.addf %349, %350 : vector<8x8xf32>
    %cst_125 = arith.constant dense<0xFF800000> : vector<8xf32>
    %352 = vector.multi_reduction <maximumf>, %351, %cst_125 [1] : vector<8x8xf32> to vector<8xf32>
    %353 = vector.shape_cast %352 : vector<8xf32> to vector<8x1xf32>
    %354 = vector.broadcast %353 : vector<8x1xf32> to vector<8x8xf32>
    %355 = arith.subf %351, %354 : vector<8x8xf32>
    %356 = math.exp %355 : vector<8x8xf32>
    %cst_126 = arith.constant dense<0.000000e+00> : vector<8xf32>
    %357 = vector.multi_reduction <add>, %356, %cst_126 [1] : vector<8x8xf32> to vector<8xf32>
    %358 = vector.shape_cast %357 : vector<8xf32> to vector<8x1xf32>
    %359 = tpu.reciprocal %358 {approx = true} : vector<8x1xf32> -> vector<8x1xf32>
    %360 = vector.broadcast %359 : vector<8x1xf32> to vector<8x8xf32>
    %361 = arith.mulf %356, %360 : vector<8x8xf32>
    %cst_127 = arith.constant dense<0.000000e+00> : vector<8x8xf32>
    %362 = tpu.matmul %361, %345, %cst_127 {dimension_numbers = #tpu.dot_dimension_numbers<[1], [0], [0], [1], [0, 0, 1, 1], [], []>} : vector<8x8xf32>, vector<8x8xf32>, vector<8x8xf32> -> vector<8x8xf32>
    %363 = vector.extract_strided_slice %301 {offsets = [0, 24], sizes = [8, 8], strides = [1, 1]} : vector<16x96xf32> to vector<8x8xf32>
    %364 = vector.extract_strided_slice %301 {offsets = [0, 56], sizes = [8, 8], strides = [1, 1]} : vector<16x96xf32> to vector<8x8xf32>
    %365 = vector.extract_strided_slice %301 {offsets = [0, 88], sizes = [8, 8], strides = [1, 1]} : vector<16x96xf32> to vector<8x8xf32>
    %366 = tpu.transpose %364, [1, 0] : vector<8x8xf32> -> vector<8x8xf32>
    %cst_128 = arith.constant dense<0.000000e+00> : vector<8x8xf32>
    %367 = tpu.matmul %363, %366, %cst_128 {dimension_numbers = #tpu.dot_dimension_numbers<[1], [0], [0], [1], [0, 0, 1, 1], [], []>} : vector<8x8xf32>, vector<8x8xf32>, vector<8x8xf32> -> vector<8x8xf32>
    %cst_129 = arith.constant 0.353553385 : f32
    %368 = vector.broadcast %cst_129 : f32 to vector<8x8xf32>
    %369 = arith.mulf %367, %368 : vector<8x8xf32>
    %370 = vector.broadcast %302 : vector<1x8xf32> to vector<8x8xf32>
    %371 = arith.addf %369, %370 : vector<8x8xf32>
    %cst_130 = arith.constant dense<0xFF800000> : vector<8xf32>
    %372 = vector.multi_reduction <maximumf>, %371, %cst_130 [1] : vector<8x8xf32> to vector<8xf32>
    %373 = vector.shape_cast %372 : vector<8xf32> to vector<8x1xf32>
    %374 = vector.broadcast %373 : vector<8x1xf32> to vector<8x8xf32>
    %375 = arith.subf %371, %374 : vector<8x8xf32>
    %376 = math.exp %375 : vector<8x8xf32>
    %cst_131 = arith.constant dense<0.000000e+00> : vector<8xf32>
    %377 = vector.multi_reduction <add>, %376, %cst_131 [1] : vector<8x8xf32> to vector<8xf32>
    %378 = vector.shape_cast %377 : vector<8xf32> to vector<8x1xf32>
    %379 = tpu.reciprocal %378 {approx = true} : vector<8x1xf32> -> vector<8x1xf32>
    %380 = vector.broadcast %379 : vector<8x1xf32> to vector<8x8xf32>
    %381 = arith.mulf %376, %380 : vector<8x8xf32>
    %cst_132 = arith.constant dense<0.000000e+00> : vector<8x8xf32>
    %382 = tpu.matmul %381, %365, %cst_132 {dimension_numbers = #tpu.dot_dimension_numbers<[1], [0], [0], [1], [0, 0, 1, 1], [], []>} : vector<8x8xf32>, vector<8x8xf32>, vector<8x8xf32> -> vector<8x8xf32>
    %383 = tpu.concatenate %322, %342, %362, %382 in 1 : vector<8x8xf32>, vector<8x8xf32>, vector<8x8xf32>, vector<8x8xf32> -> vector<8x32xf32>
    %384 = vector.extract_strided_slice %29 {offsets = [1, 0], sizes = [1, 8], strides = [1, 1]} : vector<2x8xf32> to vector<1x8xf32>
    %385 = vector.extract_strided_slice %301 {offsets = [8, 0], sizes = [8, 8], strides = [1, 1]} : vector<16x96xf32> to vector<8x8xf32>
    %386 = vector.extract_strided_slice %301 {offsets = [8, 32], sizes = [8, 8], strides = [1, 1]} : vector<16x96xf32> to vector<8x8xf32>
    %387 = vector.extract_strided_slice %301 {offsets = [8, 64], sizes = [8, 8], strides = [1, 1]} : vector<16x96xf32> to vector<8x8xf32>
    %388 = tpu.transpose %386, [1, 0] : vector<8x8xf32> -> vector<8x8xf32>
    %cst_133 = arith.constant dense<0.000000e+00> : vector<8x8xf32>
    %389 = tpu.matmul %385, %388, %cst_133 {dimension_numbers = #tpu.dot_dimension_numbers<[1], [0], [0], [1], [0, 0, 1, 1], [], []>} : vector<8x8xf32>, vector<8x8xf32>, vector<8x8xf32> -> vector<8x8xf32>
    %cst_134 = arith.constant 0.353553385 : f32
    %390 = vector.broadcast %cst_134 : f32 to vector<8x8xf32>
    %391 = arith.mulf %389, %390 : vector<8x8xf32>
    %392 = vector.broadcast %384 : vector<1x8xf32> to vector<8x8xf32>
    %393 = arith.addf %391, %392 : vector<8x8xf32>
    %cst_135 = arith.constant dense<0xFF800000> : vector<8xf32>
    %394 = vector.multi_reduction <maximumf>, %393, %cst_135 [1] : vector<8x8xf32> to vector<8xf32>
    %395 = vector.shape_cast %394 : vector<8xf32> to vector<8x1xf32>
    %396 = vector.broadcast %395 : vector<8x1xf32> to vector<8x8xf32>
    %397 = arith.subf %393, %396 : vector<8x8xf32>
    %398 = math.exp %397 : vector<8x8xf32>
    %cst_136 = arith.constant dense<0.000000e+00> : vector<8xf32>
    %399 = vector.multi_reduction <add>, %398, %cst_136 [1] : vector<8x8xf32> to vector<8xf32>
    %400 = vector.shape_cast %399 : vector<8xf32> to vector<8x1xf32>
    %401 = tpu.reciprocal %400 {approx = true} : vector<8x1xf32> -> vector<8x1xf32>
    %402 = vector.broadcast %401 : vector<8x1xf32> to vector<8x8xf32>
    %403 = arith.mulf %398, %402 : vector<8x8xf32>
    %cst_137 = arith.constant dense<0.000000e+00> : vector<8x8xf32>
    %404 = tpu.matmul %403, %387, %cst_137 {dimension_numbers = #tpu.dot_dimension_numbers<[1], [0], [0], [1], [0, 0, 1, 1], [], []>} : vector<8x8xf32>, vector<8x8xf32>, vector<8x8xf32> -> vector<8x8xf32>
    %405 = vector.extract_strided_slice %301 {offsets = [8, 8], sizes = [8, 8], strides = [1, 1]} : vector<16x96xf32> to vector<8x8xf32>
    %406 = vector.extract_strided_slice %301 {offsets = [8, 40], sizes = [8, 8], strides = [1, 1]} : vector<16x96xf32> to vector<8x8xf32>
    %407 = vector.extract_strided_slice %301 {offsets = [8, 72], sizes = [8, 8], strides = [1, 1]} : vector<16x96xf32> to vector<8x8xf32>
    %408 = tpu.transpose %406, [1, 0] : vector<8x8xf32> -> vector<8x8xf32>
    %cst_138 = arith.constant dense<0.000000e+00> : vector<8x8xf32>
    %409 = tpu.matmul %405, %408, %cst_138 {dimension_numbers = #tpu.dot_dimension_numbers<[1], [0], [0], [1], [0, 0, 1, 1], [], []>} : vector<8x8xf32>, vector<8x8xf32>, vector<8x8xf32> -> vector<8x8xf32>
    %cst_139 = arith.constant 0.353553385 : f32
    %410 = vector.broadcast %cst_139 : f32 to vector<8x8xf32>
    %411 = arith.mulf %409, %410 : vector<8x8xf32>
    %412 = vector.broadcast %384 : vector<1x8xf32> to vector<8x8xf32>
    %413 = arith.addf %411, %412 : vector<8x8xf32>
    %cst_140 = arith.constant dense<0xFF800000> : vector<8xf32>
    %414 = vector.multi_reduction <maximumf>, %413, %cst_140 [1] : vector<8x8xf32> to vector<8xf32>
    %415 = vector.shape_cast %414 : vector<8xf32> to vector<8x1xf32>
    %416 = vector.broadcast %415 : vector<8x1xf32> to vector<8x8xf32>
    %417 = arith.subf %413, %416 : vector<8x8xf32>
    %418 = math.exp %417 : vector<8x8xf32>
    %cst_141 = arith.constant dense<0.000000e+00> : vector<8xf32>
    %419 = vector.multi_reduction <add>, %418, %cst_141 [1] : vector<8x8xf32> to vector<8xf32>
    %420 = vector.shape_cast %419 : vector<8xf32> to vector<8x1xf32>
    %421 = tpu.reciprocal %420 {approx = true} : vector<8x1xf32> -> vector<8x1xf32>
    %422 = vector.broadcast %421 : vector<8x1xf32> to vector<8x8xf32>
    %423 = arith.mulf %418, %422 : vector<8x8xf32>
    %cst_142 = arith.constant dense<0.000000e+00> : vector<8x8xf32>
    %424 = tpu.matmul %423, %407, %cst_142 {dimension_numbers = #tpu.dot_dimension_numbers<[1], [0], [0], [1], [0, 0, 1, 1], [], []>} : vector<8x8xf32>, vector<8x8xf32>, vector<8x8xf32> -> vector<8x8xf32>
    %425 = vector.extract_strided_slice %301 {offsets = [8, 16], sizes = [8, 8], strides = [1, 1]} : vector<16x96xf32> to vector<8x8xf32>
    %426 = vector.extract_strided_slice %301 {offsets = [8, 48], sizes = [8, 8], strides = [1, 1]} : vector<16x96xf32> to vector<8x8xf32>
    %427 = vector.extract_strided_slice %301 {offsets = [8, 80], sizes = [8, 8], strides = [1, 1]} : vector<16x96xf32> to vector<8x8xf32>
    %428 = tpu.transpose %426, [1, 0] : vector<8x8xf32> -> vector<8x8xf32>
    %cst_143 = arith.constant dense<0.000000e+00> : vector<8x8xf32>
    %429 = tpu.matmul %425, %428, %cst_143 {dimension_numbers = #tpu.dot_dimension_numbers<[1], [0], [0], [1], [0, 0, 1, 1], [], []>} : vector<8x8xf32>, vector<8x8xf32>, vector<8x8xf32> -> vector<8x8xf32>
    %cst_144 = arith.constant 0.353553385 : f32
    %430 = vector.broadcast %cst_144 : f32 to vector<8x8xf32>
    %431 = arith.mulf %429, %430 : vector<8x8xf32>
    %432 = vector.broadcast %384 : vector<1x8xf32> to vector<8x8xf32>
    %433 = arith.addf %431, %432 : vector<8x8xf32>
    %cst_145 = arith.constant dense<0xFF800000> : vector<8xf32>
    %434 = vector.multi_reduction <maximumf>, %433, %cst_145 [1] : vector<8x8xf32> to vector<8xf32>
    %435 = vector.shape_cast %434 : vector<8xf32> to vector<8x1xf32>
    %436 = vector.broadcast %435 : vector<8x1xf32> to vector<8x8xf32>
    %437 = arith.subf %433, %436 : vector<8x8xf32>
    %438 = math.exp %437 : vector<8x8xf32>
    %cst_146 = arith.constant dense<0.000000e+00> : vector<8xf32>
    %439 = vector.multi_reduction <add>, %438, %cst_146 [1] : vector<8x8xf32> to vector<8xf32>
    %440 = vector.shape_cast %439 : vector<8xf32> to vector<8x1xf32>
    %441 = tpu.reciprocal %440 {approx = true} : vector<8x1xf32> -> vector<8x1xf32>
    %442 = vector.broadcast %441 : vector<8x1xf32> to vector<8x8xf32>
    %443 = arith.mulf %438, %442 : vector<8x8xf32>
    %cst_147 = arith.constant dense<0.000000e+00> : vector<8x8xf32>
    %444 = tpu.matmul %443, %427, %cst_147 {dimension_numbers = #tpu.dot_dimension_numbers<[1], [0], [0], [1], [0, 0, 1, 1], [], []>} : vector<8x8xf32>, vector<8x8xf32>, vector<8x8xf32> -> vector<8x8xf32>
    %445 = vector.extract_strided_slice %301 {offsets = [8, 24], sizes = [8, 8], strides = [1, 1]} : vector<16x96xf32> to vector<8x8xf32>
    %446 = vector.extract_strided_slice %301 {offsets = [8, 56], sizes = [8, 8], strides = [1, 1]} : vector<16x96xf32> to vector<8x8xf32>
    %447 = vector.extract_strided_slice %301 {offsets = [8, 88], sizes = [8, 8], strides = [1, 1]} : vector<16x96xf32> to vector<8x8xf32>
    %448 = tpu.transpose %446, [1, 0] : vector<8x8xf32> -> vector<8x8xf32>
    %cst_148 = arith.constant dense<0.000000e+00> : vector<8x8xf32>
    %449 = tpu.matmul %445, %448, %cst_148 {dimension_numbers = #tpu.dot_dimension_numbers<[1], [0], [0], [1], [0, 0, 1, 1], [], []>} : vector<8x8xf32>, vector<8x8xf32>, vector<8x8xf32> -> vector<8x8xf32>
    %cst_149 = arith.constant 0.353553385 : f32
    %450 = vector.broadcast %cst_149 : f32 to vector<8x8xf32>
    %451 = arith.mulf %449, %450 : vector<8x8xf32>
    %452 = vector.broadcast %384 : vector<1x8xf32> to vector<8x8xf32>
    %453 = arith.addf %451, %452 : vector<8x8xf32>
    %cst_150 = arith.constant dense<0xFF800000> : vector<8xf32>
    %454 = vector.multi_reduction <maximumf>, %453, %cst_150 [1] : vector<8x8xf32> to vector<8xf32>
    %455 = vector.shape_cast %454 : vector<8xf32> to vector<8x1xf32>
    %456 = vector.broadcast %455 : vector<8x1xf32> to vector<8x8xf32>
    %457 = arith.subf %453, %456 : vector<8x8xf32>
    %458 = math.exp %457 : vector<8x8xf32>
    %cst_151 = arith.constant dense<0.000000e+00> : vector<8xf32>
    %459 = vector.multi_reduction <add>, %458, %cst_151 [1] : vector<8x8xf32> to vector<8xf32>
    %460 = vector.shape_cast %459 : vector<8xf32> to vector<8x1xf32>
    %461 = tpu.reciprocal %460 {approx = true} : vector<8x1xf32> -> vector<8x1xf32>
    %462 = vector.broadcast %461 : vector<8x1xf32> to vector<8x8xf32>
    %463 = arith.mulf %458, %462 : vector<8x8xf32>
    %cst_152 = arith.constant dense<0.000000e+00> : vector<8x8xf32>
    %464 = tpu.matmul %463, %447, %cst_152 {dimension_numbers = #tpu.dot_dimension_numbers<[1], [0], [0], [1], [0, 0, 1, 1], [], []>} : vector<8x8xf32>, vector<8x8xf32>, vector<8x8xf32> -> vector<8x8xf32>
    %465 = tpu.concatenate %404, %424, %444, %464 in 1 : vector<8x8xf32>, vector<8x8xf32>, vector<8x8xf32>, vector<8x8xf32> -> vector<8x32xf32>
    %466 = tpu.concatenate %383, %465 in 0 : vector<8x32xf32>, vector<8x32xf32> -> vector<16x32xf32>
    %c1_153 = arith.constant 1 : index
    %c0_154 = arith.constant 0 : index
    %c0_155 = arith.constant 0 : index
    %467 = vector.load %arg6[%c1_153, %c0_154, %c0_155] : memref<3x32x32xbf16, #tpu.memory_space<vmem>>, vector<1x32x32xbf16>
    %468 = vector.shape_cast %467 : vector<1x32x32xbf16> to vector<32x32xbf16>
    %469 = arith.truncf %466 : vector<16x32xf32> to vector<16x32xbf16>
    %cst_156 = arith.constant dense<0.000000e+00> : vector<16x32xf32>
    %470 = tpu.matmul %469, %468, %cst_156 {dimension_numbers = #tpu.dot_dimension_numbers<[1], [0], [0], [1], [0, 0, 1, 1], [], []>} : vector<16x32xbf16>, vector<32x32xbf16>, vector<16x32xf32> -> vector<16x32xf32>
    %c1_157 = arith.constant 1 : index
    %c0_158 = arith.constant 0 : index
    %c0_159 = arith.constant 0 : index
    %471 = vector.load %arg7[%c1_157, %c0_158, %c0_159] : memref<3x1x32xf32, #tpu.memory_space<vmem>>, vector<1x1x32xf32>
    %472 = vector.shape_cast %471 : vector<1x1x32xf32> to vector<1x32xf32>
    %473 = vector.broadcast %472 : vector<1x32xf32> to vector<16x32xf32>
    %474 = arith.addf %470, %473 : vector<16x32xf32>
    %475 = arith.addf %474, %293 : vector<16x32xf32>
    %c1_160 = arith.constant 1 : index
    %c0_161 = arith.constant 0 : index
    %c0_162 = arith.constant 0 : index
    %476 = vector.load %arg8[%c1_160, %c0_161, %c0_162] : memref<3x1x32xf32, #tpu.memory_space<vmem>>, vector<1x1x32xf32>
    %477 = vector.shape_cast %476 : vector<1x1x32xf32> to vector<1x32xf32>
    %c1_163 = arith.constant 1 : index
    %c0_164 = arith.constant 0 : index
    %c0_165 = arith.constant 0 : index
    %478 = vector.load %arg9[%c1_163, %c0_164, %c0_165] : memref<3x1x32xf32, #tpu.memory_space<vmem>>, vector<1x1x32xf32>
    %479 = vector.shape_cast %478 : vector<1x1x32xf32> to vector<1x32xf32>
    %cst_166 = arith.constant dense<0.000000e+00> : vector<16xf32>
    %480 = vector.multi_reduction <add>, %475, %cst_166 [1] : vector<16x32xf32> to vector<16xf32>
    %481 = vector.shape_cast %480 : vector<16xf32> to vector<16x1xf32>
    %cst_167 = arith.constant 3.200000e+01 : f32
    %482 = vector.broadcast %cst_167 : f32 to vector<16x1xf32>
    %483 = arith.divf %481, %482 : vector<16x1xf32>
    %484 = vector.broadcast %483 : vector<16x1xf32> to vector<16x32xf32>
    %485 = arith.subf %475, %484 : vector<16x32xf32>
    %486 = arith.mulf %485, %485 : vector<16x32xf32>
    %cst_168 = arith.constant dense<0.000000e+00> : vector<16xf32>
    %487 = vector.multi_reduction <add>, %486, %cst_168 [1] : vector<16x32xf32> to vector<16xf32>
    %488 = vector.shape_cast %487 : vector<16xf32> to vector<16x1xf32>
    %cst_169 = arith.constant 3.200000e+01 : f32
    %489 = vector.broadcast %cst_169 : f32 to vector<16x1xf32>
    %490 = arith.divf %488, %489 : vector<16x1xf32>
    %491 = vector.broadcast %483 : vector<16x1xf32> to vector<16x32xf32>
    %492 = arith.subf %475, %491 : vector<16x32xf32>
    %cst_170 = arith.constant 9.99999996E-13 : f32
    %493 = vector.broadcast %cst_170 : f32 to vector<16x1xf32>
    %494 = arith.addf %490, %493 : vector<16x1xf32>
    %495 = math.rsqrt %494 : vector<16x1xf32>
    %496 = vector.broadcast %495 : vector<16x1xf32> to vector<16x32xf32>
    %497 = arith.mulf %492, %496 : vector<16x32xf32>
    %498 = vector.broadcast %477 : vector<1x32xf32> to vector<16x32xf32>
    %499 = arith.mulf %497, %498 : vector<16x32xf32>
    %500 = vector.broadcast %479 : vector<1x32xf32> to vector<16x32xf32>
    %501 = arith.addf %499, %500 : vector<16x32xf32>
    %c1_171 = arith.constant 1 : index
    %c0_172 = arith.constant 0 : index
    %c0_173 = arith.constant 0 : index
    %502 = vector.load %arg10[%c1_171, %c0_172, %c0_173] : memref<3x32x64xbf16, #tpu.memory_space<vmem>>, vector<1x32x64xbf16>
    %503 = vector.shape_cast %502 : vector<1x32x64xbf16> to vector<32x64xbf16>
    %504 = arith.truncf %501 : vector<16x32xf32> to vector<16x32xbf16>
    %cst_174 = arith.constant dense<0.000000e+00> : vector<16x64xf32>
    %505 = tpu.matmul %504, %503, %cst_174 {dimension_numbers = #tpu.dot_dimension_numbers<[1], [0], [0], [1], [0, 0, 1, 1], [], []>} : vector<16x32xbf16>, vector<32x64xbf16>, vector<16x64xf32> -> vector<16x64xf32>
    %c1_175 = arith.constant 1 : index
    %c0_176 = arith.constant 0 : index
    %c0_177 = arith.constant 0 : index
    %506 = vector.load %arg11[%c1_175, %c0_176, %c0_177] : memref<3x1x64xf32, #tpu.memory_space<vmem>>, vector<1x1x64xf32>
    %507 = vector.shape_cast %506 : vector<1x1x64xf32> to vector<1x64xf32>
    %508 = vector.broadcast %507 : vector<1x64xf32> to vector<16x64xf32>
    %509 = arith.addf %505, %508 : vector<16x64xf32>
    %cst_178 = arith.constant 5.000000e-01 : f32
    %510 = vector.broadcast %cst_178 : f32 to vector<16x64xf32>
    %511 = arith.mulf %510, %509 : vector<16x64xf32>
    %cst_179 = arith.constant 4.471500e-02 : f32
    %512 = vector.broadcast %cst_179 : f32 to vector<16x64xf32>
    %513 = arith.mulf %512, %509 : vector<16x64xf32>
    %514 = arith.mulf %513, %509 : vector<16x64xf32>
    %515 = arith.mulf %514, %509 : vector<16x64xf32>
    %516 = arith.addf %509, %515 : vector<16x64xf32>
    %cst_180 = arith.constant 0.797884583 : f32
    %517 = vector.broadcast %cst_180 : f32 to vector<16x64xf32>
    %518 = arith.mulf %517, %516 : vector<16x64xf32>
    %519 = math.tanh %518 : vector<16x64xf32>
    %cst_181 = arith.constant 1.000000e+00 : f32
    %520 = vector.broadcast %cst_181 : f32 to vector<16x64xf32>
    %521 = arith.addf %520, %519 : vector<16x64xf32>
    %522 = arith.mulf %511, %521 : vector<16x64xf32>
    %c1_182 = arith.constant 1 : index
    %c0_183 = arith.constant 0 : index
    %c0_184 = arith.constant 0 : index
    %523 = vector.load %arg12[%c1_182, %c0_183, %c0_184] : memref<3x64x32xbf16, #tpu.memory_space<vmem>>, vector<1x64x32xbf16>
    %524 = vector.shape_cast %523 : vector<1x64x32xbf16> to vector<64x32xbf16>
    %525 = arith.truncf %522 : vector<16x64xf32> to vector<16x64xbf16>
    %cst_185 = arith.constant dense<0.000000e+00> : vector<16x32xf32>
    %526 = tpu.matmul %525, %524, %cst_185 {dimension_numbers = #tpu.dot_dimension_numbers<[1], [0], [0], [1], [0, 0, 1, 1], [], []>} : vector<16x64xbf16>, vector<64x32xbf16>, vector<16x32xf32> -> vector<16x32xf32>
    %c1_186 = arith.constant 1 : index
    %c0_187 = arith.constant 0 : index
    %c0_188 = arith.constant 0 : index
    %527 = vector.load %arg13[%c1_186, %c0_187, %c0_188] : memref<3x1x32xf32, #tpu.memory_space<vmem>>, vector<1x1x32xf32>
    %528 = vector.shape_cast %527 : vector<1x1x32xf32> to vector<1x32xf32>
    %529 = vector.broadcast %528 : vector<1x32xf32> to vector<16x32xf32>
    %530 = arith.addf %526, %529 : vector<16x32xf32>
    %531 = arith.addf %530, %501 : vector<16x32xf32>
    %c1_189 = arith.constant 1 : index
    %c0_190 = arith.constant 0 : index
    %c0_191 = arith.constant 0 : index
    %532 = vector.load %arg14[%c1_189, %c0_190, %c0_191] : memref<3x1x32xf32, #tpu.memory_space<vmem>>, vector<1x1x32xf32>
    %533 = vector.shape_cast %532 : vector<1x1x32xf32> to vector<1x32xf32>
    %c1_192 = arith.constant 1 : index
    %c0_193 = arith.constant 0 : index
    %c0_194 = arith.constant 0 : index
    %534 = vector.load %arg15[%c1_192, %c0_193, %c0_194] : memref<3x1x32xf32, #tpu.memory_space<vmem>>, vector<1x1x32xf32>
    %535 = vector.shape_cast %534 : vector<1x1x32xf32> to vector<1x32xf32>
    %cst_195 = arith.constant dense<0.000000e+00> : vector<16xf32>
    %536 = vector.multi_reduction <add>, %531, %cst_195 [1] : vector<16x32xf32> to vector<16xf32>
    %537 = vector.shape_cast %536 : vector<16xf32> to vector<16x1xf32>
    %cst_196 = arith.constant 3.200000e+01 : f32
    %538 = vector.broadcast %cst_196 : f32 to vector<16x1xf32>
    %539 = arith.divf %537, %538 : vector<16x1xf32>
    %540 = vector.broadcast %539 : vector<16x1xf32> to vector<16x32xf32>
    %541 = arith.subf %531, %540 : vector<16x32xf32>
    %542 = arith.mulf %541, %541 : vector<16x32xf32>
    %cst_197 = arith.constant dense<0.000000e+00> : vector<16xf32>
    %543 = vector.multi_reduction <add>, %542, %cst_197 [1] : vector<16x32xf32> to vector<16xf32>
    %544 = vector.shape_cast %543 : vector<16xf32> to vector<16x1xf32>
    %cst_198 = arith.constant 3.200000e+01 : f32
    %545 = vector.broadcast %cst_198 : f32 to vector<16x1xf32>
    %546 = arith.divf %544, %545 : vector<16x1xf32>
    %547 = vector.broadcast %539 : vector<16x1xf32> to vector<16x32xf32>
    %548 = arith.subf %531, %547 : vector<16x32xf32>
    %cst_199 = arith.constant 9.99999996E-13 : f32
    %549 = vector.broadcast %cst_199 : f32 to vector<16x1xf32>
    %550 = arith.addf %546, %549 : vector<16x1xf32>
    %551 = math.rsqrt %550 : vector<16x1xf32>
    %552 = vector.broadcast %551 : vector<16x1xf32> to vector<16x32xf32>
    %553 = arith.mulf %548, %552 : vector<16x32xf32>
    %554 = vector.broadcast %533 : vector<1x32xf32> to vector<16x32xf32>
    %555 = arith.mulf %553, %554 : vector<16x32xf32>
    %556 = vector.broadcast %535 : vector<1x32xf32> to vector<16x32xf32>
    %557 = arith.addf %555, %556 : vector<16x32xf32>
    %c2 = arith.constant 2 : index
    %c0_200 = arith.constant 0 : index
    %c0_201 = arith.constant 0 : index
    %558 = vector.load %arg4[%c2, %c0_200, %c0_201] : memref<3x32x96xbf16, #tpu.memory_space<vmem>>, vector<1x32x96xbf16>
    %559 = vector.shape_cast %558 : vector<1x32x96xbf16> to vector<32x96xbf16>
    %560 = arith.truncf %557 : vector<16x32xf32> to vector<16x32xbf16>
    %cst_202 = arith.constant dense<0.000000e+00> : vector<16x96xf32>
    %561 = tpu.matmul %560, %559, %cst_202 {dimension_numbers = #tpu.dot_dimension_numbers<[1], [0], [0], [1], [0, 0, 1, 1], [], []>} : vector<16x32xbf16>, vector<32x96xbf16>, vector<16x96xf32> -> vector<16x96xf32>
    %c2_203 = arith.constant 2 : index
    %c0_204 = arith.constant 0 : index
    %c0_205 = arith.constant 0 : index
    %562 = vector.load %arg5[%c2_203, %c0_204, %c0_205] : memref<3x1x96xf32, #tpu.memory_space<vmem>>, vector<1x1x96xf32>
    %563 = vector.shape_cast %562 : vector<1x1x96xf32> to vector<1x96xf32>
    %564 = vector.broadcast %563 : vector<1x96xf32> to vector<16x96xf32>
    %565 = arith.addf %561, %564 : vector<16x96xf32>
    %566 = vector.extract_strided_slice %29 {offsets = [0, 0], sizes = [1, 8], strides = [1, 1]} : vector<2x8xf32> to vector<1x8xf32>
    %567 = vector.extract_strided_slice %565 {offsets = [0, 0], sizes = [8, 8], strides = [1, 1]} : vector<16x96xf32> to vector<8x8xf32>
    %568 = vector.extract_strided_slice %565 {offsets = [0, 32], sizes = [8, 8], strides = [1, 1]} : vector<16x96xf32> to vector<8x8xf32>
    %569 = vector.extract_strided_slice %565 {offsets = [0, 64], sizes = [8, 8], strides = [1, 1]} : vector<16x96xf32> to vector<8x8xf32>
    %570 = tpu.transpose %568, [1, 0] : vector<8x8xf32> -> vector<8x8xf32>
    %cst_206 = arith.constant dense<0.000000e+00> : vector<8x8xf32>
    %571 = tpu.matmul %567, %570, %cst_206 {dimension_numbers = #tpu.dot_dimension_numbers<[1], [0], [0], [1], [0, 0, 1, 1], [], []>} : vector<8x8xf32>, vector<8x8xf32>, vector<8x8xf32> -> vector<8x8xf32>
    %cst_207 = arith.constant 0.353553385 : f32
    %572 = vector.broadcast %cst_207 : f32 to vector<8x8xf32>
    %573 = arith.mulf %571, %572 : vector<8x8xf32>
    %574 = vector.broadcast %566 : vector<1x8xf32> to vector<8x8xf32>
    %575 = arith.addf %573, %574 : vector<8x8xf32>
    %cst_208 = arith.constant dense<0xFF800000> : vector<8xf32>
    %576 = vector.multi_reduction <maximumf>, %575, %cst_208 [1] : vector<8x8xf32> to vector<8xf32>
    %577 = vector.shape_cast %576 : vector<8xf32> to vector<8x1xf32>
    %578 = vector.broadcast %577 : vector<8x1xf32> to vector<8x8xf32>
    %579 = arith.subf %575, %578 : vector<8x8xf32>
    %580 = math.exp %579 : vector<8x8xf32>
    %cst_209 = arith.constant dense<0.000000e+00> : vector<8xf32>
    %581 = vector.multi_reduction <add>, %580, %cst_209 [1] : vector<8x8xf32> to vector<8xf32>
    %582 = vector.shape_cast %581 : vector<8xf32> to vector<8x1xf32>
    %583 = tpu.reciprocal %582 {approx = true} : vector<8x1xf32> -> vector<8x1xf32>
    %584 = vector.broadcast %583 : vector<8x1xf32> to vector<8x8xf32>
    %585 = arith.mulf %580, %584 : vector<8x8xf32>
    %cst_210 = arith.constant dense<0.000000e+00> : vector<8x8xf32>
    %586 = tpu.matmul %585, %569, %cst_210 {dimension_numbers = #tpu.dot_dimension_numbers<[1], [0], [0], [1], [0, 0, 1, 1], [], []>} : vector<8x8xf32>, vector<8x8xf32>, vector<8x8xf32> -> vector<8x8xf32>
    %587 = vector.extract_strided_slice %565 {offsets = [0, 8], sizes = [8, 8], strides = [1, 1]} : vector<16x96xf32> to vector<8x8xf32>
    %588 = vector.extract_strided_slice %565 {offsets = [0, 40], sizes = [8, 8], strides = [1, 1]} : vector<16x96xf32> to vector<8x8xf32>
    %589 = vector.extract_strided_slice %565 {offsets = [0, 72], sizes = [8, 8], strides = [1, 1]} : vector<16x96xf32> to vector<8x8xf32>
    %590 = tpu.transpose %588, [1, 0] : vector<8x8xf32> -> vector<8x8xf32>
    %cst_211 = arith.constant dense<0.000000e+00> : vector<8x8xf32>
    %591 = tpu.matmul %587, %590, %cst_211 {dimension_numbers = #tpu.dot_dimension_numbers<[1], [0], [0], [1], [0, 0, 1, 1], [], []>} : vector<8x8xf32>, vector<8x8xf32>, vector<8x8xf32> -> vector<8x8xf32>
    %cst_212 = arith.constant 0.353553385 : f32
    %592 = vector.broadcast %cst_212 : f32 to vector<8x8xf32>
    %593 = arith.mulf %591, %592 : vector<8x8xf32>
    %594 = vector.broadcast %566 : vector<1x8xf32> to vector<8x8xf32>
    %595 = arith.addf %593, %594 : vector<8x8xf32>
    %cst_213 = arith.constant dense<0xFF800000> : vector<8xf32>
    %596 = vector.multi_reduction <maximumf>, %595, %cst_213 [1] : vector<8x8xf32> to vector<8xf32>
    %597 = vector.shape_cast %596 : vector<8xf32> to vector<8x1xf32>
    %598 = vector.broadcast %597 : vector<8x1xf32> to vector<8x8xf32>
    %599 = arith.subf %595, %598 : vector<8x8xf32>
    %600 = math.exp %599 : vector<8x8xf32>
    %cst_214 = arith.constant dense<0.000000e+00> : vector<8xf32>
    %601 = vector.multi_reduction <add>, %600, %cst_214 [1] : vector<8x8xf32> to vector<8xf32>
    %602 = vector.shape_cast %601 : vector<8xf32> to vector<8x1xf32>
    %603 = tpu.reciprocal %602 {approx = true} : vector<8x1xf32> -> vector<8x1xf32>
    %604 = vector.broadcast %603 : vector<8x1xf32> to vector<8x8xf32>
    %605 = arith.mulf %600, %604 : vector<8x8xf32>
    %cst_215 = arith.constant dense<0.000000e+00> : vector<8x8xf32>
    %606 = tpu.matmul %605, %589, %cst_215 {dimension_numbers = #tpu.dot_dimension_numbers<[1], [0], [0], [1], [0, 0, 1, 1], [], []>} : vector<8x8xf32>, vector<8x8xf32>, vector<8x8xf32> -> vector<8x8xf32>
    %607 = vector.extract_strided_slice %565 {offsets = [0, 16], sizes = [8, 8], strides = [1, 1]} : vector<16x96xf32> to vector<8x8xf32>
    %608 = vector.extract_strided_slice %565 {offsets = [0, 48], sizes = [8, 8], strides = [1, 1]} : vector<16x96xf32> to vector<8x8xf32>
    %609 = vector.extract_strided_slice %565 {offsets = [0, 80], sizes = [8, 8], strides = [1, 1]} : vector<16x96xf32> to vector<8x8xf32>
    %610 = tpu.transpose %608, [1, 0] : vector<8x8xf32> -> vector<8x8xf32>
    %cst_216 = arith.constant dense<0.000000e+00> : vector<8x8xf32>
    %611 = tpu.matmul %607, %610, %cst_216 {dimension_numbers = #tpu.dot_dimension_numbers<[1], [0], [0], [1], [0, 0, 1, 1], [], []>} : vector<8x8xf32>, vector<8x8xf32>, vector<8x8xf32> -> vector<8x8xf32>
    %cst_217 = arith.constant 0.353553385 : f32
    %612 = vector.broadcast %cst_217 : f32 to vector<8x8xf32>
    %613 = arith.mulf %611, %612 : vector<8x8xf32>
    %614 = vector.broadcast %566 : vector<1x8xf32> to vector<8x8xf32>
    %615 = arith.addf %613, %614 : vector<8x8xf32>
    %cst_218 = arith.constant dense<0xFF800000> : vector<8xf32>
    %616 = vector.multi_reduction <maximumf>, %615, %cst_218 [1] : vector<8x8xf32> to vector<8xf32>
    %617 = vector.shape_cast %616 : vector<8xf32> to vector<8x1xf32>
    %618 = vector.broadcast %617 : vector<8x1xf32> to vector<8x8xf32>
    %619 = arith.subf %615, %618 : vector<8x8xf32>
    %620 = math.exp %619 : vector<8x8xf32>
    %cst_219 = arith.constant dense<0.000000e+00> : vector<8xf32>
    %621 = vector.multi_reduction <add>, %620, %cst_219 [1] : vector<8x8xf32> to vector<8xf32>
    %622 = vector.shape_cast %621 : vector<8xf32> to vector<8x1xf32>
    %623 = tpu.reciprocal %622 {approx = true} : vector<8x1xf32> -> vector<8x1xf32>
    %624 = vector.broadcast %623 : vector<8x1xf32> to vector<8x8xf32>
    %625 = arith.mulf %620, %624 : vector<8x8xf32>
    %cst_220 = arith.constant dense<0.000000e+00> : vector<8x8xf32>
    %626 = tpu.matmul %625, %609, %cst_220 {dimension_numbers = #tpu.dot_dimension_numbers<[1], [0], [0], [1], [0, 0, 1, 1], [], []>} : vector<8x8xf32>, vector<8x8xf32>, vector<8x8xf32> -> vector<8x8xf32>
    %627 = vector.extract_strided_slice %565 {offsets = [0, 24], sizes = [8, 8], strides = [1, 1]} : vector<16x96xf32> to vector<8x8xf32>
    %628 = vector.extract_strided_slice %565 {offsets = [0, 56], sizes = [8, 8], strides = [1, 1]} : vector<16x96xf32> to vector<8x8xf32>
    %629 = vector.extract_strided_slice %565 {offsets = [0, 88], sizes = [8, 8], strides = [1, 1]} : vector<16x96xf32> to vector<8x8xf32>
    %630 = tpu.transpose %628, [1, 0] : vector<8x8xf32> -> vector<8x8xf32>
    %cst_221 = arith.constant dense<0.000000e+00> : vector<8x8xf32>
    %631 = tpu.matmul %627, %630, %cst_221 {dimension_numbers = #tpu.dot_dimension_numbers<[1], [0], [0], [1], [0, 0, 1, 1], [], []>} : vector<8x8xf32>, vector<8x8xf32>, vector<8x8xf32> -> vector<8x8xf32>
    %cst_222 = arith.constant 0.353553385 : f32
    %632 = vector.broadcast %cst_222 : f32 to vector<8x8xf32>
    %633 = arith.mulf %631, %632 : vector<8x8xf32>
    %634 = vector.broadcast %566 : vector<1x8xf32> to vector<8x8xf32>
    %635 = arith.addf %633, %634 : vector<8x8xf32>
    %cst_223 = arith.constant dense<0xFF800000> : vector<8xf32>
    %636 = vector.multi_reduction <maximumf>, %635, %cst_223 [1] : vector<8x8xf32> to vector<8xf32>
    %637 = vector.shape_cast %636 : vector<8xf32> to vector<8x1xf32>
    %638 = vector.broadcast %637 : vector<8x1xf32> to vector<8x8xf32>
    %639 = arith.subf %635, %638 : vector<8x8xf32>
    %640 = math.exp %639 : vector<8x8xf32>
    %cst_224 = arith.constant dense<0.000000e+00> : vector<8xf32>
    %641 = vector.multi_reduction <add>, %640, %cst_224 [1] : vector<8x8xf32> to vector<8xf32>
    %642 = vector.shape_cast %641 : vector<8xf32> to vector<8x1xf32>
    %643 = tpu.reciprocal %642 {approx = true} : vector<8x1xf32> -> vector<8x1xf32>
    %644 = vector.broadcast %643 : vector<8x1xf32> to vector<8x8xf32>
    %645 = arith.mulf %640, %644 : vector<8x8xf32>
    %cst_225 = arith.constant dense<0.000000e+00> : vector<8x8xf32>
    %646 = tpu.matmul %645, %629, %cst_225 {dimension_numbers = #tpu.dot_dimension_numbers<[1], [0], [0], [1], [0, 0, 1, 1], [], []>} : vector<8x8xf32>, vector<8x8xf32>, vector<8x8xf32> -> vector<8x8xf32>
    %647 = tpu.concatenate %586, %606, %626, %646 in 1 : vector<8x8xf32>, vector<8x8xf32>, vector<8x8xf32>, vector<8x8xf32> -> vector<8x32xf32>
    %648 = vector.extract_strided_slice %29 {offsets = [1, 0], sizes = [1, 8], strides = [1, 1]} : vector<2x8xf32> to vector<1x8xf32>
    %649 = vector.extract_strided_slice %565 {offsets = [8, 0], sizes = [8, 8], strides = [1, 1]} : vector<16x96xf32> to vector<8x8xf32>
    %650 = vector.extract_strided_slice %565 {offsets = [8, 32], sizes = [8, 8], strides = [1, 1]} : vector<16x96xf32> to vector<8x8xf32>
    %651 = vector.extract_strided_slice %565 {offsets = [8, 64], sizes = [8, 8], strides = [1, 1]} : vector<16x96xf32> to vector<8x8xf32>
    %652 = tpu.transpose %650, [1, 0] : vector<8x8xf32> -> vector<8x8xf32>
    %cst_226 = arith.constant dense<0.000000e+00> : vector<8x8xf32>
    %653 = tpu.matmul %649, %652, %cst_226 {dimension_numbers = #tpu.dot_dimension_numbers<[1], [0], [0], [1], [0, 0, 1, 1], [], []>} : vector<8x8xf32>, vector<8x8xf32>, vector<8x8xf32> -> vector<8x8xf32>
    %cst_227 = arith.constant 0.353553385 : f32
    %654 = vector.broadcast %cst_227 : f32 to vector<8x8xf32>
    %655 = arith.mulf %653, %654 : vector<8x8xf32>
    %656 = vector.broadcast %648 : vector<1x8xf32> to vector<8x8xf32>
    %657 = arith.addf %655, %656 : vector<8x8xf32>
    %cst_228 = arith.constant dense<0xFF800000> : vector<8xf32>
    %658 = vector.multi_reduction <maximumf>, %657, %cst_228 [1] : vector<8x8xf32> to vector<8xf32>
    %659 = vector.shape_cast %658 : vector<8xf32> to vector<8x1xf32>
    %660 = vector.broadcast %659 : vector<8x1xf32> to vector<8x8xf32>
    %661 = arith.subf %657, %660 : vector<8x8xf32>
    %662 = math.exp %661 : vector<8x8xf32>
    %cst_229 = arith.constant dense<0.000000e+00> : vector<8xf32>
    %663 = vector.multi_reduction <add>, %662, %cst_229 [1] : vector<8x8xf32> to vector<8xf32>
    %664 = vector.shape_cast %663 : vector<8xf32> to vector<8x1xf32>
    %665 = tpu.reciprocal %664 {approx = true} : vector<8x1xf32> -> vector<8x1xf32>
    %666 = vector.broadcast %665 : vector<8x1xf32> to vector<8x8xf32>
    %667 = arith.mulf %662, %666 : vector<8x8xf32>
    %cst_230 = arith.constant dense<0.000000e+00> : vector<8x8xf32>
    %668 = tpu.matmul %667, %651, %cst_230 {dimension_numbers = #tpu.dot_dimension_numbers<[1], [0], [0], [1], [0, 0, 1, 1], [], []>} : vector<8x8xf32>, vector<8x8xf32>, vector<8x8xf32> -> vector<8x8xf32>
    %669 = vector.extract_strided_slice %565 {offsets = [8, 8], sizes = [8, 8], strides = [1, 1]} : vector<16x96xf32> to vector<8x8xf32>
    %670 = vector.extract_strided_slice %565 {offsets = [8, 40], sizes = [8, 8], strides = [1, 1]} : vector<16x96xf32> to vector<8x8xf32>
    %671 = vector.extract_strided_slice %565 {offsets = [8, 72], sizes = [8, 8], strides = [1, 1]} : vector<16x96xf32> to vector<8x8xf32>
    %672 = tpu.transpose %670, [1, 0] : vector<8x8xf32> -> vector<8x8xf32>
    %cst_231 = arith.constant dense<0.000000e+00> : vector<8x8xf32>
    %673 = tpu.matmul %669, %672, %cst_231 {dimension_numbers = #tpu.dot_dimension_numbers<[1], [0], [0], [1], [0, 0, 1, 1], [], []>} : vector<8x8xf32>, vector<8x8xf32>, vector<8x8xf32> -> vector<8x8xf32>
    %cst_232 = arith.constant 0.353553385 : f32
    %674 = vector.broadcast %cst_232 : f32 to vector<8x8xf32>
    %675 = arith.mulf %673, %674 : vector<8x8xf32>
    %676 = vector.broadcast %648 : vector<1x8xf32> to vector<8x8xf32>
    %677 = arith.addf %675, %676 : vector<8x8xf32>
    %cst_233 = arith.constant dense<0xFF800000> : vector<8xf32>
    %678 = vector.multi_reduction <maximumf>, %677, %cst_233 [1] : vector<8x8xf32> to vector<8xf32>
    %679 = vector.shape_cast %678 : vector<8xf32> to vector<8x1xf32>
    %680 = vector.broadcast %679 : vector<8x1xf32> to vector<8x8xf32>
    %681 = arith.subf %677, %680 : vector<8x8xf32>
    %682 = math.exp %681 : vector<8x8xf32>
    %cst_234 = arith.constant dense<0.000000e+00> : vector<8xf32>
    %683 = vector.multi_reduction <add>, %682, %cst_234 [1] : vector<8x8xf32> to vector<8xf32>
    %684 = vector.shape_cast %683 : vector<8xf32> to vector<8x1xf32>
    %685 = tpu.reciprocal %684 {approx = true} : vector<8x1xf32> -> vector<8x1xf32>
    %686 = vector.broadcast %685 : vector<8x1xf32> to vector<8x8xf32>
    %687 = arith.mulf %682, %686 : vector<8x8xf32>
    %cst_235 = arith.constant dense<0.000000e+00> : vector<8x8xf32>
    %688 = tpu.matmul %687, %671, %cst_235 {dimension_numbers = #tpu.dot_dimension_numbers<[1], [0], [0], [1], [0, 0, 1, 1], [], []>} : vector<8x8xf32>, vector<8x8xf32>, vector<8x8xf32> -> vector<8x8xf32>
    %689 = vector.extract_strided_slice %565 {offsets = [8, 16], sizes = [8, 8], strides = [1, 1]} : vector<16x96xf32> to vector<8x8xf32>
    %690 = vector.extract_strided_slice %565 {offsets = [8, 48], sizes = [8, 8], strides = [1, 1]} : vector<16x96xf32> to vector<8x8xf32>
    %691 = vector.extract_strided_slice %565 {offsets = [8, 80], sizes = [8, 8], strides = [1, 1]} : vector<16x96xf32> to vector<8x8xf32>
    %692 = tpu.transpose %690, [1, 0] : vector<8x8xf32> -> vector<8x8xf32>
    %cst_236 = arith.constant dense<0.000000e+00> : vector<8x8xf32>
    %693 = tpu.matmul %689, %692, %cst_236 {dimension_numbers = #tpu.dot_dimension_numbers<[1], [0], [0], [1], [0, 0, 1, 1], [], []>} : vector<8x8xf32>, vector<8x8xf32>, vector<8x8xf32> -> vector<8x8xf32>
    %cst_237 = arith.constant 0.353553385 : f32
    %694 = vector.broadcast %cst_237 : f32 to vector<8x8xf32>
    %695 = arith.mulf %693, %694 : vector<8x8xf32>
    %696 = vector.broadcast %648 : vector<1x8xf32> to vector<8x8xf32>
    %697 = arith.addf %695, %696 : vector<8x8xf32>
    %cst_238 = arith.constant dense<0xFF800000> : vector<8xf32>
    %698 = vector.multi_reduction <maximumf>, %697, %cst_238 [1] : vector<8x8xf32> to vector<8xf32>
    %699 = vector.shape_cast %698 : vector<8xf32> to vector<8x1xf32>
    %700 = vector.broadcast %699 : vector<8x1xf32> to vector<8x8xf32>
    %701 = arith.subf %697, %700 : vector<8x8xf32>
    %702 = math.exp %701 : vector<8x8xf32>
    %cst_239 = arith.constant dense<0.000000e+00> : vector<8xf32>
    %703 = vector.multi_reduction <add>, %702, %cst_239 [1] : vector<8x8xf32> to vector<8xf32>
    %704 = vector.shape_cast %703 : vector<8xf32> to vector<8x1xf32>
    %705 = tpu.reciprocal %704 {approx = true} : vector<8x1xf32> -> vector<8x1xf32>
    %706 = vector.broadcast %705 : vector<8x1xf32> to vector<8x8xf32>
    %707 = arith.mulf %702, %706 : vector<8x8xf32>
    %cst_240 = arith.constant dense<0.000000e+00> : vector<8x8xf32>
    %708 = tpu.matmul %707, %691, %cst_240 {dimension_numbers = #tpu.dot_dimension_numbers<[1], [0], [0], [1], [0, 0, 1, 1], [], []>} : vector<8x8xf32>, vector<8x8xf32>, vector<8x8xf32> -> vector<8x8xf32>
    %709 = vector.extract_strided_slice %565 {offsets = [8, 24], sizes = [8, 8], strides = [1, 1]} : vector<16x96xf32> to vector<8x8xf32>
    %710 = vector.extract_strided_slice %565 {offsets = [8, 56], sizes = [8, 8], strides = [1, 1]} : vector<16x96xf32> to vector<8x8xf32>
    %711 = vector.extract_strided_slice %565 {offsets = [8, 88], sizes = [8, 8], strides = [1, 1]} : vector<16x96xf32> to vector<8x8xf32>
    %712 = tpu.transpose %710, [1, 0] : vector<8x8xf32> -> vector<8x8xf32>
    %cst_241 = arith.constant dense<0.000000e+00> : vector<8x8xf32>
    %713 = tpu.matmul %709, %712, %cst_241 {dimension_numbers = #tpu.dot_dimension_numbers<[1], [0], [0], [1], [0, 0, 1, 1], [], []>} : vector<8x8xf32>, vector<8x8xf32>, vector<8x8xf32> -> vector<8x8xf32>
    %cst_242 = arith.constant 0.353553385 : f32
    %714 = vector.broadcast %cst_242 : f32 to vector<8x8xf32>
    %715 = arith.mulf %713, %714 : vector<8x8xf32>
    %716 = vector.broadcast %648 : vector<1x8xf32> to vector<8x8xf32>
    %717 = arith.addf %715, %716 : vector<8x8xf32>
    %cst_243 = arith.constant dense<0xFF800000> : vector<8xf32>
    %718 = vector.multi_reduction <maximumf>, %717, %cst_243 [1] : vector<8x8xf32> to vector<8xf32>
    %719 = vector.shape_cast %718 : vector<8xf32> to vector<8x1xf32>
    %720 = vector.broadcast %719 : vector<8x1xf32> to vector<8x8xf32>
    %721 = arith.subf %717, %720 : vector<8x8xf32>
    %722 = math.exp %721 : vector<8x8xf32>
    %cst_244 = arith.constant dense<0.000000e+00> : vector<8xf32>
    %723 = vector.multi_reduction <add>, %722, %cst_244 [1] : vector<8x8xf32> to vector<8xf32>
    %724 = vector.shape_cast %723 : vector<8xf32> to vector<8x1xf32>
    %725 = tpu.reciprocal %724 {approx = true} : vector<8x1xf32> -> vector<8x1xf32>
    %726 = vector.broadcast %725 : vector<8x1xf32> to vector<8x8xf32>
    %727 = arith.mulf %722, %726 : vector<8x8xf32>
    %cst_245 = arith.constant dense<0.000000e+00> : vector<8x8xf32>
    %728 = tpu.matmul %727, %711, %cst_245 {dimension_numbers = #tpu.dot_dimension_numbers<[1], [0], [0], [1], [0, 0, 1, 1], [], []>} : vector<8x8xf32>, vector<8x8xf32>, vector<8x8xf32> -> vector<8x8xf32>
    %729 = tpu.concatenate %668, %688, %708, %728 in 1 : vector<8x8xf32>, vector<8x8xf32>, vector<8x8xf32>, vector<8x8xf32> -> vector<8x32xf32>
    %730 = tpu.concatenate %647, %729 in 0 : vector<8x32xf32>, vector<8x32xf32> -> vector<16x32xf32>
    %c2_246 = arith.constant 2 : index
    %c0_247 = arith.constant 0 : index
    %c0_248 = arith.constant 0 : index
    %731 = vector.load %arg6[%c2_246, %c0_247, %c0_248] : memref<3x32x32xbf16, #tpu.memory_space<vmem>>, vector<1x32x32xbf16>
    %732 = vector.shape_cast %731 : vector<1x32x32xbf16> to vector<32x32xbf16>
    %733 = arith.truncf %730 : vector<16x32xf32> to vector<16x32xbf16>
    %cst_249 = arith.constant dense<0.000000e+00> : vector<16x32xf32>
    %734 = tpu.matmul %733, %732, %cst_249 {dimension_numbers = #tpu.dot_dimension_numbers<[1], [0], [0], [1], [0, 0, 1, 1], [], []>} : vector<16x32xbf16>, vector<32x32xbf16>, vector<16x32xf32> -> vector<16x32xf32>
    %c2_250 = arith.constant 2 : index
    %c0_251 = arith.constant 0 : index
    %c0_252 = arith.constant 0 : index
    %735 = vector.load %arg7[%c2_250, %c0_251, %c0_252] : memref<3x1x32xf32, #tpu.memory_space<vmem>>, vector<1x1x32xf32>
    %736 = vector.shape_cast %735 : vector<1x1x32xf32> to vector<1x32xf32>
    %737 = vector.broadcast %736 : vector<1x32xf32> to vector<16x32xf32>
    %738 = arith.addf %734, %737 : vector<16x32xf32>
    %739 = arith.addf %738, %557 : vector<16x32xf32>
    %c2_253 = arith.constant 2 : index
    %c0_254 = arith.constant 0 : index
    %c0_255 = arith.constant 0 : index
    %740 = vector.load %arg8[%c2_253, %c0_254, %c0_255] : memref<3x1x32xf32, #tpu.memory_space<vmem>>, vector<1x1x32xf32>
    %741 = vector.shape_cast %740 : vector<1x1x32xf32> to vector<1x32xf32>
    %c2_256 = arith.constant 2 : index
    %c0_257 = arith.constant 0 : index
    %c0_258 = arith.constant 0 : index
    %742 = vector.load %arg9[%c2_256, %c0_257, %c0_258] : memref<3x1x32xf32, #tpu.memory_space<vmem>>, vector<1x1x32xf32>
    %743 = vector.shape_cast %742 : vector<1x1x32xf32> to vector<1x32xf32>
    %cst_259 = arith.constant dense<0.000000e+00> : vector<16xf32>
    %744 = vector.multi_reduction <add>, %739, %cst_259 [1] : vector<16x32xf32> to vector<16xf32>
    %745 = vector.shape_cast %744 : vector<16xf32> to vector<16x1xf32>
    %cst_260 = arith.constant 3.200000e+01 : f32
    %746 = vector.broadcast %cst_260 : f32 to vector<16x1xf32>
    %747 = arith.divf %745, %746 : vector<16x1xf32>
    %748 = vector.broadcast %747 : vector<16x1xf32> to vector<16x32xf32>
    %749 = arith.subf %739, %748 : vector<16x32xf32>
    %750 = arith.mulf %749, %749 : vector<16x32xf32>
    %cst_261 = arith.constant dense<0.000000e+00> : vector<16xf32>
    %751 = vector.multi_reduction <add>, %750, %cst_261 [1] : vector<16x32xf32> to vector<16xf32>
    %752 = vector.shape_cast %751 : vector<16xf32> to vector<16x1xf32>
    %cst_262 = arith.constant 3.200000e+01 : f32
    %753 = vector.broadcast %cst_262 : f32 to vector<16x1xf32>
    %754 = arith.divf %752, %753 : vector<16x1xf32>
    %755 = vector.broadcast %747 : vector<16x1xf32> to vector<16x32xf32>
    %756 = arith.subf %739, %755 : vector<16x32xf32>
    %cst_263 = arith.constant 9.99999996E-13 : f32
    %757 = vector.broadcast %cst_263 : f32 to vector<16x1xf32>
    %758 = arith.addf %754, %757 : vector<16x1xf32>
    %759 = math.rsqrt %758 : vector<16x1xf32>
    %760 = vector.broadcast %759 : vector<16x1xf32> to vector<16x32xf32>
    %761 = arith.mulf %756, %760 : vector<16x32xf32>
    %762 = vector.broadcast %741 : vector<1x32xf32> to vector<16x32xf32>
    %763 = arith.mulf %761, %762 : vector<16x32xf32>
    %764 = vector.broadcast %743 : vector<1x32xf32> to vector<16x32xf32>
    %765 = arith.addf %763, %764 : vector<16x32xf32>
    %c2_264 = arith.constant 2 : index
    %c0_265 = arith.constant 0 : index
    %c0_266 = arith.constant 0 : index
    %766 = vector.load %arg10[%c2_264, %c0_265, %c0_266] : memref<3x32x64xbf16, #tpu.memory_space<vmem>>, vector<1x32x64xbf16>
    %767 = vector.shape_cast %766 : vector<1x32x64xbf16> to vector<32x64xbf16>
    %768 = arith.truncf %765 : vector<16x32xf32> to vector<16x32xbf16>
    %cst_267 = arith.constant dense<0.000000e+00> : vector<16x64xf32>
    %769 = tpu.matmul %768, %767, %cst_267 {dimension_numbers = #tpu.dot_dimension_numbers<[1], [0], [0], [1], [0, 0, 1, 1], [], []>} : vector<16x32xbf16>, vector<32x64xbf16>, vector<16x64xf32> -> vector<16x64xf32>
    %c2_268 = arith.constant 2 : index
    %c0_269 = arith.constant 0 : index
    %c0_270 = arith.constant 0 : index
    %770 = vector.load %arg11[%c2_268, %c0_269, %c0_270] : memref<3x1x64xf32, #tpu.memory_space<vmem>>, vector<1x1x64xf32>
    %771 = vector.shape_cast %770 : vector<1x1x64xf32> to vector<1x64xf32>
    %772 = vector.broadcast %771 : vector<1x64xf32> to vector<16x64xf32>
    %773 = arith.addf %769, %772 : vector<16x64xf32>
    %cst_271 = arith.constant 5.000000e-01 : f32
    %774 = vector.broadcast %cst_271 : f32 to vector<16x64xf32>
    %775 = arith.mulf %774, %773 : vector<16x64xf32>
    %cst_272 = arith.constant 4.471500e-02 : f32
    %776 = vector.broadcast %cst_272 : f32 to vector<16x64xf32>
    %777 = arith.mulf %776, %773 : vector<16x64xf32>
    %778 = arith.mulf %777, %773 : vector<16x64xf32>
    %779 = arith.mulf %778, %773 : vector<16x64xf32>
    %780 = arith.addf %773, %779 : vector<16x64xf32>
    %cst_273 = arith.constant 0.797884583 : f32
    %781 = vector.broadcast %cst_273 : f32 to vector<16x64xf32>
    %782 = arith.mulf %781, %780 : vector<16x64xf32>
    %783 = math.tanh %782 : vector<16x64xf32>
    %cst_274 = arith.constant 1.000000e+00 : f32
    %784 = vector.broadcast %cst_274 : f32 to vector<16x64xf32>
    %785 = arith.addf %784, %783 : vector<16x64xf32>
    %786 = arith.mulf %775, %785 : vector<16x64xf32>
    %c2_275 = arith.constant 2 : index
    %c0_276 = arith.constant 0 : index
    %c0_277 = arith.constant 0 : index
    %787 = vector.load %arg12[%c2_275, %c0_276, %c0_277] : memref<3x64x32xbf16, #tpu.memory_space<vmem>>, vector<1x64x32xbf16>
    %788 = vector.shape_cast %787 : vector<1x64x32xbf16> to vector<64x32xbf16>
    %789 = arith.truncf %786 : vector<16x64xf32> to vector<16x64xbf16>
    %cst_278 = arith.constant dense<0.000000e+00> : vector<16x32xf32>
    %790 = tpu.matmul %789, %788, %cst_278 {dimension_numbers = #tpu.dot_dimension_numbers<[1], [0], [0], [1], [0, 0, 1, 1], [], []>} : vector<16x64xbf16>, vector<64x32xbf16>, vector<16x32xf32> -> vector<16x32xf32>
    %c2_279 = arith.constant 2 : index
    %c0_280 = arith.constant 0 : index
    %c0_281 = arith.constant 0 : index
    %791 = vector.load %arg13[%c2_279, %c0_280, %c0_281] : memref<3x1x32xf32, #tpu.memory_space<vmem>>, vector<1x1x32xf32>
    %792 = vector.shape_cast %791 : vector<1x1x32xf32> to vector<1x32xf32>
    %793 = vector.broadcast %792 : vector<1x32xf32> to vector<16x32xf32>
    %794 = arith.addf %790, %793 : vector<16x32xf32>
    %795 = arith.addf %794, %765 : vector<16x32xf32>
    %c2_282 = arith.constant 2 : index
    %c0_283 = arith.constant 0 : index
    %c0_284 = arith.constant 0 : index
    %796 = vector.load %arg14[%c2_282, %c0_283, %c0_284] : memref<3x1x32xf32, #tpu.memory_space<vmem>>, vector<1x1x32xf32>
    %797 = vector.shape_cast %796 : vector<1x1x32xf32> to vector<1x32xf32>
    %c2_285 = arith.constant 2 : index
    %c0_286 = arith.constant 0 : index
    %c0_287 = arith.constant 0 : index
    %798 = vector.load %arg15[%c2_285, %c0_286, %c0_287] : memref<3x1x32xf32, #tpu.memory_space<vmem>>, vector<1x1x32xf32>
    %799 = vector.shape_cast %798 : vector<1x1x32xf32> to vector<1x32xf32>
    %cst_288 = arith.constant dense<0.000000e+00> : vector<16xf32>
    %800 = vector.multi_reduction <add>, %795, %cst_288 [1] : vector<16x32xf32> to vector<16xf32>
    %801 = vector.shape_cast %800 : vector<16xf32> to vector<16x1xf32>
    %cst_289 = arith.constant 3.200000e+01 : f32
    %802 = vector.broadcast %cst_289 : f32 to vector<16x1xf32>
    %803 = arith.divf %801, %802 : vector<16x1xf32>
    %804 = vector.broadcast %803 : vector<16x1xf32> to vector<16x32xf32>
    %805 = arith.subf %795, %804 : vector<16x32xf32>
    %806 = arith.mulf %805, %805 : vector<16x32xf32>
    %cst_290 = arith.constant dense<0.000000e+00> : vector<16xf32>
    %807 = vector.multi_reduction <add>, %806, %cst_290 [1] : vector<16x32xf32> to vector<16xf32>
    %808 = vector.shape_cast %807 : vector<16xf32> to vector<16x1xf32>
    %cst_291 = arith.constant 3.200000e+01 : f32
    %809 = vector.broadcast %cst_291 : f32 to vector<16x1xf32>
    %810 = arith.divf %808, %809 : vector<16x1xf32>
    %811 = vector.broadcast %803 : vector<16x1xf32> to vector<16x32xf32>
    %812 = arith.subf %795, %811 : vector<16x32xf32>
    %cst_292 = arith.constant 9.99999996E-13 : f32
    %813 = vector.broadcast %cst_292 : f32 to vector<16x1xf32>
    %814 = arith.addf %810, %813 : vector<16x1xf32>
    %815 = math.rsqrt %814 : vector<16x1xf32>
    %816 = vector.broadcast %815 : vector<16x1xf32> to vector<16x32xf32>
    %817 = arith.mulf %812, %816 : vector<16x32xf32>
    %818 = vector.broadcast %797 : vector<1x32xf32> to vector<16x32xf32>
    %819 = arith.mulf %817, %818 : vector<16x32xf32>
    %820 = vector.broadcast %799 : vector<1x32xf32> to vector<16x32xf32>
    %821 = arith.addf %819, %820 : vector<16x32xf32>
    %c0_293 = arith.constant 0 : index
    %c0_294 = arith.constant 0 : index
    %822 = vector.load %arg16[%c0_293, %c0_294] : memref<32x2xf32, #tpu.memory_space<vmem>>, vector<32x2xf32>
    %c0_295 = arith.constant 0 : index
    %c0_296 = arith.constant 0 : index
    %823 = vector.load %arg17[%c0_295, %c0_296] : memref<1x2xf32, #tpu.memory_space<vmem>>, vector<1x2xf32>
    %824 = vector.extract_strided_slice %821 {offsets = [0, 0], sizes = [8, 32], strides = [1, 1]} : vector<16x32xf32> to vector<8x32xf32>
    %825 = vector.extract_strided_slice %25 {offsets = [0, 0], sizes = [1, 8], strides = [1, 1]} : vector<2x8xf32> to vector<1x8xf32>
    %cst_297 = arith.constant dense<0.000000e+00> : vector<1x32xf32>
    %826 = tpu.matmul %825, %824, %cst_297 {dimension_numbers = #tpu.dot_dimension_numbers<[1], [0], [0], [1], [0, 0, 1, 1], [], []>} : vector<1x8xf32>, vector<8x32xf32>, vector<1x32xf32> -> vector<1x32xf32>
    %827 = vector.shape_cast %825 : vector<1x8xf32> to vector<1x1x8xf32>
    %cst_298 = arith.constant dense<0.000000e+00> : vector<1xf32>
    %828 = vector.multi_reduction <add>, %827, %cst_298 [1, 2] : vector<1x1x8xf32> to vector<1xf32>
    %829 = vector.shape_cast %828 : vector<1xf32> to vector<1x1x1xf32>
    %830 = vector.extract %829[0, 0, 0] : f32 from vector<1x1x1xf32>
    %831 = vector.broadcast %830 : f32 to vector<1x1xf32>
    %cst_299 = arith.constant 9.99999971E-10 : f32
    %832 = vector.broadcast %cst_299 : f32 to vector<1x1xf32>
    %833 = arith.maximumf %831, %832 : vector<1x1xf32>
    %834 = tpu.reciprocal %833 {approx = true} : vector<1x1xf32> -> vector<1x1xf32>
    %835 = vector.broadcast %834 : vector<1x1xf32> to vector<1x32xf32>
    %836 = arith.mulf %826, %835 : vector<1x32xf32>
    %cst_300 = arith.constant dense<0.000000e+00> : vector<1x2xf32>
    %837 = tpu.matmul %836, %822, %cst_300 {dimension_numbers = #tpu.dot_dimension_numbers<[1], [0], [0], [1], [0, 0, 1, 1], [], []>} : vector<1x32xf32>, vector<32x2xf32>, vector<1x2xf32> -> vector<1x2xf32>
    %838 = arith.addf %837, %823 : vector<1x2xf32>
    %839 = vector.extract_strided_slice %821 {offsets = [8, 0], sizes = [8, 32], strides = [1, 1]} : vector<16x32xf32> to vector<8x32xf32>
    %840 = vector.extract_strided_slice %25 {offsets = [1, 0], sizes = [1, 8], strides = [1, 1]} : vector<2x8xf32> to vector<1x8xf32>
    %cst_301 = arith.constant dense<0.000000e+00> : vector<1x32xf32>
    %841 = tpu.matmul %840, %839, %cst_301 {dimension_numbers = #tpu.dot_dimension_numbers<[1], [0], [0], [1], [0, 0, 1, 1], [], []>} : vector<1x8xf32>, vector<8x32xf32>, vector<1x32xf32> -> vector<1x32xf32>
    %842 = vector.shape_cast %840 : vector<1x8xf32> to vector<1x1x8xf32>
    %cst_302 = arith.constant dense<0.000000e+00> : vector<1xf32>
    %843 = vector.multi_reduction <add>, %842, %cst_302 [1, 2] : vector<1x1x8xf32> to vector<1xf32>
    %844 = vector.shape_cast %843 : vector<1xf32> to vector<1x1x1xf32>
    %845 = vector.extract %844[0, 0, 0] : f32 from vector<1x1x1xf32>
    %846 = vector.broadcast %845 : f32 to vector<1x1xf32>
    %cst_303 = arith.constant 9.99999971E-10 : f32
    %847 = vector.broadcast %cst_303 : f32 to vector<1x1xf32>
    %848 = arith.maximumf %846, %847 : vector<1x1xf32>
    %849 = tpu.reciprocal %848 {approx = true} : vector<1x1xf32> -> vector<1x1xf32>
    %850 = vector.broadcast %849 : vector<1x1xf32> to vector<1x32xf32>
    %851 = arith.mulf %841, %850 : vector<1x32xf32>
    %cst_304 = arith.constant dense<0.000000e+00> : vector<1x2xf32>
    %852 = tpu.matmul %851, %822, %cst_304 {dimension_numbers = #tpu.dot_dimension_numbers<[1], [0], [0], [1], [0, 0, 1, 1], [], []>} : vector<1x32xf32>, vector<32x2xf32>, vector<1x2xf32> -> vector<1x2xf32>
    %853 = arith.addf %852, %823 : vector<1x2xf32>
    %854 = tpu.concatenate %838, %853 in 0 : vector<1x2xf32>, vector<1x2xf32> -> vector<2x2xf32>
    %c0_305 = arith.constant 0 : index
    %c0_306 = arith.constant 0 : index
    %855 = vector.load %arg18[%c0_305, %c0_306] : memref<2x2xf32, #tpu.memory_space<vmem>>, vector<2x2xf32>
    tpu.vector_store %arg18[%c0_305, %c0_306], %854 {strides = array<i32>} : memref<2x2xf32, #tpu.memory_space<vmem>>, vector<2x2xf32>,
    return
  }
}

</mosaic_0001>

<bundles_post_ra>
// kernel: llm_forward.1
= control target key start
LH: loop header
LB: loop body
LE: loop exit
PB: predicated region body
PF: predicated region fallthrough
CT: control target
= control target key end

     0   :  { %s7767_s0 = inlined_call_operand.vmem [shape: f32[16,32], index: 0, kind: input, shape index: {}]   ;;  %s7768_s1 = inlined_call_operand.vmem [shape: f32[2,8], index: 1, kind: input, shape index: {}]   ;;  %s7769_s2 = inlined_call_operand.vmem [shape: f32[1,32], index: 2, kind: input, shape index: {}]   ;;  %s7770_s3 = inlined_call_operand.vmem [shape: f32[1,32], index: 3, kind: input, shape index: {}]   ;;  %s7771_s4 = inlined_call_operand.vmem [shape: bf16[3,32,96], index: 4, kind: input, shape index: {}]   ;;  %s7772_s5 = inlined_call_operand.vmem [shape: f32[3,1,96], index: 5, kind: input, shape index: {}]   ;;  %s7773_s6 = inlined_call_operand.vmem [shape: bf16[3,32,32], index: 6, kind: input, shape index: {}]   ;;  %s7774_s7 = inlined_call_operand.vmem [shape: f32[3,1,32], index: 7, kind: input, shape index: {}]   ;;  %s7775_s8 = inlined_call_operand.vmem [shape: f32[3,1,32], index: 8, kind: input, shape index: {}]   ;;  %s7776_s9 = inlined_call_operand.vmem [shape: f32[3,1,32], index: 9, kind: input, shape index: {}]   ;;  %s7777_s10 = inlined_call_operand.vmem [shape: bf16[3,32,64], index: 10, kind: input, shape index: {}]   ;;  %s7778_s11 = inlined_call_operand.vmem [shape: f32[3,1,64], index: 11, kind: input, shape index: {}]   ;;  %s7779_s12 = inlined_call_operand.vmem [shape: bf16[3,64,32], index: 12, kind: input, shape index: {}]   ;;  %s7780_s13 = inlined_call_operand.vmem [shape: f32[3,1,32], index: 13, kind: input, shape index: {}]   ;;  %s7781_s14 = inlined_call_operand.vmem [shape: f32[3,1,32], index: 14, kind: input, shape index: {}]   ;;  %s7782_s15 = inlined_call_operand.vmem [shape: f32[3,1,32], index: 15, kind: input, shape index: {}]   ;;  %s7783_s16 = inlined_call_operand.vmem [shape: f32[32,2], index: 16, kind: input, shape index: {}]   ;;  %s7784_s17 = inlined_call_operand.vmem [shape: f32[1,2], index: 17, kind: input, shape index: {}]   ;;  %s7785_s18 = inlined_call_operand.hbm [shape: f32[2,2], index: 18, kind: output, shape index: {}]  }
   0x1   :  { %7816 = sst [smem:[#allocation5_spill]] %s7767_s0 }
   0x2   :  { %7817 = sst [smem:[#allocation6_spill]] %s7768_s1 }
   0x3   :  { %7818 = sst [smem:[#allocation7_spill]] %s7769_s2 }
   0x4   :  { %s7819_s29 = sld [smem:[#allocation5_spill]]  ;;  %vm65_vm0 = vcmask 261120  }
   0xa   :  { %v61_v0 = vld [vmem:[%s7819_s29] sm:$0xff]  ;;  %v62_v1 = vld [vmem:[%s7819_s29 + $0x8] sm:$0xff] }
   0xb   :  { %v66_v2 = vsel %vm65_vm0, %v61_v0, 0.0  ;;  %v69_v3 = vsel %vm65_vm0, %v62_v1, 0.0 }
   0xc   :  { %67 = vadd.xlane.f32.xlu0 %v66_v2 }
  0x10   :  { %70 = vadd.xlane.f32.xlu0 %v69_v3 }
  0x11   :  { %23 = vsyncpa [#allocation3], 0  ;;  %v6593_v14 = vld [vmem:[%s7771_s4] sm:$0xff]   ;;  %v6788_v15 = vmov 0.0   ;;  %vm6789_vm1 = vmmov 0   ;;  %v6594_v16 = vld [vmem:[%s7771_s4 + $0x8] sm:$0xff]   ;;  %v259_v42 = vlaneseq }
  0x12   :  { %6134 = vmatprep.subr.bf16.mxu0 %v6788_v15  ;;  %6138 = vmatprep.mubr.msk.bf16.mxu0 %vm6789_vm1, %v6788_v15  ;;  %s7820_s23 = sld [smem:[#allocation7_spill]]  ;;  %v5783_v29 = vld [vmem:[%s7770_s3] ss:$0 sm:$0xff]  ;;  %s7812_s3 = smov 96   ;;  %vm183_vm2 = vcmask 64512   ;;  %vm865_vm3 = vcmask 130048  }
  0x13   :  { %6135 = vmatpush3.bf16.msra.mxu0 %v6593_v14  ;;  %6142 = vmatprep.subr.mxu1 %v6788_v15  ;;  %v5784_v34 = vld [vmem:[%s7772_s5] ss:$0 sm:$0xff]  ;;  %s7814_s28 = smov 88   ;;  %s7806_s29 = smov 80   ;;  %v6972_v45 = vshrl.u32 %v259_v42, 7  ;;  %vm867_vm4 = vcmask 195584  }
  0x14   :  { %6136 = vmatprep.subr.bf16.mxu0 %v6788_v15  ;;  %6144 = vmatprep.mubr.msk.f32.mxu1 %vm6789_vm1, %v6788_v15  ;;  %s7802_s30 = smov 72   ;;  %s7810_s0 = smov 120   ;;  %vm1795_vm5 = vcmask 523264   ;;  %vm5512_vm6 = vcmask 57344   ;;  %vm5764_vm7 = vcmask 1040384   ;;  %vm5766_vm8 = vcmask 9216  }
  0x15   :  { %s7808_s19 = smov 112   ;;  %s7804_s1 = smov 104   ;;  %v261_v47 = vsub.s32 0, %v6972_v45 }
  0x16   :  { %s7821_s22 = sld [smem:[#allocation6_spill]]  ;;  %s7796_s2 = smov 64  }
  0x17   :  { %6137 = vmatpush3.bf16.msra.mxu0 %v6594_v16  ;;  %s7788_s24 = smov 40   ;;  %s7798_s25 = smov 48  }
  0x18   :  { %6157 = vmatprep.subr.mxu0 %v6788_v15  ;;  %v5782_v25 = vld [vmem:[%s7820_s23] ss:$0 sm:$0xff]  ;;  %s7800_s23 = smov 56   ;;  %s7792_s26 = smov 16  }
  0x19   :  { %s7790_s27 = smov 24   ;;  %s7829_s21 = smov 88  }
  0x1c   :  { %v109_v43 = vld [vmem:[%s7821_s22] sm:$0x3] }
  0x1d   :  { %v110_v44 = vsub.f32 1.0, %v109_v43 }
  0x1f   :  { %v6974_v46 = vmul.f32 -1e+09, %v110_v44 }
  0x21   :  { %v6978_v48 = vrot.slane %v6974_v46, %v261_v47 }
  0x99   :  { %v68_v4 = vpop.xlane.xlu0 %67 }
  0x9a   :  { %v73_v5 = vmul.f32 0.03125, %v68_v4 }
  0x9c   :  { %v75_v6 = vsub.f32 %v61_v0, %v73_v5 }
  0x9d   :  { %v71_v7 = vpop.xlane.xlu0 %70 }
  0x9e   :  { %v74_v8 = vmul.f32 0.03125, %v71_v7  ;;  %v77_v9 = vmul.f32 %v75_v6, %v75_v6 }
  0xa0   :  { %v76_v10 = vsub.f32 %v62_v1, %v74_v8  ;;  %v79_v11 = vsel %vm65_vm0, %v77_v9, 0.0 }
  0xa1   :  { %80 = vadd.xlane.f32.xlu1 %v79_v11 }
  0xa2   :  { %v78_v12 = vmul.f32 %v76_v10, %v76_v10 }
  0xa4   :  { %v82_v13 = vsel %vm65_vm0, %v78_v12, 0.0 }
  0xa5   :  { %83 = vadd.xlane.f32.xlu1 %v82_v13 }
 0x12e   :  { %v81_v17 = vpop.xlane.xlu1 %80 }
 0x12f   :  { %v85_v18 = vmul.f32 0.03125, %v81_v17 }
 0x131   :  { %v87_v19 = vadd.f32 1e-12, %v85_v18 }
 0x132   :  { %v84_v20 = vpop.xlane.xlu1 %83 }
 0x133   :  { %6623 = vrsqrt.f32 %v87_v19  ;;  %v86_v21 = vmul.f32 0.03125, %v84_v20 }
 0x135   :  { %v88_v22 = vadd.f32 1e-12, %v86_v21 }
 0x137   :  { %6625 = vrsqrt.f32 %v88_v22 }
 0x13d   :  { %v6624_v23 = vpop.eup %6623 }
 0x13e   :  { %v91_v24 = vmul.f32 %v6624_v23, %v75_v6 }
 0x140   :  { %v99_v28 = vmul.f32 %v5782_v25, %v91_v24  ;;  %v949_v24 = vsub.s32 1, %v6972_v45 }
 0x141   :  { %v6626_v26 = vpop.eup %6625 }
 0x142   :  { %v92_v27 = vmul.f32 %v6626_v26, %v76_v10  ;;  %v6931_v31 = vadd.f32 %v5783_v29, %v99_v28 }
 0x144   :  { %v100_v30 = vmul.f32 %v5782_v25, %v92_v27 }
 0x146   :  { %v6933_v32 = vadd.f32 %v5783_v29, %v100_v30  ;;  %v7046_v30 = vrot.slane %v6974_v46, %v949_v24 }
 0x148   :  { %v116_v33 = vpack.c.bf16 %v6933_v32, %v6931_v31 }
 0x14a   :  { %6139 = vmatmul.mubr.msk.bf16.vlgmr.msra.gmra.mrb[0].mxu0 %vm65_vm0, %v116_v33 }
 0x14b   :  { %6159 = vmatprep.mubr.msk.f32.mxu0 %vm6789_vm1, %v6788_v15 }
 0x21d   :  { %v173_v35 = vpop.f32.mrb[0].mxu0 }
 0x21e   :  { %v6943_v36 = vadd.f32 %v5784_v34, %v173_v35  ;;  %v6140_v37 = vpop.f32.mrb[1].mxu0 }
 0x21f   :  { %v176_v38 = vpop.f32.mrb[2].mxu0 }
 0x220   :  { %181 = vrot.lane.b32.xlu0 %v6943_v36, %s7812_s3  ;;  %v6141_v39 = vpop.f32.mrb[3].mxu0  ;;  %v6953_v40 = vadd.f32 %v5784_v34, %v176_v38 }
 0x224   :  { %353 = vrot.lane.b32.xlu0 %v6943_v36, %s7814_s28 }
 0x228   :  { %520 = vrot.lane.b32.xlu0 %v6943_v36, %s7806_s29 }
 0x22c   :  { %687 = vrot.lane.b32.xlu0 %v6943_v36, %s7802_s30 }
 0x230   :  { %870 = vrot.lane.b32.xlu0 %v6953_v40, %s7812_s3 }
 0x234   :  { %1039 = vrot.lane.b32.xlu0 %v6953_v40, %s7810_s0 }
 0x238   :  { %1206 = vrot.lane.b32.xlu0 %v6953_v40, %s7808_s19 }
 0x23c   :  { %1373 = vrot.lane.b32.xlu0 %v6953_v40, %s7804_s1 }
 0x292   :  { %v182_v41 = vpop.permute.xlu0 %181 }
 0x293   :  { %6143 = vmatpush3.xpose.msk.msra.mxu1 %vm183_vm2, %v182_v41 }
 0x294   :  { %6147 = vmatprep.subr.mxu1 %v6788_v15 }
 0x296   :  { %6145 = vmatmul.mubr.msk.f32.vlgmr.msra.gmra.mrb[0].mxu1 %vm183_vm2, %v6943_v36  ;;  %v354_v62 = vpop.permute.xlu0 %353 }
 0x297   :  { %6149 = vmatprep.mubr.msk.f32.mxu1 %vm6789_vm1, %v6788_v15 }
 0x29a   :  { %v521_v0 = vpop.permute.xlu0 %520 }
 0x29e   :  { %v688_v3 = vpop.permute.xlu0 %687 }
 0x2a2   :  { %v871_v5 = vpop.permute.xlu0 %870 }
 0x2a6   :  { %v1040_v7 = vpop.permute.xlu0 %1039 }
 0x2aa   :  { %v1207_v9 = vpop.permute.xlu0 %1206 }
 0x2ae   :  { %v1374_v11 = vpop.permute.xlu0 %1373 }
 0x369   :  { %v254_v49 = vpop.f32.mrb[0].mxu1 }
 0x36a   :  { %v258_v50 = vmul.f32 0.35355338, %v254_v49  ;;  %v6146_v51 = vpop.f32.mrb[1].mxu1 }
 0x36c   :  { %v263_v52 = vadd.f32 %v6978_v48, %v258_v50 }
 0x36e   :  { %v264_v53 = vsel %vm183_vm2, %v263_v52, -inf }
 0x36f   :  { %265 = vmax.xlane.f32.xlu1 %v264_v53 }
 0x380   :  { %275 = vrot.lane.b32.xlu1 %v6943_v36, %s7796_s2 }
 0x384   :  { %351 = vrot.lane.b32.xlu1 %v6943_v36, %s7810_s0 }
 0x3fc   :  { %v266_v54 = vpop.xlane.xlu1 %265 }
 0x3fd   :  { %v267_v55 = vsub.f32 %v263_v52, %v266_v54 }
 0x3ff   :  { %v268_v56 = vmul.f32 1.442695, %v267_v55 }
 0x400   :  { %v276_v57 = vpop.permute.xlu1 %275 }
 0x401   :  { %6627 = vpow2.f32 %v268_v56  ;;  %6148 = vmatpush3.msra.mxu1 %v276_v57 }
 0x402   :  { %6152 = vmatprep.subr.mxu1 %v6788_v15 }
 0x404   :  { %v352_v60 = vpop.permute.xlu1 %351 }
 0x40b   :  { %v6628_v58 = vpop.eup %6627 }
 0x40c   :  { %v270_v59 = vsel %vm183_vm2, %v6628_v58, 0.0 }
 0x40d   :  { %271 = vadd.xlane.f32.xlu1 %v270_v59 }
 0x41e   :  { %518 = vrot.lane.b32.xlu1 %v6943_v36, %s7808_s19 }
 0x422   :  { %685 = vrot.lane.b32.xlu1 %v6943_v36, %s7804_s1 }
 0x426   :  { %1041 = vrot.lane.b32.xlu1 %v6953_v40, %s7814_s28 }
 0x42a   :  { %1208 = vrot.lane.b32.xlu1 %v6953_v40, %s7806_s29 }
 0x42e   :  { %1375 = vrot.lane.b32.xlu1 %v6953_v40, %s7802_s30 }
 0x49a   :  { %v272_v61 = vpop.xlane.xlu1 %271 }
 0x49b   :  { %6629 = vrcp.f32 %v272_v61 }
 0x49e   :  { %v519_v2 = vpop.permute.xlu1 %518 }
 0x4a2   :  { %v686_v4 = vpop.permute.xlu1 %685 }
 0x4a5   :  { %v6630_v63 = vpop.eup %6629 }
 0x4a6   :  { %v274_v1 = vmul.f32 %v6630_v63, %v6628_v58  ;;  %v1042_v6 = vpop.permute.xlu1 %1041 }
 0x4a8   :  { %6150 = vmatmul.mubr.msk.f32.vlgmr.msra.gmra.mrb[2].mxu1 %vm183_vm2, %v274_v1 }
 0x4a9   :  { %6153 = vmatpush3.xpose.msk.msra.mxu1 %vm183_vm2, %v354_v62  ;;  %6154 = vmatprep.mubr.msk.f32.mxu1 %vm6789_vm1, %v6788_v15 }
 0x4aa   :  { %6162 = vmatprep.subr.mxu1 %v6788_v15  ;;  %v1209_v8 = vpop.permute.xlu1 %1208 }
 0x4ac   :  { %6155 = vmatmul.mubr.msk.f32.vlgmr.msra.gmra.mrb[4].mxu1 %vm183_vm2, %v352_v60 }
 0x4ad   :  { %6163 = vmatpush3.xpose.msk.msra.mxu1 %vm183_vm2, %v521_v0  ;;  %6164 = vmatprep.mubr.msk.f32.mxu1 %vm6789_vm1, %v6788_v15 }
 0x4ae   :  { %6172 = vmatprep.subr.mxu1 %v6788_v15  ;;  %v1376_v10 = vpop.permute.xlu1 %1375 }
 0x4b0   :  { %6165 = vmatmul.mubr.msk.f32.vlgmr.msra.gmra.mrb[6].mxu1 %vm183_vm2, %v519_v2 }
 0x4b1   :  { %6173 = vmatpush3.xpose.msk.msra.mxu1 %vm183_vm2, %v688_v3  ;;  %6174 = vmatprep.mubr.msk.f32.mxu1 %vm6789_vm1, %v6788_v15 }
 0x4b2   :  { %6182 = vmatprep.subr.mxu1 %v6788_v15 }
 0x4b4   :  { %6175 = vmatmul.mubr.msk.f32.vlgmr.msra.gmra.mrb[8].mxu1 %vm183_vm2, %v686_v4 }
 0x4b5   :  { %6183 = vmatpush3.xpose.msk.msra.mxu1 %vm183_vm2, %v871_v5  ;;  %6184 = vmatprep.mubr.msk.f32.mxu1 %vm6789_vm1, %v6788_v15 }
 0x4b6   :  { %6192 = vmatprep.subr.mxu1 %v6788_v15 }
 0x4b8   :  { %6185 = vmatmul.mubr.msk.f32.vlgmr.msra.gmra.mrb[10].mxu1 %vm183_vm2, %v6953_v40 }
 0x4b9   :  { %6193 = vmatpush3.xpose.msk.msra.mxu1 %vm183_vm2, %v1042_v6  ;;  %6194 = vmatprep.mubr.msk.f32.mxu1 %vm6789_vm1, %v6788_v15 }
 0x4ba   :  { %6202 = vmatprep.subr.mxu1 %v6788_v15 }
 0x4bc   :  { %6195 = vmatmul.mubr.msk.f32.vlgmr.msra.gmra.mrb[12].mxu1 %vm183_vm2, %v1040_v7 }
 0x4bd   :  { %6203 = vmatpush3.xpose.msk.msra.mxu1 %vm183_vm2, %v1209_v8  ;;  %6204 = vmatprep.mubr.msk.f32.mxu1 %vm6789_vm1, %v6788_v15 }
 0x4be   :  { %6212 = vmatprep.subr.mxu1 %v6788_v15 }
 0x4c0   :  { %6205 = vmatmul.mubr.msk.f32.vlgmr.msra.gmra.mrb[14].mxu1 %vm183_vm2, %v1207_v9 }
 0x4c1   :  { %6213 = vmatpush3.xpose.msk.msra.mxu1 %vm183_vm2, %v1376_v10  ;;  %6214 = vmatprep.mubr.msk.f32.mxu1 %vm6789_vm1, %v6788_v15 }
 0x4c2   :  { %6222 = vmatprep.subr.bf16.mxu1 %v6788_v15 }
 0x4c4   :  { %6215 = vmatmul.mubr.msk.f32.vlgmr.msra.gmra.mrb[16].mxu1 %vm183_vm2, %v1374_v11 }
 0x4c5   :  { %6226 = vmatprep.mubr.msk.bf16.mxu1 %vm6789_vm1, %v6788_v15 }
 0x57b   :  { %v7037_v12 = vpop.f32.mrb[2].mxu1 }
 0x57c   :  { %v6151_v13 = vpop.f32.mrb[3].mxu1 }
 0x57f   :  { %v425_v14 = vpop.f32.mrb[4].mxu1 }
 0x580   :  { %v429_v16 = vmul.f32 0.35355338, %v425_v14  ;;  %v6156_v17 = vpop.f32.mrb[5].mxu1 }
 0x582   :  { %v430_v18 = vadd.f32 %v429_v16, %v6978_v48 }
 0x583   :  { %v592_v19 = vpop.f32.mrb[6].mxu1 }
 0x584   :  { %v596_v20 = vmul.f32 0.35355338, %v592_v19  ;;  %v6166_v21 = vpop.f32.mrb[7].mxu1  ;;  %v431_v22 = vsel %vm183_vm2, %v430_v18, -inf }
 0x585   :  { %432 = vmax.xlane.f32.xlu1 %v431_v22 }
 0x586   :  { %v597_v23 = vadd.f32 %v596_v20, %v6978_v48 }
 0x587   :  { %v759_v25 = vpop.f32.mrb[8].mxu1 }
 0x588   :  { %v763_v26 = vmul.f32 0.35355338, %v759_v25  ;;  %v6176_v27 = vpop.f32.mrb[9].mxu1  ;;  %v598_v28 = vsel %vm183_vm2, %v597_v23, -inf }
 0x589   :  { %599 = vmax.xlane.f32.xlu0 %v598_v28 }
 0x58a   :  { %v764_v29 = vadd.f32 %v763_v26, %v6978_v48 }
 0x58b   :  { %v942_v33 = vpop.f32.mrb[10].mxu1 }
 0x58c   :  { %v946_v34 = vmul.f32 0.35355338, %v942_v33  ;;  %v6186_v35 = vpop.f32.mrb[11].mxu1  ;;  %v765_v37 = vsel %vm183_vm2, %v764_v29, -inf }
 0x58d   :  { %766 = vmax.xlane.f32.xlu0 %v765_v37 }
 0x58e   :  { %v951_v38 = vadd.f32 %v7046_v30, %v946_v34 }
 0x58f   :  { %v1113_v39 = vpop.f32.mrb[12].mxu1 }
 0x590   :  { %v1117_v41 = vmul.f32 0.35355338, %v1113_v39  ;;  %v6196_v42 = vpop.f32.mrb[13].mxu1  ;;  %v952_v43 = vsel %vm183_vm2, %v951_v38, -inf }
 0x591   :  { %953 = vmax.xlane.f32.xlu0 %v952_v43 }
 0x592   :  { %v1118_v44 = vadd.f32 %v1117_v41, %v7046_v30 }
 0x593   :  { %v1280_v45 = vpop.f32.mrb[14].mxu1 }
 0x594   :  { %v1284_v47 = vmul.f32 0.35355338, %v1280_v45  ;;  %v6206_v46 = vpop.f32.mrb[15].mxu1  ;;  %v1119_v49 = vsel %vm183_vm2, %v1118_v44, -inf }
 0x595   :  { %1120 = vmax.xlane.f32.xlu1 %v1119_v49 }
 0x596   :  { %v1285_v50 = vadd.f32 %v1284_v47, %v7046_v30 }
 0x597   :  { %v1447_v51 = vpop.f32.mrb[16].mxu1 }
 0x598   :  { %v6216_v52 = vpop.f32.mrb[17].mxu1  ;;  %v1286_v53 = vsel %vm183_vm2, %v1285_v50, -inf  ;;  %v1451_v54 = vmul.f32 0.35355338, %v1447_v51 }
 0x599   :  { %1287 = vmax.xlane.f32.xlu0 %v1286_v53 }
 0x59a   :  { %v1452_v55 = vadd.f32 %v1451_v54, %v7046_v30 }
 0x59c   :  { %v1453_v56 = vsel %vm183_vm2, %v1452_v55, -inf }
 0x5a6   :  { %442 = vrot.lane.b32.xlu1 %v6943_v36, %s7800_s23 }
 0x5ca   :  { %1454 = vmax.xlane.f32.xlu1 %v1453_v56 }
 0x5db   :  { %776 = vrot.lane.b32.xlu1 %v6943_v36, %s7788_s24 }
 0x5df   :  { %963 = vrot.lane.b32.xlu1 %v6953_v40, %s7796_s2  ;;  %s7824_s2 = smov 64  }
 0x612   :  { %v433_v57 = vpop.xlane.xlu1 %432 }
 0x613   :  { %v434_v58 = vsub.f32 %v430_v18, %v433_v57 }
 0x615   :  { %v435_v59 = vmul.f32 1.442695, %v434_v58 }
 0x616   :  { %v600_v60 = vpop.xlane.xlu0 %599 }
 0x617   :  { %6631 = vpow2.f32 %v435_v59  ;;  %v601_v61 = vsub.f32 %v597_v23, %v600_v60 }
 0x619   :  { %v602_v62 = vmul.f32 1.442695, %v601_v61 }
 0x61a   :  { %v767_v5 = vpop.xlane.xlu0 %766 }
 0x61b   :  { %6633 = vpow2.f32 %v602_v62  ;;  %v768_v6 = vsub.f32 %v764_v29, %v767_v5 }
 0x61d   :  { %v769_v9 = vmul.f32 1.442695, %v768_v6 }
 0x61e   :  { %v954_v7 = vpop.xlane.xlu0 %953 }
 0x61f   :  { %v955_v8 = vsub.f32 %v951_v38, %v954_v7  ;;  %6635 = vpow2.f32 %v769_v9  ;;  %v6596_v7 = vld [vmem:[%s7773_s6 + $0x8] sm:$0xff]  }
 0x621   :  { %v6632_v63 = vpop.eup %6631  ;;  %v956_v13 = vmul.f32 1.442695, %v955_v8 }
 0x622   :  { %v1121_v0 = vpop.xlane.xlu1 %1120  ;;  %v437_v1 = vsel %vm183_vm2, %v6632_v63, 0.0 }
 0x623   :  { %438 = vadd.xlane.f32.xlu0 %v437_v1  ;;  %v1122_v10 = vsub.f32 %v1118_v44, %v1121_v0  ;;  %6637 = vpow2.f32 %v956_v13 }
 0x625   :  { %v6634_v2 = vpop.eup %6633  ;;  %v1123_v14 = vmul.f32 1.442695, %v1122_v10 }
 0x626   :  { %v443_v3 = vpop.permute.xlu1 %442  ;;  %v604_v4 = vsel %vm183_vm2, %v6634_v2, 0.0  ;;  %v1288_v11 = vpop.xlane.xlu0 %1287 }
 0x627   :  { %6158 = vmatpush3.msra.mxu0 %v443_v3  ;;  %605 = vadd.xlane.f32.xlu1 %v604_v4  ;;  %v1289_v16 = vsub.f32 %v1285_v50, %v1288_v11  ;;  %6639 = vpow2.f32 %v1123_v14  ;;  %v6595_v4 = vld [vmem:[%s7773_s6] sm:$0xff]  }
 0x628   :  { %6167 = vmatprep.subr.mxu0 %v6788_v15  ;;  %6223 = vmatpush3.bf16.msra.mxu1 %v6595_v4 }
 0x629   :  { %v1290_v17 = vmul.f32 1.442695, %v1289_v16  ;;  %v6636_v18 = vpop.eup %6635  ;;  %6224 = vmatprep.subr.bf16.mxu1 %v6788_v15 }
 0x62b   :  { %6641 = vpow2.f32 %v1290_v17 }
 0x62c   :  { %6225 = vmatpush3.bf16.msra.mxu1 %v6596_v7  ;;  %v5817_v7 = vld [vmem:[%s7776_s9] ss:$0 sm:$0xff] }
 0x62d   :  { %v6638_v19 = vpop.eup %6637  ;;  %6238 = vmatprep.subr.bf16.mxu1 %v6788_v15 }
 0x62e   :  { %v958_v25 = vsel %vm183_vm2, %v6638_v19, 0.0 }
 0x631   :  { %v6640_v21 = vpop.eup %6639 }
 0x632   :  { %v1125_v24 = vsel %vm183_vm2, %v6640_v21, 0.0 }
 0x635   :  { %v6642_v26 = vpop.eup %6641 }
 0x636   :  { %v1292_v27 = vsel %vm183_vm2, %v6642_v26, 0.0 }
 0x638   :  { %1130 = vrot.lane.b32.xlu1 %v6953_v40, %s7800_s23  ;;  %s7827_s23 = smov 16  }
 0x639   :  { %609 = vrot.lane.b32.xlu0 %v6943_v36, %s7798_s25  ;;  %v771_v36 = vsel %vm183_vm2, %v6636_v18, 0.0 }
 0x657   :  { %v1455_v20 = vpop.xlane.xlu1 %1454 }
 0x658   :  { %v1456_v22 = vsub.f32 %v1452_v55, %v1455_v20  ;;  %772 = vadd.xlane.f32.xlu0 %v771_v36 }
 0x65a   :  { %v1457_v23 = vmul.f32 1.442695, %v1456_v22 }
 0x65b   :  { %v777_v33 = vpop.permute.xlu1 %776 }
 0x65c   :  { %6643 = vpow2.f32 %v1457_v23  ;;  %1126 = vadd.xlane.f32.xlu0 %v1125_v24  ;;  %959 = vadd.xlane.f32.xlu1 %v958_v25 }
 0x65f   :  { %v964_v34 = vpop.permute.xlu1 %963 }
 0x660   :  { %1293 = vadd.xlane.f32.xlu1 %v1292_v27 }
 0x666   :  { %v6644_v28 = vpop.eup %6643 }
 0x667   :  { %v1459_v29 = vsel %vm183_vm2, %v6644_v28, 0.0 }
 0x668   :  { %1460 = vadd.xlane.f32.xlu0 %v1459_v29 }
 0x671   :  { %1464 = vrot.lane.b32.xlu1 %v6953_v40, %s7788_s24  ;;  %s7794_s24 = smov 8  }
 0x67e   :  { %1297 = vrot.lane.b32.xlu0 %v6953_v40, %s7798_s25  ;;  %s7828_s25 = smov 24  }
 0x6b0   :  { %v439_v35 = vpop.xlane.xlu0 %438 }
 0x6b1   :  { %6645 = vrcp.f32 %v439_v35 }
 0x6b4   :  { %v606_v37 = vpop.xlane.xlu1 %605  ;;  %v610_v41 = vpop.permute.xlu0 %609 }
 0x6b5   :  { %6647 = vrcp.f32 %v606_v37 }
 0x6b8   :  { %v1131_v40 = vpop.permute.xlu1 %1130 }
 0x6bb   :  { %v6646_v38 = vpop.eup %6645 }
 0x6bc   :  { %v441_v39 = vmul.f32 %v6646_v38, %v6632_v63 }
 0x6be   :  { %6160 = vmatmul.mubr.msk.f32.vlgmr.msra.gmra.mrb[4].mxu0 %vm183_vm2, %v441_v39 }
 0x6bf   :  { %v6648_v42 = vpop.eup %6647  ;;  %6168 = vmatpush3.msra.mxu0 %v610_v41  ;;  %6169 = vmatprep.mubr.msk.f32.mxu0 %vm6789_vm1, %v6788_v15 }
 0x6c0   :  { %6177 = vmatprep.subr.mxu0 %v6788_v15  ;;  %v608_v43 = vmul.f32 %v6648_v42, %v6634_v2 }
 0x6c2   :  { %6170 = vmatmul.mubr.msk.f32.vlgmr.msra.gmra.mrb[6].mxu0 %vm183_vm2, %v608_v43 }
 0x6c3   :  { %6178 = vmatpush3.msra.mxu0 %v777_v33  ;;  %6179 = vmatprep.mubr.msk.f32.mxu0 %vm6789_vm1, %v6788_v15 }
 0x6c4   :  { %6187 = vmatprep.subr.mxu0 %v6788_v15 }
 0x6e5   :  { %v773_v44 = vpop.xlane.xlu0 %772 }
 0x6e6   :  { %6649 = vrcp.f32 %v773_v44 }
 0x6e9   :  { %v960_v45 = vpop.xlane.xlu1 %959  ;;  %v1127_v47 = vpop.xlane.xlu0 %1126 }
 0x6ea   :  { %6651 = vrcp.f32 %v960_v45 }
 0x6eb   :  { %6653 = vrcp.f32 %v1127_v47 }
 0x6ed   :  { %v1294_v46 = vpop.xlane.xlu1 %1293 }
 0x6ee   :  { %6655 = vrcp.f32 %v1294_v46 }
 0x6f0   :  { %v6650_v49 = vpop.eup %6649 }
 0x6f1   :  { %v775_v50 = vmul.f32 %v6650_v49, %v6636_v18  ;;  %v1465_v59 = vpop.permute.xlu1 %1464 }
 0x6f3   :  { %6180 = vmatmul.mubr.msk.f32.vlgmr.msra.gmra.mrb[8].mxu0 %vm183_vm2, %v775_v50 }
 0x6f4   :  { %v6652_v51 = vpop.eup %6651  ;;  %6188 = vmatpush3.msra.mxu0 %v964_v34  ;;  %6189 = vmatprep.mubr.msk.f32.mxu0 %vm6789_vm1, %v6788_v15 }
 0x6f5   :  { %v1461_v52 = vpop.xlane.xlu0 %1460  ;;  %6197 = vmatprep.subr.mxu0 %v6788_v15  ;;  %v962_v53 = vmul.f32 %v6652_v51, %v6638_v19  ;;  %v6654_v54 = vpop.eup %6653 }
 0x6f6   :  { %6657 = vrcp.f32 %v1461_v52  ;;  %v1129_v56 = vmul.f32 %v6654_v54, %v6640_v21 }
 0x6f7   :  { %6190 = vmatmul.mubr.msk.f32.vlgmr.msra.gmra.mrb[10].mxu0 %vm183_vm2, %v962_v53 }
 0x6f8   :  { %6198 = vmatpush3.msra.mxu0 %v1131_v40  ;;  %6199 = vmatprep.mubr.msk.f32.mxu0 %vm6789_vm1, %v6788_v15  ;;  %v6656_v57 = vpop.eup %6655 }
 0x6f9   :  { %v1298_v55 = vpop.permute.xlu0 %1297  ;;  %6207 = vmatprep.subr.mxu0 %v6788_v15  ;;  %v1296_v58 = vmul.f32 %v6656_v57, %v6642_v26 }
 0x6fb   :  { %6200 = vmatmul.mubr.msk.f32.vlgmr.msra.gmra.mrb[12].mxu0 %vm183_vm2, %v1129_v56 }
 0x6fc   :  { %6208 = vmatpush3.msra.mxu0 %v1298_v55  ;;  %6209 = vmatprep.mubr.msk.f32.mxu0 %vm6789_vm1, %v6788_v15 }
 0x6fd   :  { %6217 = vmatprep.subr.mxu0 %v6788_v15 }
 0x6ff   :  { %6210 = vmatmul.mubr.msk.f32.vlgmr.msra.gmra.mrb[14].mxu0 %vm183_vm2, %v1296_v58  ;;  %v6598_v58 = vld [vmem:[%s7777_s10 + $0x8] sm:$0xff]  }
 0x700   :  { %v6658_v60 = vpop.eup %6657  ;;  %6218 = vmatpush3.msra.mxu0 %v1465_v59  ;;  %6219 = vmatprep.mubr.msk.f32.mxu0 %vm6789_vm1, %v6788_v15 }
 0x701   :  { %v1463_v61 = vmul.f32 %v6658_v60, %v6644_v28  ;;  %6230 = vmatprep.subr.bf16.mxu0 %v6788_v15 }
 0x703   :  { %6220 = vmatmul.mubr.msk.f32.vlgmr.msra.gmra.mrb[16].mxu0 %vm183_vm2, %v1463_v61 }
 0x704   :  { %6234 = vmatprep.mubr.msk.bf16.mxu0 %vm6789_vm1, %v6788_v15 }
 0x791   :  { %v514_v62 = vpop.f32.mrb[4].mxu0 }
 0x792   :  { %v6161_v63 = vpop.f32.mrb[5].mxu0 }
 0x795   :  { %v681_v0 = vpop.f32.mrb[6].mxu0 }
 0x796   :  { %v6171_v1 = vpop.f32.mrb[7].mxu0 }
 0x7c6   :  { %v848_v2 = vpop.f32.mrb[8].mxu0 }
 0x7c7   :  { %v6181_v3 = vpop.f32.mrb[9].mxu0 }
 0x7c8   :  { %v5816_v3 = vld [vmem:[%s7775_s8] ss:$0 sm:$0xff] }
 0x7ca   :  { %v1035_v5 = vpop.f32.mrb[10].mxu0 }
 0x7cb   :  { %v6191_v6 = vpop.f32.mrb[11].mxu0 }
 0x7ce   :  { %v1202_v8 = vpop.f32.mrb[12].mxu0 }
 0x7cf   :  { %v6548_v9 = vpack.i.bf16 %v1202_v8, %v514_v62  ;;  %v6201_v10 = vpop.f32.mrb[13].mxu0 }
 0x7d1   :  { %6549 = vrot.lane.b32.xlu0 %v6548_v9, %s7794_s24  ;;  %s7825_s24 = smov 40  }
 0x7d2   :  { %v1369_v11 = vpop.f32.mrb[14].mxu0 }
 0x7d3   :  { %v6553_v13 = vpack.i.bf16 %v1369_v11, %v681_v0  ;;  %v6211_v14 = vpop.f32.mrb[15].mxu0 }
 0x7d4   :  { %v6600_v14 = vld [vmem:[%s7779_s12 + $0x8] sm:$0xff]  }
 0x7d5   :  { %6554 = vrot.lane.b32.xlu1 %v6553_v13, %s7792_s26  ;;  %v6599_v13 = vld [vmem:[%s7779_s12] sm:$0xff]   ;;  %s7822_s26 = smov 56  }
 0x7d6   :  { %v1536_v16 = vpop.f32.mrb[16].mxu0 }
 0x7d7   :  { %v6558_v17 = vpack.i.bf16 %v1536_v16, %v848_v2  ;;  %v6221_v18 = vpop.f32.mrb[17].mxu0  ;;  %v6601_v16 = vld [vmem:[%s7779_s12 + $0x10] sm:$0xff]  }
 0x7d8   :  { %v5818_v18 = vld [vmem:[%s7778_s11] ss:$0 sm:$0xff] }
 0x7d9   :  { %6559 = vrot.lane.b32.xlu0 %v6558_v17, %s7790_s27  ;;  %v6602_v17 = vld [vmem:[%s7779_s12 + $0x18] sm:$0xff]   ;;  %s7823_s27 = smov 48  }
 0x843   :  { %v6550_v19 = vpop.permute.xlu0 %6549 }
 0x844   :  { %v6552_v36 = vunpack.i.h.bf16 %v6550_v19  ;;  %v6551_v21 = vunpack.i.l.bf16 %v6550_v19 }
 0x846   :  { %v1552_v25 = vsel %vm183_vm2, %v1035_v5, %v6552_v36  ;;  %v864_v26 = vsel %vm183_vm2, %v7037_v12, %v6551_v21  ;;  %v5812_v12 = vld [vmem:[%s7774_s7] ss:$0 sm:$0xff] }
 0x847   :  { %v6555_v20 = vpop.permute.xlu1 %6554 }
 0x848   :  { %v6557_v22 = vunpack.i.h.bf16 %v6555_v20  ;;  %v6556_v23 = vunpack.i.l.bf16 %v6555_v20 }
 0x84a   :  { %v1553_v29 = vsel %vm865_vm3, %v1552_v25, %v6557_v22  ;;  %v866_v33 = vsel %vm865_vm3, %v864_v26, %v6556_v23 }
 0x84b   :  { %v6560_v24 = vpop.permute.xlu0 %6559 }
 0x84c   :  { %v6562_v27 = vunpack.i.h.bf16 %v6560_v24  ;;  %v6561_v28 = vunpack.i.l.bf16 %v6560_v24 }
 0x84e   :  { %v1554_v34 = vsel %vm867_vm4, %v1553_v29, %v6562_v27  ;;  %v868_v35 = vsel %vm867_vm4, %v866_v33, %v6561_v28 }
 0x84f   :  { %v1559_v37 = vpack.c.bf16 %v1554_v34, %v868_v35 }
 0x851   :  { %6227 = vmatmul.mubr.msk.bf16.vlgmr.msra.gmra.mrb[20].mxu1 %vm65_vm0, %v1559_v37 }
 0x852   :  { %6246 = vmatprep.mubr.msk.bf16.mxu1 %vm6789_vm1, %v6788_v15  ;;  %6239 = vmatpush3.bf16.msra.mxu1 %v6599_v13 }
 0x853   :  { %6240 = vmatprep.subr.bf16.mxu1 %v6788_v15 }
 0x856   :  { %6241 = vmatpush3.bf16.msra.mxu1 %v6600_v14 }
 0x857   :  { %6242 = vmatprep.subr.bf16.mxu1 %v6788_v15 }
 0x85a   :  { %6243 = vmatpush3.bf16.msra.mxu1 %v6601_v16 }
 0x85b   :  { %6244 = vmatprep.subr.bf16.mxu1 %v6788_v15 }
 0x85e   :  { %6245 = vmatpush3.bf16.msra.mxu1 %v6602_v17 }
 0x85f   :  { %6268 = vmatprep.subr.mxu1 %v6788_v15 }
 0x924   :  { %v1616_v38 = vpop.f32.mrb[20].mxu1 }
 0x925   :  { %v1617_v39 = vadd.f32 %v5812_v12, %v1616_v38  ;;  %v6228_v41 = vpop.f32.mrb[21].mxu1 }
 0x926   :  { %v1619_v42 = vpop.f32.mrb[22].mxu1 }
 0x927   :  { %v1620_v43 = vadd.f32 %v5812_v12, %v1619_v42  ;;  %v6229_v40 = vpop.f32.mrb[23].mxu1  ;;  %v1623_v44 = vadd.f32 %v1617_v39, %v6931_v31 }
 0x929   :  { %v1627_v45 = vsel %vm65_vm0, %v1623_v44, 0.0  ;;  %v1624_v47 = vadd.f32 %v1620_v43, %v6933_v32  ;;  %v6597_v32 = vld [vmem:[%s7777_s10] sm:$0xff]  }
 0x92a   :  { %1628 = vadd.xlane.f32.xlu1 %v1627_v45  ;;  %6231 = vmatpush3.bf16.msra.mxu0 %v6597_v32 }
 0x92b   :  { %v1630_v46 = vsel %vm65_vm0, %v1624_v47, 0.0  ;;  %6232 = vmatprep.subr.bf16.mxu0 %v6788_v15 }
 0x92c   :  { %1631 = vadd.xlane.f32.xlu0 %v1630_v46 }
 0x92e   :  { %6233 = vmatpush3.bf16.msra.mxu0 %v6598_v58 }
 0x92f   :  { %6250 = vmatprep.subr.bf16.mxu0 %v6788_v15 }
 0x9b7   :  { %v1629_v49 = vpop.xlane.xlu1 %1628 }
 0x9b8   :  { %v1633_v50 = vmul.f32 0.03125, %v1629_v49 }
 0x9b9   :  { %v1632_v51 = vpop.xlane.xlu0 %1631 }
 0x9ba   :  { %v1635_v52 = vsub.f32 %v1623_v44, %v1633_v50  ;;  %v1634_v53 = vmul.f32 0.03125, %v1632_v51 }
 0x9bc   :  { %v1636_v54 = vsub.f32 %v1624_v47, %v1634_v53  ;;  %v1637_v55 = vmul.f32 %v1635_v52, %v1635_v52  ;;  %v5822_v47 = vld [vmem:[%s7780_s13] ss:$0 sm:$0xff] }
 0x9be   :  { %v1639_v56 = vsel %vm65_vm0, %v1637_v55, 0.0  ;;  %v1638_v57 = vmul.f32 %v1636_v54, %v1636_v54 }
 0x9bf   :  { %1640 = vadd.xlane.f32.xlu0 %v1639_v56 }
 0x9c0   :  { %v1642_v31 = vsel %vm65_vm0, %v1638_v57, 0.0 }
 0x9c3   :  { %1643 = vadd.xlane.f32.xlu0 %v1642_v31 }
 0xa4c   :  { %v1641_v59 = vpop.xlane.xlu0 %1640 }
 0xa4d   :  { %v1645_v60 = vmul.f32 0.03125, %v1641_v59 }
 0xa4f   :  { %v1647_v61 = vadd.f32 1e-12, %v1645_v60 }
 0xa50   :  { %v1644_v62 = vpop.xlane.xlu0 %1643 }
 0xa51   :  { %6659 = vrsqrt.f32 %v1647_v61  ;;  %v1646_v63 = vmul.f32 0.03125, %v1644_v62 }
 0xa53   :  { %v1648_v0 = vadd.f32 1e-12, %v1646_v63 }
 0xa55   :  { %6661 = vrsqrt.f32 %v1648_v0 }
 0xa5b   :  { %v6660_v1 = vpop.eup %6659 }
 0xa5c   :  { %v1651_v2 = vmul.f32 %v6660_v1, %v1635_v52 }
 0xa5e   :  { %v1659_v5 = vmul.f32 %v5816_v3, %v1651_v2  ;;  %v6603_v2 = vld [vmem:[%s7771_s4 + $0x10] sm:$0xff]  }
 0xa5f   :  { %v6662_v4 = vpop.eup %6661 }
 0xa60   :  { %v1652_v6 = vmul.f32 %v6662_v4, %v1636_v54  ;;  %v1667_v9 = vadd.f32 %v5817_v7, %v1659_v5 }
 0xa62   :  { %v1660_v8 = vmul.f32 %v5816_v3, %v1652_v6  ;;  %v6604_v3 = vld [vmem:[%s7771_s4 + $0x18] sm:$0xff]  }
 0xa64   :  { %v1668_v10 = vadd.f32 %v5817_v7, %v1660_v8 }
 0xa66   :  { %v1673_v11 = vpack.c.bf16 %v1668_v10, %v1667_v9 }
 0xa68   :  { %6235 = vmatmul.mubr.msk.bf16.vlgmr.msra.gmra.mrb[20].mxu0 %vm65_vm0, %v1673_v11  ;;  %v5828_v11 = vld [vmem:[%s7781_s14] ss:$0 sm:$0xff] }
 0xa69   :  { %6254 = vmatprep.mubr.msk.bf16.mxu0 %vm6789_vm1, %v6788_v15  ;;  %6251 = vmatpush3.bf16.msra.mxu0 %v6603_v2 }
 0xa6a   :  { %6252 = vmatprep.subr.bf16.mxu0 %v6788_v15 }
 0xa6d   :  { %6253 = vmatpush3.bf16.msra.mxu0 %v6604_v3 }
 0xa6e   :  { %6258 = vmatprep.subr.mxu0 %v6788_v15 }
 0xb3b   :  { %v1730_v19 = vpop.f32.mrb[20].mxu0 }
 0xb3c   :  { %v1731_v20 = vadd.f32 %v5818_v18, %v1730_v19  ;;  %v6236_v36 = vpop.f32.mrb[21].mxu0 }
 0xb3d   :  { %v1733_v21 = vpop.f32.mrb[22].mxu0 }
 0xb3e   :  { %v1739_v22 = vmul.f32 0.044715, %v1731_v20  ;;  %v1734_v23 = vadd.f32 %v5818_v18, %v1733_v21  ;;  %v6237_v24 = vpop.f32.mrb[23].mxu0  ;;  %v1737_v41 = vmul.f32 0.5, %v1731_v20  ;;  %v5829_v18 = vld [vmem:[%s7782_s15] ss:$0 sm:$0xff] }
 0xb40   :  { %v1741_v25 = vmul.f32 %v1739_v22, %v1731_v20  ;;  %v1740_v26 = vmul.f32 0.044715, %v1734_v23  ;;  %v1738_v42 = vmul.f32 0.5, %v1734_v23  ;;  %v5835_v22 = vld [vmem:[%s7772_s5 + $0x1] ss:$0 sm:$0xff] }
 0xb42   :  { %v1743_v27 = vmul.f32 %v1741_v25, %v1731_v20  ;;  %v1742_v28 = vmul.f32 %v1740_v26, %v1734_v23 }
 0xb44   :  { %v1745_v29 = vadd.f32 %v1743_v27, %v1731_v20  ;;  %v1744_v33 = vmul.f32 %v1742_v28, %v1734_v23 }
 0xb46   :  { %v1747_v34 = vmul.f32 0.7978846, %v1745_v29  ;;  %v1746_v35 = vadd.f32 %v1744_v33, %v1734_v23 }
 0xb48   :  { %6663 = vtanh.f32 %v1747_v34  ;;  %v1748_v37 = vmul.f32 0.7978846, %v1746_v35 }
 0xb4a   :  { %6665 = vtanh.f32 %v1748_v37 }
 0xb52   :  { %v6664_v12 = vpop.eup %6663 }
 0xb53   :  { %v1751_v38 = vadd.f32 1.0, %v6664_v12 }
 0xb54   :  { %v6666_v39 = vpop.eup %6665 }
 0xb55   :  { %v1752_v43 = vadd.f32 1.0, %v6666_v39  ;;  %v1753_v40 = vmul.f32 %v1751_v38, %v1737_v41 }
 0xb57   :  { %v1754_v44 = vmul.f32 %v1752_v43, %v1738_v42 }
 0xb59   :  { %v1763_v45 = vpack.c.bf16 %v1754_v44, %v1753_v40 }
 0xb5b   :  { %6247 = vmatmul.mubr.msk.bf16.vlgmr.msra.gmra.mrb[24].mxu1 %vm1795_vm5, %v1763_v45 }
 0xb5c   :  { %6270 = vmatprep.mubr.msk.f32.mxu1 %vm6789_vm1, %v6788_v15 }
 0xc2e   :  { %v1833_v46 = vpop.f32.mrb[24].mxu1 }
 0xc2f   :  { %v1834_v49 = vadd.f32 %v5822_v47, %v1833_v46  ;;  %v6248_v50 = vpop.f32.mrb[25].mxu1 }
 0xc30   :  { %v1836_v51 = vpop.f32.mrb[26].mxu1 }
 0xc31   :  { %v1837_v52 = vadd.f32 %v5822_v47, %v1836_v51  ;;  %v6249_v53 = vpop.f32.mrb[27].mxu1  ;;  %v1840_v54 = vadd.f32 %v1834_v49, %v1667_v9 }
 0xc33   :  { %v1844_v55 = vsel %vm65_vm0, %v1840_v54, 0.0  ;;  %v1841_v56 = vadd.f32 %v1837_v52, %v1668_v10 }
 0xc34   :  { %1845 = vadd.xlane.f32.xlu1 %v1844_v55 }
 0xc35   :  { %v1847_v57 = vsel %vm65_vm0, %v1841_v56, 0.0 }
 0xc36   :  { %1848 = vadd.xlane.f32.xlu0 %v1847_v57 }
 0xcc1   :  { %v1846_v31 = vpop.xlane.xlu1 %1845 }
 0xcc2   :  { %v1850_v32 = vmul.f32 0.03125, %v1846_v31 }
 0xcc3   :  { %v1849_v58 = vpop.xlane.xlu0 %1848 }
 0xcc4   :  { %v1852_v59 = vsub.f32 %v1840_v54, %v1850_v32  ;;  %v1851_v60 = vmul.f32 0.03125, %v1849_v58 }
 0xcc6   :  { %v1853_v61 = vsub.f32 %v1841_v56, %v1851_v60  ;;  %v1854_v62 = vmul.f32 %v1852_v59, %v1852_v59 }
 0xcc8   :  { %v1856_v63 = vsel %vm65_vm0, %v1854_v62, 0.0  ;;  %v1855_v0 = vmul.f32 %v1853_v61, %v1853_v61 }
 0xcc9   :  { %1857 = vadd.xlane.f32.xlu1 %v1856_v63 }
 0xcca   :  { %v1859_v1 = vsel %vm65_vm0, %v1855_v0, 0.0 }
 0xccb   :  { %1860 = vadd.xlane.f32.xlu0 %v1859_v1 }
 0xd56   :  { %v1858_v4 = vpop.xlane.xlu1 %1857 }
 0xd57   :  { %v1862_v5 = vmul.f32 0.03125, %v1858_v4 }
 0xd58   :  { %v1861_v6 = vpop.xlane.xlu0 %1860 }
 0xd59   :  { %v1864_v7 = vadd.f32 1e-12, %v1862_v5  ;;  %v1863_v8 = vmul.f32 0.03125, %v1861_v6 }
 0xd5b   :  { %6667 = vrsqrt.f32 %v1864_v7  ;;  %v1865_v9 = vadd.f32 1e-12, %v1863_v8 }
 0xd5d   :  { %6669 = vrsqrt.f32 %v1865_v9 }
 0xd65   :  { %v6668_v10 = vpop.eup %6667 }
 0xd66   :  { %v1868_v13 = vmul.f32 %v6668_v10, %v1852_v59 }
 0xd67   :  { %v6670_v14 = vpop.eup %6669 }
 0xd68   :  { %v1876_v16 = vmul.f32 %v5828_v11, %v1868_v13  ;;  %v1869_v17 = vmul.f32 %v6670_v14, %v1853_v61 }
 0xd6a   :  { %v1877_v19 = vmul.f32 %v5828_v11, %v1869_v17  ;;  %v7196_v20 = vadd.f32 %v5829_v18, %v1876_v16 }
 0xd6c   :  { %v7198_v36 = vadd.f32 %v5829_v18, %v1877_v19 }
 0xd6e   :  { %v1891_v21 = vpack.c.bf16 %v7198_v36, %v7196_v20 }
 0xd70   :  { %6255 = vmatmul.mubr.msk.bf16.vlgmr.msra.gmra.mrb[24].mxu0 %vm65_vm0, %v1891_v21 }
 0xd71   :  { %6260 = vmatprep.mubr.msk.f32.mxu0 %vm6789_vm1, %v6788_v15 }
 0xe43   :  { %v1949_v23 = vpop.f32.mrb[24].mxu0 }
 0xe44   :  { %v7208_v24 = vadd.f32 %v5835_v22, %v1949_v23  ;;  %v6256_v25 = vpop.f32.mrb[25].mxu0 }
 0xe45   :  { %v1952_v26 = vpop.f32.mrb[26].mxu0 }
 0xe46   :  { %2124 = vrot.lane.b32.xlu0 %v7208_v24, %s7814_s28  ;;  %1957 = vrot.lane.b32.xlu1 %v7208_v24, %s7812_s3  ;;  %v6257_v27 = vpop.f32.mrb[27].mxu0  ;;  %v7218_v28 = vadd.f32 %v5835_v22, %v1952_v26 }
 0xe4a   :  { %2458 = vrot.lane.b32.xlu0 %v7208_v24, %s7802_s30  ;;  %2122 = vrot.lane.b32.xlu1 %v7208_v24, %s7810_s0 }
 0xe4e   :  { %2291 = vrot.lane.b32.xlu1 %v7208_v24, %s7806_s29  ;;  %2639 = vrot.lane.b32.xlu0 %v7218_v28, %s7812_s3 }
 0xe52   :  { %2289 = vrot.lane.b32.xlu1 %v7208_v24, %s7808_s19  ;;  %2804 = vrot.lane.b32.xlu0 %v7218_v28, %s7810_s0  ;;  %s7832_s0 = smov 112  }
 0xe56   :  { %2456 = vrot.lane.b32.xlu1 %v7208_v24, %s7804_s1  ;;  %2971 = vrot.lane.b32.xlu0 %v7218_v28, %s7808_s19  ;;  %s7833_s19 = smov 80  }
 0xe5a   :  { %2806 = vrot.lane.b32.xlu1 %v7218_v28, %s7814_s28  ;;  %3138 = vrot.lane.b32.xlu0 %v7218_v28, %s7804_s1  ;;  %s7831_s1 = smov 120  }
 0xe5e   :  { %2973 = vrot.lane.b32.xlu1 %v7218_v28, %s7806_s29  ;;  %s7830_s29 = smov 96  }
 0xe62   :  { %3140 = vrot.lane.b32.xlu1 %v7218_v28, %s7802_s30  ;;  %s7826_s30 = smov 8  }
 0xeb8   :  { %v2125_v29 = vpop.permute.xlu0 %2124  ;;  %v1958_v33 = vpop.permute.xlu1 %1957 }
 0xeb9   :  { %6259 = vmatpush3.xpose.msk.msra.mxu0 %vm183_vm2, %v1958_v33  ;;  %6269 = vmatpush3.xpose.msk.msra.mxu1 %vm183_vm2, %v2125_v29 }
 0xeba   :  { %6278 = vmatprep.subr.mxu1 %v6788_v15  ;;  %6263 = vmatprep.subr.mxu0 %v6788_v15 }
 0xebc   :  { %6261 = vmatmul.mubr.msk.f32.vlgmr.msra.gmra.mrb[18].mxu0 %vm183_vm2, %v7208_v24  ;;  %v2123_v34 = vpop.permute.xlu1 %2122  ;;  %v2459_v35 = vpop.permute.xlu0 %2458 }
 0xebd   :  { %6271 = vmatmul.mubr.msk.f32.vlgmr.msra.gmra.mrb[18].mxu1 %vm183_vm2, %v2123_v34  ;;  %6265 = vmatprep.mubr.msk.f32.mxu0 %vm6789_vm1, %v6788_v15 }
 0xebe   :  { %6280 = vmatprep.mubr.msk.f32.mxu1 %vm6789_vm1, %v6788_v15 }
 0xec0   :  { %v2292_v37 = vpop.permute.xlu1 %2291  ;;  %v2640_v38 = vpop.permute.xlu0 %2639 }
 0xec1   :  { %6279 = vmatpush3.xpose.msk.msra.mxu1 %vm183_vm2, %v2292_v37 }
 0xec2   :  { %6288 = vmatprep.subr.mxu1 %v6788_v15 }
 0xec4   :  { %v2290_v12 = vpop.permute.xlu1 %2289  ;;  %v2805_v41 = vpop.permute.xlu0 %2804 }
 0xec5   :  { %6281 = vmatmul.mubr.msk.f32.vlgmr.msra.gmra.mrb[28].mxu1 %vm183_vm2, %v2290_v12 }
 0xec6   :  { %6289 = vmatpush3.xpose.msk.msra.mxu1 %vm183_vm2, %v2459_v35  ;;  %6290 = vmatprep.mubr.msk.f32.mxu1 %vm6789_vm1, %v6788_v15 }
 0xec7   :  { %6298 = vmatprep.subr.mxu1 %v6788_v15 }
 0xec8   :  { %v2457_v39 = vpop.permute.xlu1 %2456  ;;  %v2972_v40 = vpop.permute.xlu0 %2971 }
 0xec9   :  { %6291 = vmatmul.mubr.msk.f32.vlgmr.msra.gmra.mrb[30].mxu1 %vm183_vm2, %v2457_v39 }
 0xeca   :  { %6299 = vmatpush3.xpose.msk.msra.mxu1 %vm183_vm2, %v2640_v38  ;;  %6300 = vmatprep.mubr.msk.f32.mxu1 %vm6789_vm1, %v6788_v15 }
 0xecb   :  { %6308 = vmatprep.subr.mxu1 %v6788_v15 }
 0xecc   :  { %v2807_v42 = vpop.permute.xlu1 %2806  ;;  %v3139_v45 = vpop.permute.xlu0 %3138 }
 0xecd   :  { %6301 = vmatmul.mubr.msk.f32.vlgmr.msra.gmra.mrb[32].mxu1 %vm183_vm2, %v7218_v28 }
 0xece   :  { %6309 = vmatpush3.xpose.msk.msra.mxu1 %vm183_vm2, %v2807_v42  ;;  %6310 = vmatprep.mubr.msk.f32.mxu1 %vm6789_vm1, %v6788_v15 }
 0xecf   :  { %6318 = vmatprep.subr.mxu1 %v6788_v15 }
 0xed0   :  { %v2974_v43 = vpop.permute.xlu1 %2973 }
 0xed1   :  { %6311 = vmatmul.mubr.msk.f32.vlgmr.msra.gmra.mrb[34].mxu1 %vm183_vm2, %v2805_v41 }
 0xed2   :  { %6319 = vmatpush3.xpose.msk.msra.mxu1 %vm183_vm2, %v2974_v43  ;;  %6320 = vmatprep.mubr.msk.f32.mxu1 %vm6789_vm1, %v6788_v15 }
 0xed3   :  { %6328 = vmatprep.subr.mxu1 %v6788_v15 }
 0xed4   :  { %v3141_v44 = vpop.permute.xlu1 %3140 }
 0xed5   :  { %6321 = vmatmul.mubr.msk.f32.vlgmr.msra.gmra.mrb[36].mxu1 %vm183_vm2, %v2972_v40 }
 0xed6   :  { %6329 = vmatpush3.xpose.msk.msra.mxu1 %vm183_vm2, %v3141_v44  ;;  %6330 = vmatprep.mubr.msk.f32.mxu1 %vm6789_vm1, %v6788_v15 }
 0xed7   :  { %6338 = vmatprep.subr.bf16.mxu1 %v6788_v15 }
 0xed9   :  { %6331 = vmatmul.mubr.msk.f32.vlgmr.msra.gmra.mrb[38].mxu1 %vm183_vm2, %v3139_v45 }
 0xeda   :  { %6342 = vmatprep.mubr.msk.bf16.mxu1 %vm6789_vm1, %v6788_v15 }
 0xf8f   :  { %v2029_v47 = vpop.f32.mrb[18].mxu0 }
 0xf90   :  { %v2033_v46 = vmul.f32 0.35355338, %v2029_v47  ;;  %v6262_v49 = vpop.f32.mrb[19].mxu0  ;;  %v2196_v50 = vpop.f32.mrb[18].mxu1 }
 0xf91   :  { %v2200_v51 = vmul.f32 0.35355338, %v2196_v50  ;;  %v6272_v52 = vpop.f32.mrb[19].mxu1 }
 0xf92   :  { %v2034_v53 = vadd.f32 %v2033_v46, %v6978_v48 }
 0xf93   :  { %v2201_v54 = vadd.f32 %v2200_v51, %v6978_v48 }
 0xf94   :  { %v2035_v55 = vsel %vm183_vm2, %v2034_v53, -inf }
 0xf95   :  { %2036 = vmax.xlane.f32.xlu1 %v2035_v55  ;;  %v2202_v56 = vsel %vm183_vm2, %v2201_v54, -inf }
 0xf96   :  { %2203 = vmax.xlane.f32.xlu0 %v2202_v56 }
 0xf98   :  { %v2363_v57 = vpop.f32.mrb[28].mxu1 }
 0xf99   :  { %v2367_v31 = vmul.f32 0.35355338, %v2363_v57  ;;  %v6282_v32 = vpop.f32.mrb[29].mxu1 }
 0xf9b   :  { %v2368_v58 = vadd.f32 %v2367_v31, %v6978_v48 }
 0xf9c   :  { %v2530_v59 = vpop.f32.mrb[30].mxu1 }
 0xf9d   :  { %v2534_v60 = vmul.f32 0.35355338, %v2530_v59  ;;  %v6292_v61 = vpop.f32.mrb[31].mxu1  ;;  %v2369_v62 = vsel %vm183_vm2, %v2368_v58, -inf }
 0xf9e   :  { %2370 = vmax.xlane.f32.xlu0 %v2369_v62 }
 0xf9f   :  { %v2535_v63 = vadd.f32 %v2534_v60, %v6978_v48 }
 0xfa0   :  { %v2711_v0 = vpop.f32.mrb[32].mxu1 }
 0xfa1   :  { %v2715_v1 = vmul.f32 0.35355338, %v2711_v0  ;;  %v6302_v2 = vpop.f32.mrb[33].mxu1  ;;  %v2536_v3 = vsel %vm183_vm2, %v2535_v63, -inf }
 0xfa2   :  { %2537 = vmax.xlane.f32.xlu0 %v2536_v3 }
 0xfa3   :  { %v2716_v4 = vadd.f32 %v2715_v1, %v7046_v30 }
 0xfa4   :  { %v2878_v5 = vpop.f32.mrb[34].mxu1 }
 0xfa5   :  { %v2882_v6 = vmul.f32 0.35355338, %v2878_v5  ;;  %v6312_v7 = vpop.f32.mrb[35].mxu1  ;;  %v2717_v8 = vsel %vm183_vm2, %v2716_v4, -inf }
 0xfa6   :  { %2718 = vmax.xlane.f32.xlu1 %v2717_v8 }
 0xfa7   :  { %v2883_v9 = vadd.f32 %v2882_v6, %v7046_v30 }
 0xfa8   :  { %v3045_v10 = vpop.f32.mrb[36].mxu1 }
 0xfa9   :  { %v3049_v11 = vmul.f32 0.35355338, %v3045_v10  ;;  %v6322_v13 = vpop.f32.mrb[37].mxu1  ;;  %v2884_v14 = vsel %vm183_vm2, %v2883_v9, -inf }
 0xfaa   :  { %2885 = vmax.xlane.f32.xlu0 %v2884_v14 }
 0xfab   :  { %v3050_v16 = vadd.f32 %v3049_v11, %v7046_v30 }
 0xfac   :  { %v3212_v17 = vpop.f32.mrb[38].mxu1 }
 0xfad   :  { %v3216_v18 = vmul.f32 0.35355338, %v3212_v17  ;;  %v6332_v19 = vpop.f32.mrb[39].mxu1  ;;  %v3051_v21 = vsel %vm183_vm2, %v3050_v16, -inf }
 0xfae   :  { %3052 = vmax.xlane.f32.xlu1 %v3051_v21 }
 0xfaf   :  { %v3217_v22 = vadd.f32 %v3216_v18, %v7046_v30 }
 0xfb1   :  { %v3218_v23 = vsel %vm183_vm2, %v3217_v22, -inf }
 0xfb2   :  { %3219 = vmax.xlane.f32.xlu0 %v3218_v23 }
 0xfbf   :  { %2213 = vrot.lane.b32.xlu1 %v7208_v24, %s7822_s26 }
 0xfc3   :  { %2380 = vrot.lane.b32.xlu1 %v7208_v24, %s7823_s27 }
 0xfc8   :  { %2046 = vrot.lane.b32.xlu0 %v7208_v24, %s7824_s2 }
0x1022   :  { %v2037_v25 = vpop.xlane.xlu1 %2036 }
0x1023   :  { %v2038_v26 = vsub.f32 %v2034_v53, %v2037_v25  ;;  %v2204_v27 = vpop.xlane.xlu0 %2203 }
0x1024   :  { %v2205_v29 = vsub.f32 %v2201_v54, %v2204_v27 }
0x1025   :  { %v2039_v33 = vmul.f32 1.442695, %v2038_v26 }
0x1026   :  { %v2206_v34 = vmul.f32 1.442695, %v2205_v29 }
0x1027   :  { %6671 = vpow2.f32 %v2039_v33 }
0x1028   :  { %6673 = vpow2.f32 %v2206_v34 }
0x102b   :  { %v2371_v37 = vpop.xlane.xlu0 %2370 }
0x102c   :  { %v2372_v44 = vsub.f32 %v2368_v58, %v2371_v37 }
0x102e   :  { %v2373_v46 = vmul.f32 1.442695, %v2372_v44 }
0x102f   :  { %v2538_v41 = vpop.xlane.xlu0 %2537 }
0x1030   :  { %v2539_v45 = vsub.f32 %v2535_v63, %v2538_v41  ;;  %6675 = vpow2.f32 %v2373_v46 }
0x1031   :  { %v7304_v35 = vpop.eup %6671 }
0x1032   :  { %v7306_v12 = vpop.eup %6673  ;;  %v2041_v38 = vsel %vm183_vm2, %v7304_v35, 0.0  ;;  %v2540_v50 = vmul.f32 1.442695, %v2539_v45 }
0x1033   :  { %2042 = vadd.xlane.f32.xlu1 %v2041_v38  ;;  %v2208_v39 = vsel %vm183_vm2, %v7306_v12, 0.0  ;;  %v2719_v47 = vpop.xlane.xlu1 %2718 }
0x1034   :  { %2209 = vadd.xlane.f32.xlu0 %v2208_v39  ;;  %v2720_v49 = vsub.f32 %v2716_v4, %v2719_v47  ;;  %6677 = vpow2.f32 %v2540_v50 }
0x1036   :  { %v2721_v53 = vmul.f32 1.442695, %v2720_v49 }
0x1037   :  { %v2886_v42 = vpop.xlane.xlu0 %2885 }
0x1038   :  { %v2887_v51 = vsub.f32 %v2883_v9, %v2886_v42  ;;  %6679 = vpow2.f32 %v2721_v53 }
0x103a   :  { %v2888_v55 = vmul.f32 1.442695, %v2887_v51  ;;  %v6605_v51 = vld [vmem:[%s7773_s6 + $0x10] sm:$0xff]  }
0x103b   :  { %v3053_v52 = vpop.xlane.xlu1 %3052  ;;  %6339 = vmatpush3.bf16.msra.mxu1 %v6605_v51 }
0x103c   :  { %v3054_v54 = vsub.f32 %v3050_v16, %v3053_v52  ;;  %6681 = vpow2.f32 %v2888_v55  ;;  %6340 = vmatprep.subr.bf16.mxu1 %v6788_v15 }
0x103e   :  { %v3055_v56 = vmul.f32 1.442695, %v3054_v54  ;;  %v6606_v54 = vld [vmem:[%s7773_s6 + $0x18] sm:$0xff]  }
0x103f   :  { %v3220_v43 = vpop.xlane.xlu0 %3219  ;;  %v2214_v4 = vpop.permute.xlu1 %2213  ;;  %6341 = vmatpush3.bf16.msra.mxu1 %v6606_v54  ;;  %v5875_v54 = vld [vmem:[%s7776_s9 + $0x1] ss:$0 sm:$0xff] }
0x1040   :  { %v3221_v57 = vsub.f32 %v3217_v22, %v3220_v43  ;;  %6683 = vpow2.f32 %v3055_v56  ;;  %6354 = vmatprep.subr.bf16.mxu1 %v6788_v15 }
0x1042   :  { %v3222_v31 = vmul.f32 1.442695, %v3221_v57 }
0x1043   :  { %v2047_v40 = vpop.permute.xlu0 %2046  ;;  %v2381_v5 = vpop.permute.xlu1 %2380 }
0x1044   :  { %6264 = vmatpush3.msra.mxu0 %v2047_v40  ;;  %2728 = vrot.lane.b32.xlu1 %v7218_v28, %s7824_s2  ;;  %6685 = vpow2.f32 %v3222_v31 }
0x1045   :  { %6273 = vmatprep.subr.mxu0 %v6788_v15 }
0x104a   :  { %2547 = vrot.lane.b32.xlu0 %v7208_v24, %s7825_s24  ;;  %v6676_v24 = vpop.eup %6675 }
0x104b   :  { %v6678_v32 = vpop.eup %6677  ;;  %v2375_v58 = vsel %vm183_vm2, %v6676_v24, 0.0 }
0x104c   :  { %v6680_v59 = vpop.eup %6679  ;;  %v2542_v60 = vsel %vm183_vm2, %v6678_v32, 0.0 }
0x104d   :  { %v7319_v61 = vpop.eup %6681  ;;  %v2723_v62 = vsel %vm183_vm2, %v6680_v59, 0.0 }
0x104e   :  { %v7322_v63 = vpop.eup %6683  ;;  %v2890_v0 = vsel %vm183_vm2, %v7319_v61, 0.0 }
0x104f   :  { %v3057_v1 = vsel %vm183_vm2, %v7322_v63, 0.0  ;;  %v7328_v2 = vpop.eup %6685 }
0x1050   :  { %v3224_v3 = vsel %vm183_vm2, %v7328_v2, 0.0 }
0x1068   :  { %2376 = vadd.xlane.f32.xlu1 %v2375_v58 }
0x1069   :  { %2543 = vadd.xlane.f32.xlu0 %v2542_v60 }
0x106c   :  { %2724 = vadd.xlane.f32.xlu1 %v2723_v62 }
0x106d   :  { %2891 = vadd.xlane.f32.xlu0 %v2890_v0 }
0x1070   :  { %3058 = vadd.xlane.f32.xlu1 %v3057_v1 }
0x1074   :  { %3225 = vadd.xlane.f32.xlu1 %v3224_v3 }
0x1083   :  { %2895 = vrot.lane.b32.xlu0 %v7218_v28, %s7822_s26 }
0x1085   :  { %3062 = vrot.lane.b32.xlu1 %v7218_v28, %s7823_s27 }
0x1087   :  { %3229 = vrot.lane.b32.xlu0 %v7218_v28, %s7825_s24 }
0x10c0   :  { %v2043_v6 = vpop.xlane.xlu1 %2042 }
0x10c1   :  { %6687 = vrcp.f32 %v2043_v6  ;;  %v2210_v7 = vpop.xlane.xlu0 %2209 }
0x10c2   :  { %6689 = vrcp.f32 %v2210_v7 }
0x10c4   :  { %v2729_v28 = vpop.permute.xlu1 %2728 }
0x10c5   :  { %v2548_v13 = vpop.permute.xlu0 %2547 }
0x10cb   :  { %v6688_v8 = vpop.eup %6687 }
0x10cc   :  { %v2045_v9 = vmul.f32 %v6688_v8, %v7304_v35  ;;  %v6690_v10 = vpop.eup %6689 }
0x10cd   :  { %v2212_v11 = vmul.f32 %v6690_v10, %v7306_v12 }
0x10ce   :  { %6266 = vmatmul.mubr.msk.f32.vlgmr.msra.gmra.mrb[28].mxu0 %vm183_vm2, %v2045_v9 }
0x10cf   :  { %6274 = vmatpush3.msra.mxu0 %v2214_v4  ;;  %6275 = vmatprep.mubr.msk.f32.mxu0 %vm6789_vm1, %v6788_v15 }
0x10d0   :  { %6283 = vmatprep.subr.mxu0 %v6788_v15 }
0x10d2   :  { %6276 = vmatmul.mubr.msk.f32.vlgmr.msra.gmra.mrb[30].mxu0 %vm183_vm2, %v2212_v11 }
0x10d3   :  { %6284 = vmatpush3.msra.mxu0 %v2381_v5  ;;  %6285 = vmatprep.mubr.msk.f32.mxu0 %vm6789_vm1, %v6788_v15 }
0x10d4   :  { %6293 = vmatprep.subr.mxu0 %v6788_v15 }
0x10f5   :  { %v2377_v14 = vpop.xlane.xlu1 %2376 }
0x10f6   :  { %6691 = vrcp.f32 %v2377_v14  ;;  %v2544_v16 = vpop.xlane.xlu0 %2543 }
0x10f7   :  { %6693 = vrcp.f32 %v2544_v16 }
0x10f9   :  { %v2725_v17 = vpop.xlane.xlu1 %2724 }
0x10fa   :  { %6695 = vrcp.f32 %v2725_v17  ;;  %v2892_v18 = vpop.xlane.xlu0 %2891 }
0x10fb   :  { %6697 = vrcp.f32 %v2892_v18 }
0x10fd   :  { %v3059_v19 = vpop.xlane.xlu1 %3058 }
0x10fe   :  { %6699 = vrcp.f32 %v3059_v19  ;;  %v2896_v34 = vpop.permute.xlu0 %2895 }
0x1100   :  { %v6692_v21 = vpop.eup %6691 }
0x1101   :  { %v2379_v22 = vmul.f32 %v6692_v21, %v6676_v24  ;;  %v6694_v23 = vpop.eup %6693  ;;  %v3226_v26 = vpop.xlane.xlu1 %3225 }
0x1102   :  { %v2546_v25 = vmul.f32 %v6694_v23, %v6678_v32  ;;  %6701 = vrcp.f32 %v3226_v26  ;;  %v3230_v41 = vpop.permute.xlu0 %3229 }
0x1103   :  { %6286 = vmatmul.mubr.msk.f32.vlgmr.msra.gmra.mrb[32].mxu0 %vm183_vm2, %v2379_v22 }
0x1104   :  { %6294 = vmatpush3.msra.mxu0 %v2548_v13  ;;  %6295 = vmatprep.mubr.msk.f32.mxu0 %vm6789_vm1, %v6788_v15  ;;  %v6696_v27 = vpop.eup %6695  ;;  %v5868_v13 = vld [vmem:[%s7774_s7 + $0x1] ss:$0 sm:$0xff] }
0x1105   :  { %6303 = vmatprep.subr.mxu0 %v6788_v15  ;;  %v2727_v29 = vmul.f32 %v6696_v27, %v6680_v59  ;;  %v6698_v33 = vpop.eup %6697  ;;  %v3063_v12 = vpop.permute.xlu1 %3062 }
0x1106   :  { %v2894_v35 = vmul.f32 %v6698_v33, %v7319_v61 }
0x1107   :  { %6296 = vmatmul.mubr.msk.f32.vlgmr.msra.gmra.mrb[34].mxu0 %vm183_vm2, %v2546_v25 }
0x1108   :  { %6304 = vmatpush3.msra.mxu0 %v2729_v28  ;;  %6305 = vmatprep.mubr.msk.f32.mxu0 %vm6789_vm1, %v6788_v15  ;;  %v6700_v37 = vpop.eup %6699 }
0x1109   :  { %6313 = vmatprep.subr.mxu0 %v6788_v15  ;;  %v3061_v38 = vmul.f32 %v6700_v37, %v7322_v63 }
0x110b   :  { %6306 = vmatmul.mubr.msk.f32.vlgmr.msra.gmra.mrb[36].mxu0 %vm183_vm2, %v2727_v29 }
0x110c   :  { %6314 = vmatpush3.msra.mxu0 %v2896_v34  ;;  %6315 = vmatprep.mubr.msk.f32.mxu0 %vm6789_vm1, %v6788_v15  ;;  %v6702_v39 = vpop.eup %6701 }
0x110d   :  { %6323 = vmatprep.subr.mxu0 %v6788_v15  ;;  %v3228_v42 = vmul.f32 %v6702_v39, %v7328_v2 }
0x110f   :  { %6316 = vmatmul.mubr.msk.f32.vlgmr.msra.gmra.mrb[38].mxu0 %vm183_vm2, %v2894_v35 }
0x1110   :  { %6324 = vmatpush3.msra.mxu0 %v3063_v12  ;;  %6325 = vmatprep.mubr.msk.f32.mxu0 %vm6789_vm1, %v6788_v15 }
0x1111   :  { %6333 = vmatprep.subr.mxu0 %v6788_v15 }
0x1113   :  { %6326 = vmatmul.mubr.msk.f32.vlgmr.msra.gmra.mrb[40].mxu0 %vm183_vm2, %v3061_v38 }
0x1114   :  { %6334 = vmatpush3.msra.mxu0 %v3230_v41  ;;  %6335 = vmatprep.mubr.msk.f32.mxu0 %vm6789_vm1, %v6788_v15  ;;  %v6608_v41 = vld [vmem:[%s7777_s10 + $0x18] sm:$0xff]  }
0x1115   :  { %6346 = vmatprep.subr.bf16.mxu0 %v6788_v15 }
0x1117   :  { %6336 = vmatmul.mubr.msk.f32.vlgmr.msra.gmra.mrb[42].mxu0 %vm183_vm2, %v3228_v42 }
0x1118   :  { %6350 = vmatprep.mubr.msk.bf16.mxu0 %vm6789_vm1, %v6788_v15 }
0x11a1   :  { %v2118_v43 = vpop.f32.mrb[28].mxu0 }
0x11a2   :  { %v6267_v40 = vpop.f32.mrb[29].mxu0 }
0x11a5   :  { %v2285_v44 = vpop.f32.mrb[30].mxu0 }
0x11a6   :  { %v6277_v45 = vpop.f32.mrb[31].mxu0 }
0x11d6   :  { %v2452_v47 = vpop.f32.mrb[32].mxu0 }
0x11d7   :  { %v6287_v46 = vpop.f32.mrb[33].mxu0 }
0x11da   :  { %v2619_v49 = vpop.f32.mrb[34].mxu0 }
0x11db   :  { %v6297_v50 = vpop.f32.mrb[35].mxu0 }
0x11dc   :  { %v5874_v50 = vld [vmem:[%s7775_s8 + $0x1] ss:$0 sm:$0xff] }
0x11de   :  { %v2800_v52 = vpop.f32.mrb[36].mxu0 }
0x11df   :  { %v6307_v53 = vpop.f32.mrb[37].mxu0 }
0x11e2   :  { %v2967_v55 = vpop.f32.mrb[38].mxu0 }
0x11e3   :  { %v6563_v56 = vpack.i.bf16 %v2967_v55, %v2285_v44  ;;  %v6317_v57 = vpop.f32.mrb[39].mxu0 }
0x11e5   :  { %6564 = vrot.lane.b32.xlu1 %v6563_v56, %s7826_s30 }
0x11e6   :  { %v3134_v31 = vpop.f32.mrb[40].mxu0 }
0x11e7   :  { %v6568_v24 = vpack.i.bf16 %v3134_v31, %v2452_v47  ;;  %v6327_v32 = vpop.f32.mrb[41].mxu0 }
0x11e8   :  { %v6610_v32 = vld [vmem:[%s7779_s12 + $0x28] sm:$0xff]  }
0x11e9   :  { %6569 = vrot.lane.b32.xlu0 %v6568_v24, %s7827_s23  ;;  %v6609_v24 = vld [vmem:[%s7779_s12 + $0x20] sm:$0xff]  }
0x11ea   :  { %v3301_v58 = vpop.f32.mrb[42].mxu0 }
0x11eb   :  { %v6573_v59 = vpack.i.bf16 %v3301_v58, %v2619_v49  ;;  %v6337_v60 = vpop.f32.mrb[43].mxu0  ;;  %v6611_v58 = vld [vmem:[%s7779_s12 + $0x30] sm:$0xff]  }
0x11ec   :  { %v5881_v60 = vld [vmem:[%s7778_s11 + $0x1] ss:$0 sm:$0xff] }
0x11ed   :  { %6574 = vrot.lane.b32.xlu1 %v6573_v59, %s7828_s25  ;;  %v6612_v59 = vld [vmem:[%s7779_s12 + $0x38] sm:$0xff]  }
0x1257   :  { %v6565_v61 = vpop.permute.xlu1 %6564 }
0x1258   :  { %v6567_v63 = vunpack.i.h.bf16 %v6565_v61  ;;  %v6566_v0 = vunpack.i.l.bf16 %v6565_v61 }
0x125a   :  { %v3317_v4 = vsel %vm183_vm2, %v2800_v52, %v6567_v63  ;;  %v2635_v5 = vsel %vm183_vm2, %v2118_v43, %v6566_v0 }
0x125b   :  { %v6570_v62 = vpop.permute.xlu0 %6569 }
0x125c   :  { %v6572_v1 = vunpack.i.h.bf16 %v6570_v62  ;;  %v6571_v2 = vunpack.i.l.bf16 %v6570_v62 }
0x125e   :  { %v3318_v8 = vsel %vm865_vm3, %v3317_v4, %v6572_v1  ;;  %v2636_v9 = vsel %vm865_vm3, %v2635_v5, %v6571_v2 }
0x125f   :  { %v6575_v3 = vpop.permute.xlu1 %6574 }
0x1260   :  { %v6577_v6 = vunpack.i.h.bf16 %v6575_v3  ;;  %v6576_v7 = vunpack.i.l.bf16 %v6575_v3 }
0x1262   :  { %v3319_v10 = vsel %vm867_vm4, %v3318_v8, %v6577_v6  ;;  %v2637_v11 = vsel %vm867_vm4, %v2636_v9, %v6576_v7 }
0x1263   :  { %v3325_v28 = vpack.c.bf16 %v3319_v10, %v2637_v11 }
0x1265   :  { %6343 = vmatmul.mubr.msk.bf16.vlgmr.msra.gmra.mrb[40].mxu1 %vm65_vm0, %v3325_v28 }
0x1266   :  { %6362 = vmatprep.mubr.msk.bf16.mxu1 %vm6789_vm1, %v6788_v15  ;;  %6355 = vmatpush3.bf16.msra.mxu1 %v6609_v24 }
0x1267   :  { %6356 = vmatprep.subr.bf16.mxu1 %v6788_v15 }
0x126a   :  { %6357 = vmatpush3.bf16.msra.mxu1 %v6610_v32 }
0x126b   :  { %6358 = vmatprep.subr.bf16.mxu1 %v6788_v15 }
0x126e   :  { %6359 = vmatpush3.bf16.msra.mxu1 %v6611_v58 }
0x126f   :  { %6360 = vmatprep.subr.bf16.mxu1 %v6788_v15 }
0x1272   :  { %6361 = vmatpush3.bf16.msra.mxu1 %v6612_v59 }
0x1273   :  { %6384 = vmatprep.subr.mxu1 %v6788_v15 }
0x1338   :  { %v3383_v14 = vpop.f32.mrb[40].mxu1 }
0x1339   :  { %v3384_v16 = vadd.f32 %v5868_v13, %v3383_v14  ;;  %v6344_v17 = vpop.f32.mrb[41].mxu1 }
0x133a   :  { %v3386_v18 = vpop.f32.mrb[42].mxu1 }
0x133b   :  { %v3387_v19 = vadd.f32 %v5868_v13, %v3386_v18  ;;  %v6345_v21 = vpop.f32.mrb[43].mxu1  ;;  %v3390_v22 = vadd.f32 %v3384_v16, %v7196_v20 }
0x133d   :  { %v3396_v23 = vsel %vm65_vm0, %v3390_v22, 0.0  ;;  %v3391_v25 = vadd.f32 %v3387_v19, %v7198_v36  ;;  %v6607_v36 = vld [vmem:[%s7777_s10 + $0x10] sm:$0xff]  }
0x133e   :  { %3397 = vadd.xlane.f32.xlu0 %v3396_v23  ;;  %6347 = vmatpush3.bf16.msra.mxu0 %v6607_v36 }
0x133f   :  { %v3399_v26 = vsel %vm65_vm0, %v3391_v25, 0.0  ;;  %6348 = vmatprep.subr.bf16.mxu0 %v6788_v15 }
0x1340   :  { %3400 = vadd.xlane.f32.xlu1 %v3399_v26 }
0x1342   :  { %6349 = vmatpush3.bf16.msra.mxu0 %v6608_v41 }
0x1343   :  { %6366 = vmatprep.subr.bf16.mxu0 %v6788_v15 }
0x13cb   :  { %v3398_v27 = vpop.xlane.xlu0 %3397 }
0x13cc   :  { %v3402_v29 = vmul.f32 0.03125, %v3398_v27 }
0x13cd   :  { %v3401_v33 = vpop.xlane.xlu1 %3400 }
0x13ce   :  { %v3404_v34 = vsub.f32 %v3390_v22, %v3402_v29  ;;  %v3403_v35 = vmul.f32 0.03125, %v3401_v33 }
0x13d0   :  { %v3405_v37 = vsub.f32 %v3391_v25, %v3403_v35  ;;  %v3406_v12 = vmul.f32 %v3404_v34, %v3404_v34  ;;  %v5894_v25 = vld [vmem:[%s7780_s13 + $0x1] ss:$0 sm:$0xff] }
0x13d2   :  { %v3408_v38 = vsel %vm65_vm0, %v3406_v12, 0.0  ;;  %v3407_v39 = vmul.f32 %v3405_v37, %v3405_v37 }
0x13d3   :  { %3409 = vadd.xlane.f32.xlu0 %v3408_v38 }
0x13d4   :  { %v3411_v20 = vsel %vm65_vm0, %v3407_v39, 0.0 }
0x13d7   :  { %3412 = vadd.xlane.f32.xlu0 %v3411_v20 }
0x1460   :  { %v3410_v42 = vpop.xlane.xlu0 %3409 }
0x1461   :  { %v3414_v43 = vmul.f32 0.03125, %v3410_v42 }
0x1463   :  { %v3416_v40 = vadd.f32 1e-12, %v3414_v43 }
0x1464   :  { %v3413_v44 = vpop.xlane.xlu0 %3412 }
0x1465   :  { %6703 = vrsqrt.f32 %v3416_v40  ;;  %v3415_v45 = vmul.f32 0.03125, %v3413_v44 }
0x1467   :  { %v3417_v47 = vadd.f32 1e-12, %v3415_v45 }
0x1469   :  { %6705 = vrsqrt.f32 %v3417_v47 }
0x146f   :  { %v6704_v46 = vpop.eup %6703 }
0x1470   :  { %v3420_v49 = vmul.f32 %v6704_v46, %v3404_v34 }
0x1472   :  { %v3428_v52 = vmul.f32 %v5874_v50, %v3420_v49  ;;  %v6613_v49 = vld [vmem:[%s7771_s4 + $0x20] sm:$0xff]  }
0x1473   :  { %v6706_v51 = vpop.eup %6705 }
0x1474   :  { %v3421_v53 = vmul.f32 %v6706_v51, %v3405_v37  ;;  %v3436_v56 = vadd.f32 %v5875_v54, %v3428_v52 }
0x1476   :  { %v3429_v55 = vmul.f32 %v5874_v50, %v3421_v53  ;;  %v6614_v50 = vld [vmem:[%s7771_s4 + $0x28] sm:$0xff]   ;;  %s7835_s4 = smov 72  }
0x1478   :  { %v3437_v57 = vadd.f32 %v5875_v54, %v3429_v55 }
0x147a   :  { %v3443_v31 = vpack.c.bf16 %v3437_v57, %v3436_v56 }
0x147c   :  { %6351 = vmatmul.mubr.msk.bf16.vlgmr.msra.gmra.mrb[44].mxu0 %vm65_vm0, %v3443_v31  ;;  %v5902_v31 = vld [vmem:[%s7781_s14 + $0x1] ss:$0 sm:$0xff] }
0x147d   :  { %6370 = vmatprep.mubr.msk.bf16.mxu0 %vm6789_vm1, %v6788_v15  ;;  %6367 = vmatpush3.bf16.msra.mxu0 %v6613_v49 }
0x147e   :  { %6368 = vmatprep.subr.bf16.mxu0 %v6788_v15 }
0x1481   :  { %6369 = vmatpush3.bf16.msra.mxu0 %v6614_v50 }
0x1482   :  { %6374 = vmatprep.subr.mxu0 %v6788_v15 }
0x154f   :  { %v3501_v61 = vpop.f32.mrb[44].mxu0 }
0x1550   :  { %v3502_v62 = vadd.f32 %v5881_v60, %v3501_v61  ;;  %v6352_v63 = vpop.f32.mrb[45].mxu0 }
0x1551   :  { %v3504_v0 = vpop.f32.mrb[46].mxu0 }
0x1552   :  { %v3510_v1 = vmul.f32 0.044715, %v3502_v62  ;;  %v3505_v2 = vadd.f32 %v5881_v60, %v3504_v0  ;;  %v6353_v3 = vpop.f32.mrb[47].mxu0  ;;  %v3508_v17 = vmul.f32 0.5, %v3502_v62  ;;  %v5903_v60 = vld [vmem:[%s7782_s15 + $0x1] ss:$0 sm:$0xff] }
0x1554   :  { %v3512_v4 = vmul.f32 %v3510_v1, %v3502_v62  ;;  %v3511_v5 = vmul.f32 0.044715, %v3505_v2  ;;  %v3509_v18 = vmul.f32 0.5, %v3505_v2  ;;  %v5909_v1 = vld [vmem:[%s7772_s5 + $0x2] ss:$0 sm:$0xff]  ;;  %s7834_s5 = smov 104  }
0x1556   :  { %v3514_v6 = vmul.f32 %v3512_v4, %v3502_v62  ;;  %v3513_v7 = vmul.f32 %v3511_v5, %v3505_v2 }
0x1558   :  { %v3516_v8 = vadd.f32 %v3514_v6, %v3502_v62  ;;  %v3515_v9 = vmul.f32 %v3513_v7, %v3505_v2 }
0x155a   :  { %v3518_v10 = vmul.f32 0.7978846, %v3516_v8  ;;  %v3517_v11 = vadd.f32 %v3515_v9, %v3505_v2 }
0x155c   :  { %6707 = vtanh.f32 %v3518_v10  ;;  %v3519_v28 = vmul.f32 0.7978846, %v3517_v11 }
0x155e   :  { %6709 = vtanh.f32 %v3519_v28 }
0x1566   :  { %v6708_v13 = vpop.eup %6707 }
0x1567   :  { %v3522_v14 = vadd.f32 1.0, %v6708_v13 }
0x1568   :  { %v6710_v16 = vpop.eup %6709 }
0x1569   :  { %v3523_v19 = vadd.f32 1.0, %v6710_v16  ;;  %v3524_v21 = vmul.f32 %v3522_v14, %v3508_v17 }
0x156b   :  { %v3525_v22 = vmul.f32 %v3523_v19, %v3509_v18 }
0x156d   :  { %v3535_v23 = vpack.c.bf16 %v3525_v22, %v3524_v21 }
0x156f   :  { %6363 = vmatmul.mubr.msk.bf16.vlgmr.msra.gmra.mrb[44].mxu1 %vm1795_vm5, %v3535_v23 }
0x1570   :  { %6386 = vmatprep.mubr.msk.f32.mxu1 %vm6789_vm1, %v6788_v15 }
0x1642   :  { %v3605_v26 = vpop.f32.mrb[44].mxu1 }
0x1643   :  { %v3606_v27 = vadd.f32 %v5894_v25, %v3605_v26  ;;  %v6364_v29 = vpop.f32.mrb[45].mxu1 }
0x1644   :  { %v3608_v33 = vpop.f32.mrb[46].mxu1 }
0x1645   :  { %v3612_v34 = vadd.f32 %v3606_v27, %v3436_v56  ;;  %v3609_v35 = vadd.f32 %v5894_v25, %v3608_v33  ;;  %v6365_v37 = vpop.f32.mrb[47].mxu1 }
0x1647   :  { %v3613_v12 = vadd.f32 %v3609_v35, %v3437_v57  ;;  %v3618_v38 = vsel %vm65_vm0, %v3612_v34, 0.0 }
0x1648   :  { %3619 = vadd.xlane.f32.xlu0 %v3618_v38 }
0x1649   :  { %v3621_v39 = vsel %vm65_vm0, %v3613_v12, 0.0 }
0x164a   :  { %3622 = vadd.xlane.f32.xlu1 %v3621_v39 }
0x16d5   :  { %v3620_v20 = vpop.xlane.xlu0 %3619 }
0x16d6   :  { %v3624_v36 = vmul.f32 0.03125, %v3620_v20 }
0x16d7   :  { %v3623_v41 = vpop.xlane.xlu1 %3622 }
0x16d8   :  { %v3626_v42 = vsub.f32 %v3612_v34, %v3624_v36  ;;  %v3625_v43 = vmul.f32 0.03125, %v3623_v41 }
0x16da   :  { %v3627_v40 = vsub.f32 %v3613_v12, %v3625_v43  ;;  %v3628_v44 = vmul.f32 %v3626_v42, %v3626_v42 }
0x16dc   :  { %v3630_v45 = vsel %vm65_vm0, %v3628_v44, 0.0  ;;  %v3629_v47 = vmul.f32 %v3627_v40, %v3627_v40 }
0x16dd   :  { %3631 = vadd.xlane.f32.xlu0 %v3630_v45 }
0x16de   :  { %v3633_v46 = vsel %vm65_vm0, %v3629_v47, 0.0 }
0x16df   :  { %3634 = vadd.xlane.f32.xlu1 %v3633_v46 }
0x176a   :  { %v3632_v51 = vpop.xlane.xlu0 %3631 }
0x176b   :  { %v3636_v52 = vmul.f32 0.03125, %v3632_v51 }
0x176c   :  { %v3635_v53 = vpop.xlane.xlu1 %3634 }
0x176d   :  { %v3638_v54 = vadd.f32 1e-12, %v3636_v52  ;;  %v3637_v55 = vmul.f32 0.03125, %v3635_v53 }
0x176f   :  { %6711 = vrsqrt.f32 %v3638_v54  ;;  %v3639_v56 = vadd.f32 1e-12, %v3637_v55 }
0x1771   :  { %6713 = vrsqrt.f32 %v3639_v56 }
0x1779   :  { %v6712_v57 = vpop.eup %6711 }
0x177a   :  { %v3642_v24 = vmul.f32 %v6712_v57, %v3626_v42 }
0x177b   :  { %v6714_v32 = vpop.eup %6713 }
0x177c   :  { %v3650_v58 = vmul.f32 %v5902_v31, %v3642_v24  ;;  %v3643_v59 = vmul.f32 %v6714_v32, %v3627_v40 }
0x177e   :  { %v3651_v61 = vmul.f32 %v5902_v31, %v3643_v59  ;;  %v7463_v62 = vadd.f32 %v5903_v60, %v3650_v58 }
0x1780   :  { %v7465_v63 = vadd.f32 %v5903_v60, %v3651_v61 }
0x1782   :  { %v3665_v0 = vpack.c.bf16 %v7465_v63, %v7463_v62 }
0x1784   :  { %6371 = vmatmul.mubr.msk.bf16.vlgmr.msra.gmra.mrb[48].mxu0 %vm65_vm0, %v3665_v0 }
0x1785   :  { %6376 = vmatprep.mubr.msk.f32.mxu0 %vm6789_vm1, %v6788_v15 }
0x1857   :  { %v3723_v2 = vpop.f32.mrb[48].mxu0 }
0x1858   :  { %v7475_v3 = vadd.f32 %v5909_v1, %v3723_v2  ;;  %v6372_v4 = vpop.f32.mrb[49].mxu0 }
0x1859   :  { %v3726_v5 = vpop.f32.mrb[50].mxu0 }
0x185a   :  { %3898 = vrot.lane.b32.xlu1 %v7475_v3, %s7829_s21  ;;  %3731 = vrot.lane.b32.xlu0 %v7475_v3, %s7830_s29  ;;  %v6373_v6 = vpop.f32.mrb[51].mxu0  ;;  %v7489_v7 = vadd.f32 %v5909_v1, %v3726_v5 }
0x185e   :  { %3896 = vrot.lane.b32.xlu1 %v7475_v3, %s7831_s1  ;;  %4063 = vrot.lane.b32.xlu0 %v7475_v3, %s7832_s0 }
0x1862   :  { %4065 = vrot.lane.b32.xlu1 %v7475_v3, %s7833_s19  ;;  %4230 = vrot.lane.b32.xlu0 %v7475_v3, %s7834_s5 }
0x1866   :  { %4232 = vrot.lane.b32.xlu1 %v7475_v3, %s7835_s4  ;;  %4580 = vrot.lane.b32.xlu0 %v7489_v7, %s7829_s21 }
0x186a   :  { %4747 = vrot.lane.b32.xlu0 %v7489_v7, %s7833_s19  ;;  %4413 = vrot.lane.b32.xlu1 %v7489_v7, %s7830_s29 }
0x186e   :  { %4914 = vrot.lane.b32.xlu0 %v7489_v7, %s7835_s4  ;;  %4578 = vrot.lane.b32.xlu1 %v7489_v7, %s7831_s1  ;;  %s6805_s1 = smov [#allocation2]  }
0x1872   :  { %4745 = vrot.lane.b32.xlu1 %v7489_v7, %s7832_s0 }
0x1876   :  { %4912 = vrot.lane.b32.xlu1 %v7489_v7, %s7834_s5 }
0x18cc   :  { %v3899_v8 = vpop.permute.xlu1 %3898  ;;  %v3732_v9 = vpop.permute.xlu0 %3731 }
0x18cd   :  { %6375 = vmatpush3.xpose.msk.msra.mxu0 %vm183_vm2, %v3732_v9  ;;  %6385 = vmatpush3.xpose.msk.msra.mxu1 %vm183_vm2, %v3899_v8 }
0x18ce   :  { %6394 = vmatprep.subr.mxu1 %v6788_v15  ;;  %6379 = vmatprep.subr.mxu0 %v6788_v15 }
0x18d0   :  { %v3897_v10 = vpop.permute.xlu1 %3896  ;;  %6377 = vmatmul.mubr.msk.f32.vlgmr.msra.gmra.mrb[52].mxu0 %vm183_vm2, %v7475_v3  ;;  %v4064_v11 = vpop.permute.xlu0 %4063 }
0x18d1   :  { %6387 = vmatmul.mubr.msk.f32.vlgmr.msra.gmra.mrb[48].mxu1 %vm183_vm2, %v3897_v10  ;;  %6381 = vmatprep.mubr.msk.f32.mxu0 %vm6789_vm1, %v6788_v15 }
0x18d2   :  { %6396 = vmatprep.mubr.msk.f32.mxu1 %vm6789_vm1, %v6788_v15 }
0x18d4   :  { %v4066_v28 = vpop.permute.xlu1 %4065  ;;  %v4231_v13 = vpop.permute.xlu0 %4230 }
0x18d5   :  { %6395 = vmatpush3.xpose.msk.msra.mxu1 %vm183_vm2, %v4066_v28 }
0x18d6   :  { %6404 = vmatprep.subr.mxu1 %v6788_v15 }
0x18d8   :  { %v4233_v14 = vpop.permute.xlu1 %4232  ;;  %6397 = vmatmul.mubr.msk.f32.vlgmr.msra.gmra.mrb[50].mxu1 %vm183_vm2, %v4064_v11  ;;  %v4581_v16 = vpop.permute.xlu0 %4580 }
0x18d9   :  { %6405 = vmatpush3.xpose.msk.msra.mxu1 %vm183_vm2, %v4233_v14  ;;  %6406 = vmatprep.mubr.msk.f32.mxu1 %vm6789_vm1, %v6788_v15 }
0x18da   :  { %6414 = vmatprep.subr.mxu1 %v6788_v15 }
0x18dc   :  { %6407 = vmatmul.mubr.msk.f32.vlgmr.msra.gmra.mrb[52].mxu1 %vm183_vm2, %v4231_v13  ;;  %v4414_v17 = vpop.permute.xlu1 %4413  ;;  %v4748_v19 = vpop.permute.xlu0 %4747 }
0x18dd   :  { %6415 = vmatpush3.xpose.msk.msra.mxu1 %vm183_vm2, %v4414_v17  ;;  %6416 = vmatprep.mubr.msk.f32.mxu1 %vm6789_vm1, %v6788_v15 }
0x18de   :  { %6424 = vmatprep.subr.mxu1 %v6788_v15 }
0x18e0   :  { %6417 = vmatmul.mubr.msk.f32.vlgmr.msra.gmra.mrb[54].mxu1 %vm183_vm2, %v7489_v7  ;;  %v4579_v18 = vpop.permute.xlu1 %4578  ;;  %v4915_v22 = vpop.permute.xlu0 %4914 }
0x18e1   :  { %6425 = vmatpush3.xpose.msk.msra.mxu1 %vm183_vm2, %v4581_v16  ;;  %6426 = vmatprep.mubr.msk.f32.mxu1 %vm6789_vm1, %v6788_v15 }
0x18e2   :  { %6434 = vmatprep.subr.mxu1 %v6788_v15 }
0x18e4   :  { %6427 = vmatmul.mubr.msk.f32.vlgmr.msra.gmra.mrb[56].mxu1 %vm183_vm2, %v4579_v18  ;;  %v4746_v21 = vpop.permute.xlu1 %4745 }
0x18e5   :  { %6435 = vmatpush3.xpose.msk.msra.mxu1 %vm183_vm2, %v4748_v19  ;;  %6436 = vmatprep.mubr.msk.f32.mxu1 %vm6789_vm1, %v6788_v15 }
0x18e6   :  { %6444 = vmatprep.subr.mxu1 %v6788_v15 }
0x18e8   :  { %6437 = vmatmul.mubr.msk.f32.vlgmr.msra.gmra.mrb[58].mxu1 %vm183_vm2, %v4746_v21  ;;  %v4913_v23 = vpop.permute.xlu1 %4912 }
0x18e9   :  { %6445 = vmatpush3.xpose.msk.msra.mxu1 %vm183_vm2, %v4915_v22  ;;  %6446 = vmatprep.mubr.msk.f32.mxu1 %vm6789_vm1, %v6788_v15 }
0x18ea   :  { %6454 = vmatprep.subr.bf16.mxu1 %v6788_v15 }
0x18ec   :  { %6447 = vmatmul.mubr.msk.f32.vlgmr.msra.gmra.mrb[60].mxu1 %vm183_vm2, %v4913_v23 }
0x18ed   :  { %6458 = vmatprep.mubr.msk.bf16.mxu1 %vm6789_vm1, %v6788_v15 }
0x19a3   :  { %v3803_v25 = vpop.f32.mrb[52].mxu0 }
0x19a4   :  { %v3807_v26 = vmul.f32 0.35355338, %v3803_v25  ;;  %v6378_v27 = vpop.f32.mrb[53].mxu0  ;;  %v3970_v29 = vpop.f32.mrb[48].mxu1 }
0x19a5   :  { %v3974_v33 = vmul.f32 0.35355338, %v3970_v29  ;;  %v6388_v34 = vpop.f32.mrb[49].mxu1 }
0x19a6   :  { %v3808_v35 = vadd.f32 %v3807_v26, %v6978_v48 }
0x19a7   :  { %v3975_v37 = vadd.f32 %v3974_v33, %v6978_v48 }
0x19a8   :  { %v3809_v12 = vsel %vm183_vm2, %v3808_v35, -inf }
0x19a9   :  { %3810 = vmax.xlane.f32.xlu0 %v3809_v12  ;;  %v3976_v38 = vsel %vm183_vm2, %v3975_v37, -inf }
0x19aa   :  { %3977 = vmax.xlane.f32.xlu1 %v3976_v38 }
0x19ab   :  { %v4137_v39 = vpop.f32.mrb[50].mxu1 }
0x19ac   :  { %v4141_v20 = vmul.f32 0.35355338, %v4137_v39  ;;  %v6398_v36 = vpop.f32.mrb[51].mxu1 }
0x19ae   :  { %v7554_v41 = vadd.f32 %v4141_v20, %v6978_v48 }
0x19af   :  { %v4304_v42 = vpop.f32.mrb[52].mxu1 }
0x19b0   :  { %v4308_v43 = vmul.f32 0.35355338, %v4304_v42  ;;  %v6408_v40 = vpop.f32.mrb[53].mxu1  ;;  %v4143_v44 = vsel %vm183_vm2, %v7554_v41, -inf }
0x19b1   :  { %4144 = vmax.xlane.f32.xlu0 %v4143_v44 }
0x19b2   :  { %v4309_v45 = vadd.f32 %v4308_v43, %v6978_v48 }
0x19b3   :  { %v4485_v47 = vpop.f32.mrb[54].mxu1 }
0x19b4   :  { %v4489_v46 = vmul.f32 0.35355338, %v4485_v47  ;;  %v6418_v49 = vpop.f32.mrb[55].mxu1  ;;  %v4310_v50 = vsel %vm183_vm2, %v4309_v45, -inf }
0x19b5   :  { %4311 = vmax.xlane.f32.xlu0 %v4310_v50 }
0x19b6   :  { %v4490_v51 = vadd.f32 %v4489_v46, %v7046_v30 }
0x19b7   :  { %v4652_v52 = vpop.f32.mrb[56].mxu1 }
0x19b8   :  { %v4656_v53 = vmul.f32 0.35355338, %v4652_v52  ;;  %v6428_v54 = vpop.f32.mrb[57].mxu1  ;;  %v4491_v55 = vsel %vm183_vm2, %v4490_v51, -inf }
0x19b9   :  { %4492 = vmax.xlane.f32.xlu0 %v4491_v55 }
0x19ba   :  { %v4657_v56 = vadd.f32 %v4656_v53, %v7046_v30 }
0x19bb   :  { %v4819_v57 = vpop.f32.mrb[58].mxu1 }
0x19bc   :  { %v4823_v31 = vmul.f32 0.35355338, %v4819_v57  ;;  %v6438_v24 = vpop.f32.mrb[59].mxu1  ;;  %v4658_v48 = vsel %vm183_vm2, %v4657_v56, -inf }
0x19bd   :  { %4659 = vmax.xlane.f32.xlu1 %v4658_v48 }
0x19be   :  { %v4824_v32 = vadd.f32 %v4823_v31, %v7046_v30 }
0x19bf   :  { %v4986_v58 = vpop.f32.mrb[60].mxu1 }
0x19c0   :  { %v6448_v59 = vpop.f32.mrb[61].mxu1  ;;  %v4825_v60 = vsel %vm183_vm2, %v4824_v32, -inf  ;;  %v4990_v61 = vmul.f32 0.35355338, %v4986_v58 }
0x19c1   :  { %4826 = vmax.xlane.f32.xlu0 %v4825_v60 }
0x19c2   :  { %v4991_v0 = vadd.f32 %v4990_v61, %v7046_v30 }
0x19c4   :  { %v4992_v1 = vsel %vm183_vm2, %v4991_v0, -inf }
0x19ce   :  { %3820 = vrot.lane.b32.xlu1 %v7475_v3, %s7824_s2 }
0x19f2   :  { %4993 = vmax.xlane.f32.xlu1 %v4992_v1 }
0x1a03   :  { %4154 = vrot.lane.b32.xlu1 %v7475_v3, %s7823_s27 }
0x1a07   :  { %4321 = vrot.lane.b32.xlu1 %v7475_v3, %s7825_s24 }
0x1a0b   :  { %4502 = vrot.lane.b32.xlu1 %v7489_v7, %s7824_s2 }
0x1a36   :  { %v3811_v2 = vpop.xlane.xlu0 %3810 }
0x1a37   :  { %v3812_v4 = vsub.f32 %v3808_v35, %v3811_v2  ;;  %v3978_v5 = vpop.xlane.xlu1 %3977 }
0x1a38   :  { %v3979_v6 = vsub.f32 %v3975_v37, %v3978_v5 }
0x1a39   :  { %v3813_v8 = vmul.f32 1.442695, %v3812_v4 }
0x1a3a   :  { %v3980_v9 = vmul.f32 1.442695, %v3979_v6 }
0x1a3b   :  { %6715 = vpow2.f32 %v3813_v8 }
0x1a3c   :  { %6717 = vpow2.f32 %v3980_v9 }
0x1a3e   :  { %v4145_v30 = vpop.xlane.xlu0 %4144 }
0x1a3f   :  { %v4146_v23 = vsub.f32 %v7554_v41, %v4145_v30 }
0x1a41   :  { %v4147_v26 = vmul.f32 1.442695, %v4146_v23 }
0x1a42   :  { %v4312_v10 = vpop.xlane.xlu0 %4311 }
0x1a43   :  { %v4313_v11 = vsub.f32 %v4309_v45, %v4312_v10 }
0x1a45   :  { %v6716_v28 = vpop.eup %6715  ;;  %v4314_v13 = vmul.f32 1.442695, %v4313_v11 }
0x1a46   :  { %v7576_v14 = vpop.eup %6717  ;;  %v3815_v16 = vsel %vm183_vm2, %v6716_v28, 0.0  ;;  %v4493_v25 = vpop.xlane.xlu0 %4492 }
0x1a47   :  { %6719 = vpow2.f32 %v4314_v13  ;;  %3816 = vadd.xlane.f32.xlu0 %v3815_v16  ;;  %v3982_v17 = vsel %vm183_vm2, %v7576_v14, 0.0  ;;  %v4494_v27 = vsub.f32 %v4490_v51, %v4493_v25  ;;  %v6615_v25 = vld [vmem:[%s7773_s6 + $0x20] sm:$0xff]  }
0x1a48   :  { %3983 = vadd.xlane.f32.xlu1 %v3982_v17  ;;  %6721 = vpow2.f32 %v4147_v26  ;;  %6455 = vmatpush3.bf16.msra.mxu1 %v6615_v25 }
0x1a49   :  { %v4495_v33 = vmul.f32 1.442695, %v4494_v27  ;;  %6456 = vmatprep.subr.bf16.mxu1 %v6788_v15 }
0x1a4a   :  { %v4660_v18 = vpop.xlane.xlu1 %4659 }
0x1a4b   :  { %6723 = vpow2.f32 %v4495_v33  ;;  %v4661_v35 = vsub.f32 %v4657_v56, %v4660_v18 }
0x1a4d   :  { %v4662_v12 = vmul.f32 1.442695, %v4661_v35 }
0x1a4e   :  { %v3821_v19 = vpop.permute.xlu1 %3820  ;;  %v4827_v29 = vpop.xlane.xlu0 %4826 }
0x1a4f   :  { %6380 = vmatpush3.msra.mxu0 %v3821_v19  ;;  %v4828_v34 = vsub.f32 %v4824_v32, %v4827_v29  ;;  %v6616_v29 = vld [vmem:[%s7773_s6 + $0x28] sm:$0xff]  }
0x1a50   :  { %6389 = vmatprep.subr.mxu0 %v6788_v15  ;;  %6457 = vmatpush3.bf16.msra.mxu1 %v6616_v29 }
0x1a51   :  { %v7582_v21 = vpop.eup %6719  ;;  %v4829_v37 = vmul.f32 1.442695, %v4828_v34  ;;  %6470 = vmatprep.subr.bf16.mxu1 %v6788_v15 }
0x1a52   :  { %v4316_v22 = vsel %vm183_vm2, %v7582_v21, 0.0  ;;  %v6722_v38 = vpop.eup %6721 }
0x1a53   :  { %4317 = vadd.xlane.f32.xlu1 %v4316_v22  ;;  %6725 = vpow2.f32 %v4829_v37 }
0x1a54   :  { %6727 = vpow2.f32 %v4662_v12 }
0x1a55   :  { %v6724_v39 = vpop.eup %6723 }
0x1a56   :  { %v4497_v36 = vsel %vm183_vm2, %v6724_v39, 0.0 }
0x1a5d   :  { %3987 = vrot.lane.b32.xlu0 %v7475_v3, %s7822_s26  ;;  %v4149_v3 = vsel %vm183_vm2, %v6722_v38, 0.0  ;;  %v7593_v41 = vpop.eup %6725 }
0x1a5e   :  { %v4831_v40 = vsel %vm183_vm2, %v7593_v41, 0.0  ;;  %v6728_v44 = vpop.eup %6727 }
0x1a5f   :  { %v4664_v45 = vsel %vm183_vm2, %v6728_v44, 0.0 }
0x1a64   :  { %4669 = vrot.lane.b32.xlu1 %v7489_v7, %s7822_s26 }
0x1a7c   :  { %4150 = vadd.xlane.f32.xlu0 %v4149_v3 }
0x1a7f   :  { %v4994_v20 = vpop.xlane.xlu1 %4993 }
0x1a80   :  { %v4995_v42 = vsub.f32 %v4991_v0, %v4994_v20  ;;  %4498 = vadd.xlane.f32.xlu0 %v4497_v36 }
0x1a82   :  { %v4996_v43 = vmul.f32 1.442695, %v4995_v42 }
0x1a83   :  { %v4155_v49 = vpop.permute.xlu1 %4154 }
0x1a84   :  { %6729 = vpow2.f32 %v4996_v43  ;;  %4832 = vadd.xlane.f32.xlu0 %v4831_v40 }
0x1a87   :  { %v4322_v50 = vpop.permute.xlu1 %4321 }
0x1a88   :  { %4665 = vadd.xlane.f32.xlu1 %v4664_v45 }
0x1a8b   :  { %v4503_v51 = vpop.permute.xlu1 %4502 }
0x1a8e   :  { %v7598_v47 = vpop.eup %6729 }
0x1a8f   :  { %v4998_v46 = vsel %vm183_vm2, %v7598_v47, 0.0 }
0x1a90   :  { %4999 = vadd.xlane.f32.xlu0 %v4998_v46 }
0x1a99   :  { %5003 = vrot.lane.b32.xlu1 %v7489_v7, %s7825_s24 }
0x1aa6   :  { %4836 = vrot.lane.b32.xlu0 %v7489_v7, %s7823_s27 }
0x1ad4   :  { %v3817_v52 = vpop.xlane.xlu0 %3816 }
0x1ad5   :  { %6731 = vrcp.f32 %v3817_v52  ;;  %v3984_v53 = vpop.xlane.xlu1 %3983 }
0x1ad6   :  { %6733 = vrcp.f32 %v3984_v53 }
0x1ad8   :  { %v3988_v57 = vpop.permute.xlu0 %3987 }
0x1adf   :  { %v6732_v54 = vpop.eup %6731 }
0x1ae0   :  { %v3819_v55 = vmul.f32 %v6732_v54, %v6716_v28  ;;  %v6734_v56 = vpop.eup %6733  ;;  %v4318_v7 = vpop.xlane.xlu1 %4317 }
0x1ae1   :  { %v3986_v31 = vmul.f32 %v6734_v56, %v7576_v14  ;;  %v5942_v56 = vld [vmem:[%s7774_s7 + $0x2] ss:$0 sm:$0xff] }
0x1ae2   :  { %6382 = vmatmul.mubr.msk.f32.vlgmr.msra.gmra.mrb[54].mxu0 %vm183_vm2, %v3819_v55 }
0x1ae3   :  { %6390 = vmatpush3.msra.mxu0 %v3988_v57  ;;  %6391 = vmatprep.mubr.msk.f32.mxu0 %vm6789_vm1, %v6788_v15 }
0x1ae4   :  { %6399 = vmatprep.subr.mxu0 %v6788_v15  ;;  %v4670_v32 = vpop.permute.xlu1 %4669 }
0x1ae6   :  { %6392 = vmatmul.mubr.msk.f32.vlgmr.msra.gmra.mrb[56].mxu0 %vm183_vm2, %v3986_v31 }
0x1ae7   :  { %6400 = vmatpush3.msra.mxu0 %v4155_v49  ;;  %6401 = vmatprep.mubr.msk.f32.mxu0 %vm6789_vm1, %v6788_v15 }
0x1ae8   :  { %6409 = vmatprep.subr.mxu0 %v6788_v15 }
0x1b09   :  { %v4151_v24 = vpop.xlane.xlu0 %4150 }
0x1b0a   :  { %6735 = vrcp.f32 %v4151_v24 }
0x1b0b   :  { %6737 = vrcp.f32 %v4318_v7 }
0x1b0d   :  { %v4499_v48 = vpop.xlane.xlu0 %4498 }
0x1b0e   :  { %6739 = vrcp.f32 %v4499_v48 }
0x1b11   :  { %v4833_v60 = vpop.xlane.xlu0 %4832 }
0x1b14   :  { %v6736_v58 = vpop.eup %6735 }
0x1b15   :  { %v4153_v59 = vmul.f32 %v6736_v58, %v6722_v38  ;;  %v4666_v61 = vpop.xlane.xlu1 %4665  ;;  %v6738_v0 = vpop.eup %6737 }
0x1b16   :  { %6741 = vrcp.f32 %v4666_v61  ;;  %v4320_v1 = vmul.f32 %v6738_v0, %v7582_v21 }
0x1b17   :  { %6402 = vmatmul.mubr.msk.f32.vlgmr.msra.gmra.mrb[58].mxu0 %vm183_vm2, %v4153_v59  ;;  %6743 = vrcp.f32 %v4833_v60 }
0x1b18   :  { %6410 = vmatpush3.msra.mxu0 %v4322_v50  ;;  %6411 = vmatprep.mubr.msk.f32.mxu0 %vm6789_vm1, %v6788_v15  ;;  %v6740_v2 = vpop.eup %6739 }
0x1b19   :  { %6419 = vmatprep.subr.mxu0 %v6788_v15  ;;  %v4501_v4 = vmul.f32 %v6740_v2, %v6724_v39  ;;  %v5004_v11 = vpop.permute.xlu1 %5003 }
0x1b1b   :  { %6412 = vmatmul.mubr.msk.f32.vlgmr.msra.gmra.mrb[60].mxu0 %vm183_vm2, %v4320_v1 }
0x1b1c   :  { %6420 = vmatpush3.msra.mxu0 %v4503_v51  ;;  %6421 = vmatprep.mubr.msk.f32.mxu0 %vm6789_vm1, %v6788_v15 }
0x1b1d   :  { %v5000_v5 = vpop.xlane.xlu0 %4999  ;;  %6429 = vmatprep.subr.mxu0 %v6788_v15 }
0x1b1e   :  { %6745 = vrcp.f32 %v5000_v5 }
0x1b1f   :  { %6422 = vmatmul.mubr.msk.f32.vlgmr.msra.gmra.mrb[62].mxu0 %vm183_vm2, %v4501_v4 }
0x1b20   :  { %v6742_v6 = vpop.eup %6741  ;;  %6430 = vmatpush3.msra.mxu0 %v4670_v32  ;;  %6431 = vmatprep.mubr.msk.f32.mxu0 %vm6789_vm1, %v6788_v15 }
0x1b21   :  { %v4668_v8 = vmul.f32 %v6742_v6, %v6728_v44  ;;  %v4837_v9 = vpop.permute.xlu0 %4836  ;;  %6439 = vmatprep.subr.mxu0 %v6788_v15  ;;  %v6744_v30 = vpop.eup %6743 }
0x1b22   :  { %v4835_v10 = vmul.f32 %v6744_v30, %v7593_v41 }
0x1b23   :  { %6432 = vmatmul.mubr.msk.f32.vlgmr.msra.gmra.mrb[64].mxu0 %vm183_vm2, %v4668_v8 }
0x1b24   :  { %6440 = vmatpush3.msra.mxu0 %v4837_v9  ;;  %6441 = vmatprep.mubr.msk.f32.mxu0 %vm6789_vm1, %v6788_v15 }
0x1b25   :  { %6449 = vmatprep.subr.mxu0 %v6788_v15 }
0x1b27   :  { %6442 = vmatmul.mubr.msk.f32.vlgmr.msra.gmra.mrb[66].mxu0 %vm183_vm2, %v4835_v10  ;;  %v6618_v10 = vld [vmem:[%s7777_s10 + $0x28] sm:$0xff]  }
0x1b28   :  { %v6746_v28 = vpop.eup %6745  ;;  %6450 = vmatpush3.msra.mxu0 %v5004_v11  ;;  %6451 = vmatprep.mubr.msk.f32.mxu0 %vm6789_vm1, %v6788_v15 }
0x1b29   :  { %v5002_v13 = vmul.f32 %v6746_v28, %v7598_v47  ;;  %6462 = vmatprep.subr.bf16.mxu0 %v6788_v15 }
0x1b2b   :  { %6452 = vmatmul.mubr.msk.f32.vlgmr.msra.gmra.mrb[68].mxu0 %vm183_vm2, %v5002_v13 }
0x1b2c   :  { %6466 = vmatprep.mubr.msk.bf16.mxu0 %vm6789_vm1, %v6788_v15 }
0x1bb5   :  { %v3892_v14 = vpop.f32.mrb[54].mxu0 }
0x1bb6   :  { %v6383_v16 = vpop.f32.mrb[55].mxu0 }
0x1bb9   :  { %v4059_v17 = vpop.f32.mrb[56].mxu0 }
0x1bba   :  { %v6393_v18 = vpop.f32.mrb[57].mxu0 }
0x1bea   :  { %v4226_v19 = vpop.f32.mrb[58].mxu0 }
0x1beb   :  { %v6403_v21 = vpop.f32.mrb[59].mxu0 }
0x1bec   :  { %v5948_v21 = vld [vmem:[%s7775_s8 + $0x2] ss:$0 sm:$0xff]  ;;  %s5774_s8 = sshll.u32 %s6805_s1, 4  ;;  %s5775_s8 = int_to_ptr.vmem [resolvable:$true] %s5774_s8 }
0x1bed   :  { %s6764_s0 = scalar_lea.vmem %s5775_s8, 32  ;;  %p6769_p1 = scmp.lt.s32.totalorder %s5775_s8, %s5775_s8 }
0x1bee   :  { %v4393_v22 = vpop.f32.mrb[60].mxu0  ;;  %p6765_p0 = scmp.ne.s32.totalorder %s5775_s8, %s6764_s0  ;;  %p6770_p2 = scmp.lt.s32.totalorder %s6764_s0, %s6764_s0 }
0x1bef   :  { %v6413_v23 = vpop.f32.mrb[61].mxu0 }
0x1bf0   :  { %p6771_p3 = por %p6770_p2, %p6769_p1 }
0x1bf2   :  { %v4574_v26 = vpop.f32.mrb[62].mxu0  ;;  %p6772_p4 = pnand %p6771_p3, %p6765_p0 }
0x1bf3   :  { %v6423_v27 = vpop.f32.mrb[63].mxu0 }
0x1bf6   :  { %v4741_v33 = vpop.f32.mrb[64].mxu0 }
0x1bf7   :  { %v6578_v34 = vpack.i.bf16 %v4741_v33, %v4059_v17  ;;  %v6433_v35 = vpop.f32.mrb[65].mxu0 }
0x1bf8   :  { %v6619_v35 = vld [vmem:[%s7779_s12 + $0x40] sm:$0xff]  }
0x1bf9   :  { %6579 = vrot.lane.b32.xlu0 %v6578_v34, %s7826_s30 }
0x1bfa   :  { %v4908_v37 = vpop.f32.mrb[66].mxu0 }
0x1bfb   :  { %v6583_v12 = vpack.i.bf16 %v4908_v37, %v4226_v19  ;;  %v6443_v38 = vpop.f32.mrb[67].mxu0  ;;  %v6620_v37 = vld [vmem:[%s7779_s12 + $0x48] sm:$0xff]  }
0x1bfc   :  { %v6622_v38 = vld [vmem:[%s7779_s12 + $0x58] sm:$0xff]  }
0x1bfd   :  { %6584 = vrot.lane.b32.xlu1 %v6583_v12, %s7827_s23  ;;  %v6621_v12 = vld [vmem:[%s7779_s12 + $0x50] sm:$0xff]  }
0x1bfe   :  { %v5075_v3 = vpop.f32.mrb[68].mxu0 }
0x1bff   :  { %v6588_v39 = vpack.i.bf16 %v5075_v3, %v4393_v22  ;;  %v6453_v20 = vpop.f32.mrb[69].mxu0  ;;  %v5955_v3 = vld [vmem:[%s7778_s11 + $0x2] ss:$0 sm:$0xff] }
0x1c01   :  { %6589 = vrot.lane.b32.xlu0 %v6588_v39, %s7828_s25 }
0x1c6b   :  { %v6580_v36 = vpop.permute.xlu0 %6579 }
0x1c6c   :  { %v6582_v42 = vunpack.i.h.bf16 %v6580_v36  ;;  %v6581_v43 = vunpack.i.l.bf16 %v6580_v36 }
0x1c6e   :  { %v5091_v47 = vsel %vm183_vm2, %v4574_v26, %v6582_v42  ;;  %v4409_v46 = vsel %vm183_vm2, %v3892_v14, %v6581_v43  ;;  %v5949_v26 = vld [vmem:[%s7776_s9 + $0x2] ss:$0 sm:$0xff] }
0x1c6f   :  { %v6585_v41 = vpop.permute.xlu1 %6584 }
0x1c70   :  { %v6587_v40 = vunpack.i.h.bf16 %v6585_v41  ;;  %v6586_v44 = vunpack.i.l.bf16 %v6585_v41 }
0x1c72   :  { %v5092_v51 = vsel %vm865_vm3, %v5091_v47, %v6587_v40  ;;  %v4410_v52 = vsel %vm865_vm3, %v4409_v46, %v6586_v44 }
0x1c73   :  { %v6590_v45 = vpop.permute.xlu0 %6589 }
0x1c74   :  { %v6592_v49 = vunpack.i.h.bf16 %v6590_v45  ;;  %v6591_v50 = vunpack.i.l.bf16 %v6590_v45 }
0x1c76   :  { %v5093_v53 = vsel %vm867_vm4, %v5092_v51, %v6592_v49  ;;  %v4411_v54 = vsel %vm867_vm4, %v4410_v52, %v6591_v50 }
0x1c77   :  { %v5099_v55 = vpack.c.bf16 %v5093_v53, %v4411_v54 }
0x1c79   :  { %6459 = vmatmul.mubr.msk.bf16.vlgmr.msra.gmra.mrb[64].mxu1 %vm65_vm0, %v5099_v55 }
0x1c7a   :  { %6478 = vmatprep.mubr.msk.bf16.mxu1 %vm6789_vm1, %v6788_v15  ;;  %6471 = vmatpush3.bf16.msra.mxu1 %v6619_v35 }
0x1c7b   :  { %6472 = vmatprep.subr.bf16.mxu1 %v6788_v15 }
0x1c7e   :  { %6473 = vmatpush3.bf16.msra.mxu1 %v6620_v37 }
0x1c7f   :  { %6474 = vmatprep.subr.bf16.mxu1 %v6788_v15 }
0x1c82   :  { %6475 = vmatpush3.bf16.msra.mxu1 %v6621_v12 }
0x1c83   :  { %6476 = vmatprep.subr.bf16.mxu1 %v6788_v15 }
0x1c86   :  { %6477 = vmatpush3.bf16.msra.mxu1 %v6622_v38 }
0x1d4c   :  { %v5157_v57 = vpop.f32.mrb[64].mxu1 }
0x1d4d   :  { %v5158_v31 = vadd.f32 %v5942_v56, %v5157_v57  ;;  %v6460_v7 = vpop.f32.mrb[65].mxu1 }
0x1d4e   :  { %v5160_v24 = vpop.f32.mrb[66].mxu1 }
0x1d4f   :  { %v5164_v48 = vadd.f32 %v5158_v31, %v7463_v62  ;;  %v5161_v32 = vadd.f32 %v5942_v56, %v5160_v24  ;;  %v6461_v58 = vpop.f32.mrb[67].mxu1 }
0x1d50   :  { %v5968_v58 = vld [vmem:[%s7780_s13 + $0x2] ss:$0 sm:$0xff] }
0x1d51   :  { %v5165_v59 = vadd.f32 %v5161_v32, %v7465_v63  ;;  %v5170_v60 = vsel %vm65_vm0, %v5164_v48, 0.0  ;;  %v6617_v63 = vld [vmem:[%s7777_s10 + $0x20] sm:$0xff]  }
0x1d52   :  { %5171 = vadd.xlane.f32.xlu1 %v5170_v60  ;;  %6463 = vmatpush3.bf16.msra.mxu0 %v6617_v63 }
0x1d53   :  { %v5173_v61 = vsel %vm65_vm0, %v5165_v59, 0.0  ;;  %6464 = vmatprep.subr.bf16.mxu0 %v6788_v15 }
0x1d54   :  { %5174 = vadd.xlane.f32.xlu0 %v5173_v61 }
0x1d56   :  { %6465 = vmatpush3.bf16.msra.mxu0 %v6618_v10 }
0x1d57   :  { %6482 = vmatprep.subr.mxu0 %v6788_v15 }
0x1ddf   :  { %v5172_v0 = vpop.xlane.xlu1 %5171 }
0x1de0   :  { %v5176_v1 = vmul.f32 0.03125, %v5172_v0 }
0x1de1   :  { %v5175_v2 = vpop.xlane.xlu0 %5174 }
0x1de2   :  { %v5178_v4 = vsub.f32 %v5164_v48, %v5176_v1  ;;  %v5177_v5 = vmul.f32 0.03125, %v5175_v2 }
0x1de4   :  { %v5179_v6 = vsub.f32 %v5165_v59, %v5177_v5  ;;  %v5180_v8 = vmul.f32 %v5178_v4, %v5178_v4 }
0x1de6   :  { %v5182_v9 = vsel %vm65_vm0, %v5180_v8, 0.0  ;;  %v5181_v62 = vmul.f32 %v5179_v6, %v5179_v6 }
0x1de7   :  { %5183 = vadd.xlane.f32.xlu0 %v5182_v9 }
0x1de8   :  { %v5185_v30 = vsel %vm65_vm0, %v5181_v62, 0.0 }
0x1deb   :  { %5186 = vadd.xlane.f32.xlu0 %v5185_v30 }
0x1e74   :  { %v5184_v11 = vpop.xlane.xlu0 %5183 }
0x1e75   :  { %v5188_v28 = vmul.f32 0.03125, %v5184_v11 }
0x1e77   :  { %v5190_v13 = vadd.f32 1e-12, %v5188_v28 }
0x1e78   :  { %v5187_v14 = vpop.xlane.xlu0 %5186 }
0x1e79   :  { %6747 = vrsqrt.f32 %v5190_v13  ;;  %v5189_v16 = vmul.f32 0.03125, %v5187_v14 }
0x1e7b   :  { %v5191_v17 = vadd.f32 1e-12, %v5189_v16 }
0x1e7d   :  { %6749 = vrsqrt.f32 %v5191_v17  ;;  %v7718_v17 = vld [vmem:[%s7821_s22] sm:$0x3] }
0x1e83   :  { %v6748_v18 = vpop.eup %6747 }
0x1e84   :  { %v5194_v19 = vmul.f32 %v6748_v18, %v5178_v4  ;;  %v5513_v18 = vsel %vm5512_vm6, %v7718_v17, 0.0 }
0x1e86   :  { %v5202_v23 = vmul.f32 %v5948_v21, %v5194_v19  ;;  %v5434_v19 = vld [vmem:[%s7783_s16] sm:$0xff] }
0x1e87   :  { %v6750_v22 = vpop.eup %6749 }
0x1e88   :  { %v5195_v25 = vmul.f32 %v6750_v22, %v5179_v6  ;;  %v5210_v29 = vadd.f32 %v5949_v26, %v5202_v23  ;;  %v6804_v23 = vmov 0.0|0.0  }
0x1e89   :  { %6520 = vmatprep.subr.bf16.mxu1 %v6804_v23 }
0x1e8a   :  { %v5203_v27 = vmul.f32 %v5948_v21, %v5195_v25  ;;  %v5435_v21 = vld [vmem:[%s7783_s16 + $0x8] sm:$0xff]  ;;  %v5436_v25 = vld [vmem:[%s7783_s16 + $0x10] sm:$0xff] }
0x1e8b   :  { %v6515_v22 = vpack.c.bf16 %v5435_v21, %v5434_v19 }
0x1e8c   :  { %v5211_v33 = vadd.f32 %v5949_v26, %v5203_v27  ;;  %v5437_v26 = vld [vmem:[%s7783_s16 + $0x18] sm:$0xff] }
0x1e8d   :  { %v6518_v27 = vpack.c.bf16 %v5437_v26, %v5436_v25 }
0x1e8e   :  { %v5217_v34 = vpack.c.bf16 %v5211_v33, %v5210_v29 }
0x1e90   :  { %6467 = vmatmul.mubr.msk.bf16.vlgmr.msra.gmra.mrb[72].mxu0 %vm65_vm0, %v5217_v34 }
0x1e91   :  { %6484 = vmatprep.mubr.msk.f32.mxu0 %vm6789_vm1, %v6788_v15 }
0x1f63   :  { %v5275_v39 = vpop.f32.mrb[72].mxu0 }
0x1f64   :  { %v5276_v20 = vadd.f32 %v5955_v3, %v5275_v39  ;;  %v6468_v36 = vpop.f32.mrb[73].mxu0 }
0x1f65   :  { %v5278_v41 = vpop.f32.mrb[74].mxu0 }
0x1f66   :  { %v5284_v42 = vmul.f32 0.044715, %v5276_v20  ;;  %v5279_v43 = vadd.f32 %v5955_v3, %v5278_v41  ;;  %v6469_v40 = vpop.f32.mrb[75].mxu0  ;;  %v5282_v57 = vmul.f32 0.5, %v5276_v20  ;;  %v5976_v3 = vld [vmem:[%s7781_s14 + $0x2] ss:$0 sm:$0xff] }
0x1f68   :  { %v5286_v44 = vmul.f32 %v5284_v42, %v5276_v20  ;;  %v5285_v45 = vmul.f32 0.044715, %v5279_v43  ;;  %v5283_v31 = vmul.f32 0.5, %v5279_v43 }
0x1f6a   :  { %v5288_v47 = vmul.f32 %v5286_v44, %v5276_v20  ;;  %v5287_v46 = vmul.f32 %v5285_v45, %v5279_v43 }
0x1f6c   :  { %v5290_v49 = vadd.f32 %v5288_v47, %v5276_v20  ;;  %v5289_v50 = vmul.f32 %v5287_v46, %v5279_v43  ;;  %v5977_v20 = vld [vmem:[%s7782_s15 + $0x2] ss:$0 sm:$0xff] }
0x1f6e   :  { %v5292_v51 = vmul.f32 0.7978846, %v5290_v49  ;;  %v5291_v52 = vadd.f32 %v5289_v50, %v5279_v43 }
0x1f70   :  { %6751 = vtanh.f32 %v5292_v51  ;;  %v5293_v53 = vmul.f32 0.7978846, %v5291_v52 }
0x1f72   :  { %6753 = vtanh.f32 %v5293_v53  ;;  %v5600_v53 = vrot.slane %v7718_v17, 1 }
0x1f7a   :  { %v6752_v54 = vpop.eup %6751 }
0x1f7b   :  { %v5296_v55 = vadd.f32 1.0, %v6752_v54  ;;  %v5674_v54 = vsel %vm5512_vm6, %v5600_v53, 0.0 }
0x1f7c   :  { %v6754_v56 = vpop.eup %6753 }
0x1f7d   :  { %v5297_v7 = vadd.f32 1.0, %v6754_v56  ;;  %v5298_v24 = vmul.f32 %v5296_v55, %v5282_v57 }
0x1f7f   :  { %v5299_v48 = vmul.f32 %v5297_v7, %v5283_v31 }
0x1f81   :  { %v5309_v32 = vpack.c.bf16 %v5299_v48, %v5298_v24 }
0x1f83   :  { %6479 = vmatmul.mubr.msk.bf16.vlgmr.msra.gmra.mrb[68].mxu1 %vm1795_vm5, %v5309_v32 }
0x1f84   :  { %6511 = vmatprep.mubr.msk.f32.mxu1 %vm6789_vm1, %v6788_v15  ;;  %6522 = vmatpush3.bf16.msra.mxu1 %v6515_v22 }
0x1f85   :  { %6523 = vmatprep.subr.bf16.mxu1 %v6804_v23 }
0x1f88   :  { %6525 = vmatpush3.bf16.msra.mxu1 %v6518_v27 }
0x2056   :  { %v5379_v59 = vpop.f32.mrb[68].mxu1 }
0x2057   :  { %v5380_v60 = vadd.f32 %v5968_v58, %v5379_v59  ;;  %v6480_v61 = vpop.f32.mrb[69].mxu1 }
0x2058   :  { %v5382_v0 = vpop.f32.mrb[70].mxu1 }
0x2059   :  { %v5386_v1 = vadd.f32 %v5380_v60, %v5210_v29  ;;  %v5383_v2 = vadd.f32 %v5968_v58, %v5382_v0  ;;  %v6481_v4 = vpop.f32.mrb[71].mxu1 }
0x205b   :  { %v5387_v5 = vadd.f32 %v5383_v2, %v5211_v33  ;;  %v5392_v6 = vsel %vm65_vm0, %v5386_v1, 0.0 }
0x205c   :  { %5393 = vadd.xlane.f32.xlu1 %v5392_v6 }
0x205d   :  { %v5395_v8 = vsel %vm65_vm0, %v5387_v5, 0.0 }
0x2060   :  { %5396 = vadd.xlane.f32.xlu1 %v5395_v8 }
0x20e9   :  { %v5394_v9 = vpop.xlane.xlu1 %5393 }
0x20ea   :  { %v5398_v62 = vmul.f32 0.03125, %v5394_v9 }
0x20ec   :  { %v5400_v30 = vsub.f32 %v5386_v1, %v5398_v62  ;;  %v5438_v62 = vld [vmem:[%s7784_s17] sm:$0x1] }
0x20ed   :  { %v5397_v63 = vpop.xlane.xlu1 %5396 }
0x20ee   :  { %v5399_v10 = vmul.f32 0.03125, %v5397_v63  ;;  %v5402_v11 = vmul.f32 %v5400_v30, %v5400_v30 }
0x20f0   :  { %v5401_v28 = vsub.f32 %v5387_v5, %v5399_v10  ;;  %v5404_v13 = vsel %vm65_vm0, %v5402_v11, 0.0 }
0x20f1   :  { %5405 = vadd.xlane.f32.xlu0 %v5404_v13 }
0x20f2   :  { %v5403_v14 = vmul.f32 %v5401_v28, %v5401_v28 }
0x20f4   :  { %v5407_v16 = vsel %vm65_vm0, %v5403_v14, 0.0 }
0x20f5   :  { %5408 = vadd.xlane.f32.xlu1 %v5407_v16  ;;  %5514 = vadd.xlane.f32.xlu0 %v5513_v18 }
0x20f9   :  { %5675 = vadd.xlane.f32.xlu0 %v5674_v54 }
0x217e   :  { %v5406_v29 = vpop.xlane.xlu0 %5405 }
0x217f   :  { %v5410_v33 = vmul.f32 0.03125, %v5406_v29 }
0x2181   :  { %v5412_v34 = vadd.f32 1e-12, %v5410_v33 }
0x2182   :  { %v5409_v35 = vpop.xlane.xlu1 %5408  ;;  %v5515_v44 = vpop.xlane.xlu0 %5514 }
0x2183   :  { %6755 = vrsqrt.f32 %v5412_v34  ;;  %v5411_v37 = vmul.f32 0.03125, %v5409_v35  ;;  %v5516_v47 = vrot.slane %v5515_v44, 4 }
0x2185   :  { %v5413_v12 = vadd.f32 1e-12, %v5411_v37  ;;  %v5517_v46 = vadd.f32 %v5516_v47, %v5515_v44 }
0x2186   :  { %v5676_v48 = vpop.xlane.xlu0 %5675 }
0x2187   :  { %6757 = vrsqrt.f32 %v5413_v12  ;;  %v5518_v49 = vrot.slane %v5517_v46, 2  ;;  %v5677_v32 = vrot.slane %v5676_v48, 4 }
0x2189   :  { %v5519_v50 = vadd.f32 %v5518_v49, %v5517_v46  ;;  %v5678_v58 = vadd.f32 %v5677_v32, %v5676_v48 }
0x218b   :  { %v5520_v51 = vrot.slane %v5519_v50, 1  ;;  %v5679_v59 = vrot.slane %v5678_v58, 2 }
0x218d   :  { %v6756_v38 = vpop.eup %6755  ;;  %v5521_v52 = vadd.f32 %v5520_v51, %v5519_v50  ;;  %v5680_v60 = vadd.f32 %v5679_v59, %v5678_v58 }
0x218e   :  { %v5416_v39 = vmul.f32 %v6756_v38, %v5400_v30 }
0x218f   :  { %6526 = vpush %v5521_v52  ;;  %v5681_v61 = vrot.slane %v5680_v60, 1 }
0x2190   :  { %v5424_v36 = vmul.f32 %v5976_v3, %v5416_v39 }
0x2191   :  { %v6758_v41 = vpop.eup %6757  ;;  %v5682_v0 = vadd.f32 %v5681_v61, %v5680_v60 }
0x2192   :  { %v5432_v42 = vadd.f32 %v5977_v20, %v5424_v36  ;;  %v5417_v43 = vmul.f32 %v6758_v41, %v5401_v28 }
0x2193   :  { %6528 = vpush %v5682_v0 }
0x2194   :  { %6483 = vmatpush3.msra.mxu0 %v5432_v42  ;;  %v5425_v40 = vmul.f32 %v5976_v3, %v5417_v43 }
0x2195   :  { %6485 = vmatmul.mubr.msk.f32.vlgmr.msra.gmra.mrb[70].mxu0 %vm183_vm2, %v7718_v17  ;;  %6514 = vmatprep.subr.bf16.mxu0 %v6804_v23 }
0x2196   :  { %6516 = vmatpush3.bf16.msra.mxu0 %v6515_v22  ;;  %6495 = vmatprep.mubr.msk.f32.mxu0 %vm6789_vm1, %v6788_v15  ;;  %v5433_v45 = vadd.f32 %v5977_v20, %v5425_v40 }
0x2197   :  { %6517 = vmatprep.subr.bf16.mxu0 %v6804_v23 }
0x219a   :  { %6519 = vmatpush3.bf16.msra.mxu0 %v6518_v27 }
0x219b   :  { %6498 = vmatprep.subr.mxu0 %v6788_v15 }
0x21c0   :  { %s6527_s14 = spop %6526 }
0x21c1   :  { %v5523_v55 = vstv %s6527_s14 }
0x21c2   :  { %v5524_v56 = vmax.f32 %v5523_v55, 1e-09 }
0x21c4   :  { %6759 = vrcp.f32 %v5524_v56  ;;  %s6529_s15 = spop %6528 }
0x21c5   :  { %v5684_v1 = vstv %s6529_s15 }
0x21c6   :  { %v5685_v2 = vmax.f32 %v5684_v1, 1e-09 }
0x21c8   :  { %6761 = vrcp.f32 %v5685_v2 }
0x21ce   :  { %v6760_v57 = vpop.eup %6759 }
0x21d2   :  { %v6762_v6 = vpop.eup %6761 }
0x2268   :  { %v5508_v31 = vpop.f32.mrb[70].mxu0 }
0x2269   :  { %v5526_v7 = vmul.f32 %v6760_v57, %v5508_v31  ;;  %v6486_v24 = vpop.f32.mrb[71].mxu0 }
0x226b   :  { %6496 = vmatmul.mubr.msk.f32.vlgmr.msra.gmra.mrb[76].mxu0 %vm65_vm0, %v5526_v7 }
0x226c   :  { %6499 = vmatpush3.msra.mxu0 %v5433_v45  ;;  %6500 = vmatprep.mubr.msk.f32.mxu0 %vm6789_vm1, %v6788_v15 }
0x226f   :  { %6501 = vmatmul.mubr.msk.f32.vlgmr.msra.gmra.mrb[78].mxu0 %vm183_vm2, %v5600_v53 }
0x233e   :  { %v5596_v4 = vpop.f32.mrb[76].mxu0 }
0x233f   :  { %v6497_v5 = vpop.f32.mrb[77].mxu0  ;;  %v5597_v11 = vadd.f32 %v5596_v4, %v5438_v62 }
0x2342   :  { %v5669_v8 = vpop.f32.mrb[78].mxu0 }
0x2343   :  { %v5687_v9 = vmul.f32 %v6762_v6, %v5669_v8  ;;  %v6502_v15 = vpop.f32.mrb[79].mxu0 }
0x2345   :  { %6512 = vmatmul.mubr.msk.f32.vlgmr.msra.gmra.mrb[62].mxu1 %vm65_vm0, %v5687_v9 }
0x2418   :  { %v5757_v30 = vpop.f32.mrb[62].mxu1 }
0x2419   :  { %v5758_v63 = vadd.f32 %v5757_v30, %v5438_v62  ;;  %v6513_v10 = vpop.f32.mrb[63].mxu1 }
0x241b   :  { %v5762_v28 = vrot.slane %v5758_v63, 7 }
0x241d   :  { %v5765_v13 = vsel %vm5764_vm7, %v5597_v11, %v5762_v28 }
0x241e   :  { %5767 = vst.msk [vmem:[#allocation2] sm:$0x3] %vm5766_vm8, %v5765_v13 }
0x241f   :  { %6775 = shalt.err (!%p6772_p4)
}
0x2420   :  { %s6776_s19 = scalar_lea.hbm %s7785_s18, 32 }
0x2421   :  { %p6777_p5 = scmp.ne.s32.totalorder %s7785_s18, %s6776_s19  ;;  %p6780_p6 = scmp.lt.u32.totalorder %s6776_s19, %s7785_s18 }
0x2423   :  { %p6782_p7 = pnand %p6780_p6, %p6777_p5 }
0x2425   :  { %6785 = shalt.err (!%p6782_p7)
}
0x2426   :  { %5777 = dma.vmem_to_hbm [thread:$0]  %s5775_s8, 32, %s7785_s18, [#allocation3]  }
0x2427   :  { %6786 = dma.done.wait [#allocation3], 32  }
0x2428   :  { %6787 = vsyncadd [#allocation3], 4294967264 }
0x2429   :  { %5781 = vsyncpa [#allocation3], 1 }

</bundles_post_ra>
